<compile_context>
chip_gen: v7x
topology: tpu7x:2x2x1
jax: 0.10.0
libtpu: 0.0.40
codegen_flags: <defaults>
</compile_context>

<pallas_src>
import functools
import math

import jax
import jax.numpy as jnp
from jax.experimental import pallas as pl
from jax.experimental.pallas import tpu as pltpu


def _round_up(a, b):
    return (a + b - 1) // b * b


def _cdiv(a, b):
    return (a + b - 1) // b


def _mlp_kernel(x_ref,
                w1, b1, w2, b2, w3, b3, w4, b4, w5, b5, w6, b6,
                o_ref, *, dot_dtype):
    """Feature-major per-point MLP tile.

    x_ref: (d_in, TM) f32.  w1: (H, d_in) f32.  w2..w6: (out, in) dot_dtype.
    b_k: (out_k, 1) f32.  o_ref: (d_out, TM) f32.
    """
    x = x_ref[...]                                   # (d_in, TM) f32

    # ---- Layer 1 (d_in -> H) on the VPU: unrolled broadcast FMAs, no MXU. ----
    w1f = w1[...]                                    # (H, d_in) f32
    h32 = b1[...] + w1f[:, 0:1] * x[0:1, :]          # (H, 1)*(1, TM) -> (H, TM)
    for i in range(1, x.shape[0]):                   # d_in is tiny (3), unrolled
        h32 = h32 + w1f[:, i:i + 1] * x[i:i + 1, :]
    # ReLU epilogue folds the downcast: activations live in dot_dtype between layers.
    h = jnp.maximum(h32, 0.0).astype(dot_dtype)

    # ---- Layers 2..6 on the MXU, feature-major: y = W^T @ h + b. ------------
    # Weights arrive pre-cast to dot_dtype; biases add into the f32 accumulator.
    def dense(a, w_ref, b_ref, relu):
        y = jnp.dot(w_ref[...], a, preferred_element_type=jnp.float32) + b_ref[...]
        return jnp.maximum(y, 0.0).astype(dot_dtype) if relu else y

    h = dense(h, w2, b2, True)
    h = dense(h, w3, b3, True)
    h = dense(h, w4, b4, True)
    h = dense(h, w5, b5, True)
    out = dense(h, w6, b6, False)                    # (d_out, TM) f32, lane-dense

    o_ref[...] = out.astype(o_ref.dtype)


def _pick_tiling(n, tile_m, min_grid):
    """Point-axis tiling: lane-aligned tile, >= min_grid steps, low padding waste."""
    n128 = _round_up(max(n, 1), 128)
    max_tiles = n128 // 128                          # can't split below 128 lanes
    g = min(max_tiles, max(min_grid, _cdiv(n128, max(tile_m, 128))))
    g = max(g, 1)
    tile = _round_up(_cdiv(n128, g), 128)
    n_pad = g * tile
    return tile, n_pad, g


def point_cloud_flow_forward(x, params, t=0, *, tile_m=2048, min_grid=2,
                             dot_dtype=jnp.bfloat16):
    """x: (N, input_dim) float32; params: list of (W[in,out], b[out]) pairs.

    `t` is unused (matches the PyTorch forward signature). Returns (N, 3) f32.
    """
    del t
    N, d_in = x.shape
    d_out = params[-1][1].shape[0]

    tile, n_pad, grid = _pick_tiling(N, tile_m, min_grid)

    # Feature-major, zero-padded input: points on the lane axis.
    x_t = jnp.pad(x.T.astype(jnp.float32), ((0, 0), (0, n_pad - N)))

    flat = []
    in_specs = [pl.BlockSpec((d_in, tile), lambda i: (0, i))]
    for li, (w, b) in enumerate(params):
        # Layer 1 runs on the VPU in f32; layers 2..6 feed the MXU in dot_dtype.
        w_dt = jnp.float32 if li == 0 else dot_dtype
        wt = jnp.asarray(w, jnp.float32).T.astype(w_dt)      # (out, in)
        bt = jnp.asarray(b, jnp.float32).reshape(-1, 1)      # (out, 1)
        flat += [wt, bt]
        # Full (untiled) blocks with constant index maps -> stay VMEM-resident.
        in_specs.append(pl.BlockSpec(wt.shape, lambda i: (0, 0)))
        in_specs.append(pl.BlockSpec(bt.shape, lambda i: (0, 0)))

    # VMEM budget: generous f32 bound for activations (+bf16 copies), the
    # double-buffered x/out tiles, resident (double-buffered) weights, and a
    # few MiB of Mosaic matmul scratch.  Clamp to physical VMEM minus headroom.
    widths = [d_in] + [w.shape[1] for w, _ in params]
    act_bytes = 2 * tile * sum(widths) * 4
    io_bytes = 2 * 2 * tile * (d_in + d_out) * 4
    wgt_bytes = 2 * sum(int(a.size) * a.dtype.itemsize for a in flat)
    est = act_bytes + io_bytes + wgt_bytes + (4 << 20)
    try:
        hw_vmem = int(pltpu.get_tpu_info().vmem_capacity_bytes)
    except Exception:  # older jax or info unavailable: assume smallest (v7x, 64 MiB)
        hw_vmem = 64 << 20
    vmem_bytes = int(min(max(est, 32 << 20), hw_vmem - (8 << 20)))

    kernel = functools.partial(_mlp_kernel, dot_dtype=dot_dtype)

    out_t = pl.pallas_call(
        kernel,
        out_shape=jax.ShapeDtypeStruct((d_out, n_pad), jnp.float32),
        grid_spec=pltpu.PrefetchScalarGridSpec(
            num_scalar_prefetch=0,
            grid=(grid,),
            in_specs=in_specs,
            out_specs=pl.BlockSpec((d_out, tile), lambda i: (0, i)),
        ),
        compiler_params=pltpu.CompilerParams(
            dimension_semantics=("parallel",),
            vmem_limit_bytes=vmem_bytes),
    )(x_t, *flat)

    # Back to the caller's point-major layout; drop the padded points.
    return out_t[:, :N].T


def init_params(key, input_dim=3, hidden_dim=64):
    """PyTorch-style uniform(+-1/sqrt(fan_in)) init; weights stored (in, out)."""
    dims = [input_dim, hidden_dim, hidden_dim * 2, hidden_dim * 4,
            hidden_dim * 2, hidden_dim, 3]
    params = []
    for i in range(len(dims) - 1):
        fan_in, fan_out = dims[i], dims[i + 1]
        key, kw, kb = jax.random.split(key, 3)
        bound = 1.0 / math.sqrt(fan_in)
        w = jax.random.uniform(kw, (fan_in, fan_out), jnp.float32,
                               minval=-bound, maxval=bound)
        b = jax.random.uniform(kb, (fan_out,), jnp.float32,
                               minval=-bound, maxval=bound)
        params.append((w, b))
    return params


def reference_forward(x, params):
    h = x
    for i, (w, b) in enumerate(params):
        h = jnp.dot(h, w, precision=jax.lax.Precision.HIGHEST) + b
        if i < len(params) - 1:
            h = jnp.maximum(h, 0.0)
    return h


if __name__ == "__main__":
    key = jax.random.PRNGKey(0)
    k_params, k_x = jax.random.split(key)

    input_dim, hidden_dim = 3, 64
    N = 1000  # deliberately NOT a multiple of 128 -> exercises padding + 2-step grid

    params = init_params(k_params, input_dim=input_dim, hidden_dim=hidden_dim)
    x = jax.random.normal(k_x, (N, input_dim), jnp.float32)

    ref = reference_forward(x, params)

    # Exact (f32 matmul) path: tight correctness check.
    out_f32 = point_cloud_flow_forward(x, params, dot_dtype=jnp.float32)
    out_f32 = jax.block_until_ready(out_f32)
    assert out_f32.shape == (N, 3)
    assert jnp.allclose(out_f32, ref, atol=2e-4, rtol=2e-4), "f32 mismatch"

    # Fast path (bf16 operands + bf16 inter-layer activations, f32 accumulate).
    out_bf16 = point_cloud_flow_forward(x, params, dot_dtype=jnp.bfloat16)
    out_bf16 = jax.block_until_ready(out_bf16)
    assert out_bf16.shape == (N, 3)
    assert jnp.allclose(out_bf16, ref, atol=2e-2, rtol=2e-2), "bf16 mismatch"

    print("KERNEL_OK")
</pallas_src>

<mosaic_0001>
module attributes {stable_mosaic.version = 11 : i64} {
  func.func @_mlp_kernel(%arg0: i32, %arg1: memref<3x512xf32, #tpu.memory_space<vmem>>, %arg2: memref<64x3xf32, #tpu.memory_space<vmem>>, %arg3: memref<64x1xf32, #tpu.memory_space<vmem>>, %arg4: memref<128x64xf32, #tpu.memory_space<vmem>>, %arg5: memref<128x1xf32, #tpu.memory_space<vmem>>, %arg6: memref<256x128xf32, #tpu.memory_space<vmem>>, %arg7: memref<256x1xf32, #tpu.memory_space<vmem>>, %arg8: memref<128x256xf32, #tpu.memory_space<vmem>>, %arg9: memref<128x1xf32, #tpu.memory_space<vmem>>, %arg10: memref<64x128xf32, #tpu.memory_space<vmem>>, %arg11: memref<64x1xf32, #tpu.memory_space<vmem>>, %arg12: memref<3x64xf32, #tpu.memory_space<vmem>>, %arg13: memref<3x1xf32, #tpu.memory_space<vmem>>, %arg14: memref<3x512xf32, #tpu.memory_space<vmem>>) attributes {dimension_semantics = [#tpu.dimension_semantics<parallel>], iteration_bounds = array<i64: 2>, scalar_prefetch = 0 : i64, scratch_operands = 0 : i64, tpu.core_type = #tpu.core_type<tc>, window_params = [{transform_indices = @transform_0, window_bounds = array<i64: 3, 512>}, {pipeline_mode = #tpu.pipeline_mode<synchronous>, transform_indices = @transform_1, window_bounds = array<i64: 64, 3>}, {pipeline_mode = #tpu.pipeline_mode<synchronous>, transform_indices = @transform_2, window_bounds = array<i64: 64, 1>}, {pipeline_mode = #tpu.pipeline_mode<synchronous>, transform_indices = @transform_3, window_bounds = array<i64: 128, 64>}, {pipeline_mode = #tpu.pipeline_mode<synchronous>, transform_indices = @transform_4, window_bounds = array<i64: 128, 1>}, {pipeline_mode = #tpu.pipeline_mode<synchronous>, transform_indices = @transform_5, window_bounds = array<i64: 256, 128>}, {pipeline_mode = #tpu.pipeline_mode<synchronous>, transform_indices = @transform_6, window_bounds = array<i64: 256, 1>}, {pipeline_mode = #tpu.pipeline_mode<synchronous>, transform_indices = @transform_7, window_bounds = array<i64: 128, 256>}, {pipeline_mode = #tpu.pipeline_mode<synchronous>, transform_indices = @transform_8, window_bounds = array<i64: 128, 1>}, {pipeline_mode = #tpu.pipeline_mode<synchronous>, transform_indices = @transform_9, window_bounds = array<i64: 64, 128>}, {pipeline_mode = #tpu.pipeline_mode<synchronous>, transform_indices = @transform_10, window_bounds = array<i64: 64, 1>}, {pipeline_mode = #tpu.pipeline_mode<synchronous>, transform_indices = @transform_11, window_bounds = array<i64: 3, 64>}, {pipeline_mode = #tpu.pipeline_mode<synchronous>, transform_indices = @transform_12, window_bounds = array<i64: 3, 1>}, {transform_indices = @transform_13, window_bounds = array<i64: 3, 512>}]} {
    %c0 = arith.constant 0 : index
    %c0_0 = arith.constant 0 : index
    %0 = vector.load %arg1[%c0, %c0_0] : memref<3x512xf32, #tpu.memory_space<vmem>>, vector<3x512xf32>
    %c0_1 = arith.constant 0 : index
    %c0_2 = arith.constant 0 : index
    %1 = vector.load %arg2[%c0_1, %c0_2] : memref<64x3xf32, #tpu.memory_space<vmem>>, vector<64x3xf32>
    %c0_3 = arith.constant 0 : index
    %c0_4 = arith.constant 0 : index
    %2 = vector.load %arg3[%c0_3, %c0_4] : memref<64x1xf32, #tpu.memory_space<vmem>>, vector<64x1xf32>
    %3 = vector.extract_strided_slice %1 {offsets = [0, 0], sizes = [64, 1], strides = [1, 1]} : vector<64x3xf32> to vector<64x1xf32>
    %4 = vector.extract_strided_slice %0 {offsets = [0, 0], sizes = [1, 512], strides = [1, 1]} : vector<3x512xf32> to vector<1x512xf32>
    %5 = vector.broadcast %3 : vector<64x1xf32> to vector<64x512xf32>
    %6 = vector.broadcast %4 : vector<1x512xf32> to vector<64x512xf32>
    %7 = arith.mulf %5, %6 : vector<64x512xf32>
    %8 = vector.broadcast %2 : vector<64x1xf32> to vector<64x512xf32>
    %9 = arith.addf %8, %7 : vector<64x512xf32>
    %10 = vector.extract_strided_slice %1 {offsets = [0, 1], sizes = [64, 1], strides = [1, 1]} : vector<64x3xf32> to vector<64x1xf32>
    %11 = vector.extract_strided_slice %0 {offsets = [1, 0], sizes = [1, 512], strides = [1, 1]} : vector<3x512xf32> to vector<1x512xf32>
    %12 = vector.broadcast %10 : vector<64x1xf32> to vector<64x512xf32>
    %13 = vector.broadcast %11 : vector<1x512xf32> to vector<64x512xf32>
    %14 = arith.mulf %12, %13 : vector<64x512xf32>
    %15 = arith.addf %9, %14 : vector<64x512xf32>
    %16 = vector.extract_strided_slice %1 {offsets = [0, 2], sizes = [64, 1], strides = [1, 1]} : vector<64x3xf32> to vector<64x1xf32>
    %17 = vector.extract_strided_slice %0 {offsets = [2, 0], sizes = [1, 512], strides = [1, 1]} : vector<3x512xf32> to vector<1x512xf32>
    %18 = vector.broadcast %16 : vector<64x1xf32> to vector<64x512xf32>
    %19 = vector.broadcast %17 : vector<1x512xf32> to vector<64x512xf32>
    %20 = arith.mulf %18, %19 : vector<64x512xf32>
    %21 = arith.addf %15, %20 : vector<64x512xf32>
    %cst = arith.constant 0.000000e+00 : f32
    %22 = vector.broadcast %cst : f32 to vector<64x512xf32>
    %23 = arith.maximumf %21, %22 : vector<64x512xf32>
    %c0_5 = arith.constant 0 : index
    %c0_6 = arith.constant 0 : index
    %24 = vector.load %arg4[%c0_5, %c0_6] : memref<128x64xf32, #tpu.memory_space<vmem>>, vector<128x64xf32>
    %cst_7 = arith.constant dense<0.000000e+00> : vector<128x512xf32>
    %25 = tpu.matmul %24, %23, %cst_7 {dimension_numbers = #tpu.dot_dimension_numbers<[1], [0], [0], [1], [0, 0, 1, 1], [], []>} : vector<128x64xf32>, vector<64x512xf32>, vector<128x512xf32> -> vector<128x512xf32>
    %c0_8 = arith.constant 0 : index
    %c0_9 = arith.constant 0 : index
    %26 = vector.load %arg5[%c0_8, %c0_9] : memref<128x1xf32, #tpu.memory_space<vmem>>, vector<128x1xf32>
    %27 = vector.broadcast %26 : vector<128x1xf32> to vector<128x512xf32>
    %28 = arith.addf %25, %27 : vector<128x512xf32>
    %cst_10 = arith.constant 0.000000e+00 : f32
    %29 = vector.broadcast %cst_10 : f32 to vector<128x512xf32>
    %30 = arith.maximumf %28, %29 : vector<128x512xf32>
    %c0_11 = arith.constant 0 : index
    %c0_12 = arith.constant 0 : index
    %31 = vector.load %arg6[%c0_11, %c0_12] : memref<256x128xf32, #tpu.memory_space<vmem>>, vector<256x128xf32>
    %cst_13 = arith.constant dense<0.000000e+00> : vector<256x512xf32>
    %32 = tpu.matmul %31, %30, %cst_13 {dimension_numbers = #tpu.dot_dimension_numbers<[1], [0], [0], [1], [0, 0, 1, 1], [], []>} : vector<256x128xf32>, vector<128x512xf32>, vector<256x512xf32> -> vector<256x512xf32>
    %c0_14 = arith.constant 0 : index
    %c0_15 = arith.constant 0 : index
    %33 = vector.load %arg7[%c0_14, %c0_15] : memref<256x1xf32, #tpu.memory_space<vmem>>, vector<256x1xf32>
    %34 = vector.broadcast %33 : vector<256x1xf32> to vector<256x512xf32>
    %35 = arith.addf %32, %34 : vector<256x512xf32>
    %cst_16 = arith.constant 0.000000e+00 : f32
    %36 = vector.broadcast %cst_16 : f32 to vector<256x512xf32>
    %37 = arith.maximumf %35, %36 : vector<256x512xf32>
    %c0_17 = arith.constant 0 : index
    %c0_18 = arith.constant 0 : index
    %38 = vector.load %arg8[%c0_17, %c0_18] : memref<128x256xf32, #tpu.memory_space<vmem>>, vector<128x256xf32>
    %cst_19 = arith.constant dense<0.000000e+00> : vector<128x512xf32>
    %39 = tpu.matmul %38, %37, %cst_19 {dimension_numbers = #tpu.dot_dimension_numbers<[1], [0], [0], [1], [0, 0, 1, 1], [], []>} : vector<128x256xf32>, vector<256x512xf32>, vector<128x512xf32> -> vector<128x512xf32>
    %c0_20 = arith.constant 0 : index
    %c0_21 = arith.constant 0 : index
    %40 = vector.load %arg9[%c0_20, %c0_21] : memref<128x1xf32, #tpu.memory_space<vmem>>, vector<128x1xf32>
    %41 = vector.broadcast %40 : vector<128x1xf32> to vector<128x512xf32>
    %42 = arith.addf %39, %41 : vector<128x512xf32>
    %cst_22 = arith.constant 0.000000e+00 : f32
    %43 = vector.broadcast %cst_22 : f32 to vector<128x512xf32>
    %44 = arith.maximumf %42, %43 : vector<128x512xf32>
    %c0_23 = arith.constant 0 : index
    %c0_24 = arith.constant 0 : index
    %45 = vector.load %arg10[%c0_23, %c0_24] : memref<64x128xf32, #tpu.memory_space<vmem>>, vector<64x128xf32>
    %cst_25 = arith.constant dense<0.000000e+00> : vector<64x512xf32>
    %46 = tpu.matmul %45, %44, %cst_25 {dimension_numbers = #tpu.dot_dimension_numbers<[1], [0], [0], [1], [0, 0, 1, 1], [], []>} : vector<64x128xf32>, vector<128x512xf32>, vector<64x512xf32> -> vector<64x512xf32>
    %c0_26 = arith.constant 0 : index
    %c0_27 = arith.constant 0 : index
    %47 = vector.load %arg11[%c0_26, %c0_27] : memref<64x1xf32, #tpu.memory_space<vmem>>, vector<64x1xf32>
    %48 = vector.broadcast %47 : vector<64x1xf32> to vector<64x512xf32>
    %49 = arith.addf %46, %48 : vector<64x512xf32>
    %cst_28 = arith.constant 0.000000e+00 : f32
    %50 = vector.broadcast %cst_28 : f32 to vector<64x512xf32>
    %51 = arith.maximumf %49, %50 : vector<64x512xf32>
    %c0_29 = arith.constant 0 : index
    %c0_30 = arith.constant 0 : index
    %52 = vector.load %arg12[%c0_29, %c0_30] : memref<3x64xf32, #tpu.memory_space<vmem>>, vector<3x64xf32>
    %cst_31 = arith.constant dense<0.000000e+00> : vector<3x512xf32>
    %53 = tpu.matmul %52, %51, %cst_31 {dimension_numbers = #tpu.dot_dimension_numbers<[1], [0], [0], [1], [0, 0, 1, 1], [], []>} : vector<3x64xf32>, vector<64x512xf32>, vector<3x512xf32> -> vector<3x512xf32>
    %c0_32 = arith.constant 0 : index
    %c0_33 = arith.constant 0 : index
    %54 = vector.load %arg13[%c0_32, %c0_33] : memref<3x1xf32, #tpu.memory_space<vmem>>, vector<3x1xf32>
    %55 = vector.broadcast %54 : vector<3x1xf32> to vector<3x512xf32>
    %56 = arith.addf %53, %55 : vector<3x512xf32>
    %c0_34 = arith.constant 0 : index
    %c0_35 = arith.constant 0 : index
    %57 = vector.load %arg14[%c0_34, %c0_35] : memref<3x512xf32, #tpu.memory_space<vmem>>, vector<3x512xf32>
    tpu.vector_store %arg14[%c0_34, %c0_35], %56 {strides = array<i32>} : memref<3x512xf32, #tpu.memory_space<vmem>>, vector<3x512xf32>,
    return
  }
  func.func @transform_0(%arg0: i32) -> (i32, i32) {
    %c0_i32 = arith.constant 0 : i32
    %c0_i32_0 = arith.constant 0 : i32
    return %c0_i32, %arg0 : i32, i32
  }
  func.func @transform_1(%arg0: i32) -> (i32, i32) {
    %c0_i32 = arith.constant 0 : i32
    %c0_i32_0 = arith.constant 0 : i32
    %c0_i32_1 = arith.constant 0 : i32
    return %c0_i32, %c0_i32_0 : i32, i32
  }
  func.func @transform_2(%arg0: i32) -> (i32, i32) {
    %c0_i32 = arith.constant 0 : i32
    %c0_i32_0 = arith.constant 0 : i32
    %c0_i32_1 = arith.constant 0 : i32
    return %c0_i32, %c0_i32_0 : i32, i32
  }
  func.func @transform_3(%arg0: i32) -> (i32, i32) {
    %c0_i32 = arith.constant 0 : i32
    %c0_i32_0 = arith.constant 0 : i32
    %c0_i32_1 = arith.constant 0 : i32
    return %c0_i32, %c0_i32_0 : i32, i32
  }
  func.func @transform_4(%arg0: i32) -> (i32, i32) {
    %c0_i32 = arith.constant 0 : i32
    %c0_i32_0 = arith.constant 0 : i32
    %c0_i32_1 = arith.constant 0 : i32
    return %c0_i32, %c0_i32_0 : i32, i32
  }
  func.func @transform_5(%arg0: i32) -> (i32, i32) {
    %c0_i32 = arith.constant 0 : i32
    %c0_i32_0 = arith.constant 0 : i32
    %c0_i32_1 = arith.constant 0 : i32
    return %c0_i32, %c0_i32_0 : i32, i32
  }
  func.func @transform_6(%arg0: i32) -> (i32, i32) {
    %c0_i32 = arith.constant 0 : i32
    %c0_i32_0 = arith.constant 0 : i32
    %c0_i32_1 = arith.constant 0 : i32
    return %c0_i32, %c0_i32_0 : i32, i32
  }
  func.func @transform_7(%arg0: i32) -> (i32, i32) {
    %c0_i32 = arith.constant 0 : i32
    %c0_i32_0 = arith.constant 0 : i32
    %c0_i32_1 = arith.constant 0 : i32
    return %c0_i32, %c0_i32_0 : i32, i32
  }
  func.func @transform_8(%arg0: i32) -> (i32, i32) {
    %c0_i32 = arith.constant 0 : i32
    %c0_i32_0 = arith.constant 0 : i32
    %c0_i32_1 = arith.constant 0 : i32
    return %c0_i32, %c0_i32_0 : i32, i32
  }
  func.func @transform_9(%arg0: i32) -> (i32, i32) {
    %c0_i32 = arith.constant 0 : i32
    %c0_i32_0 = arith.constant 0 : i32
    %c0_i32_1 = arith.constant 0 : i32
    return %c0_i32, %c0_i32_0 : i32, i32
  }
  func.func @transform_10(%arg0: i32) -> (i32, i32) {
    %c0_i32 = arith.constant 0 : i32
    %c0_i32_0 = arith.constant 0 : i32
    %c0_i32_1 = arith.constant 0 : i32
    return %c0_i32, %c0_i32_0 : i32, i32
  }
  func.func @transform_11(%arg0: i32) -> (i32, i32) {
    %c0_i32 = arith.constant 0 : i32
    %c0_i32_0 = arith.constant 0 : i32
    %c0_i32_1 = arith.constant 0 : i32
    return %c0_i32, %c0_i32_0 : i32, i32
  }
  func.func @transform_12(%arg0: i32) -> (i32, i32) {
    %c0_i32 = arith.constant 0 : i32
    %c0_i32_0 = arith.constant 0 : i32
    %c0_i32_1 = arith.constant 0 : i32
    return %c0_i32, %c0_i32_0 : i32, i32
  }
  func.func @transform_13(%arg0: i32) -> (i32, i32) {
    %c0_i32 = arith.constant 0 : i32
    %c0_i32_0 = arith.constant 0 : i32
    return %c0_i32, %arg0 : i32, i32
  }
}

</mosaic_0001>

<bundles_post_ra>
// kernel: tpu_custom_call.1
= control target key start
LH: loop header
LB: loop body
LE: loop exit
PB: predicated region body
PF: predicated region fallthrough
CT: control target
= control target key end

     0   :  { %s5035_s0 = inlined_call_operand.vmem [shape: f32[3,1024], index: 0, kind: input, shape index: {}]   ;;  %s5036_s1 = inlined_call_operand.vmem [shape: f32[64,3], index: 1, kind: input, shape index: {}]   ;;  %s5037_s2 = inlined_call_operand.vmem [shape: f32[64,1], index: 2, kind: input, shape index: {}]   ;;  %s5038_s3 = inlined_call_operand.vmem [shape: f32[128,64], index: 3, kind: input, shape index: {}]   ;;  %s5039_s4 = inlined_call_operand.vmem [shape: f32[128,1], index: 4, kind: input, shape index: {}]   ;;  %s5040_s5 = inlined_call_operand.vmem [shape: f32[256,128], index: 5, kind: input, shape index: {}]   ;;  %s5041_s6 = inlined_call_operand.vmem [shape: f32[256,1], index: 6, kind: input, shape index: {}]   ;;  %s5042_s7 = inlined_call_operand.vmem [shape: f32[128,256], index: 7, kind: input, shape index: {}]   ;;  %s5043_s8 = inlined_call_operand.vmem [shape: f32[128,1], index: 8, kind: input, shape index: {}]   ;;  %s5044_s9 = inlined_call_operand.vmem [shape: f32[64,128], index: 9, kind: input, shape index: {}]   ;;  %s5045_s10 = inlined_call_operand.vmem [shape: f32[64,1], index: 10, kind: input, shape index: {}]   ;;  %s5046_s11 = inlined_call_operand.vmem [shape: f32[3,64], index: 11, kind: input, shape index: {}]   ;;  %s5047_s12 = inlined_call_operand.vmem [shape: f32[3,1], index: 12, kind: input, shape index: {}]   ;;  %s5048_s13 = inlined_call_operand.hbm [shape: f32[3,1024], index: 13, kind: output, shape index: {}]  }
   0x1   :  { %5049 = sst [smem:[#allocation5_spill]] %s5035_s0 }
   0x2   :  { %5050 = sst [smem:[#allocation6_spill]] %s5036_s1 }
   0x3   :  { %5051 = sst [smem:[#allocation7_spill]] %s5037_s2 }
   0x4   :  { %18 = vsyncpa [#allocation3], 0 }
   0x5   :  { %20 = vsyncpa [#allocation3 + $0x1], 0  ;;  %s3984_s25 = smov 0   ;;  %s3986_s26 = smov 0  }
   0x6   :  { %s3988_s27 = smov 0   ;;  %s3990_s28 = smov 0  }
   0x7 LB: > { %s4005_s29 = sadd.s32 4294967295, %s3907_s28   ;;  %s3415_s30 = sadd.s32 4294967294, %s3907_s28   ;;  %s3907_s28 = sphi %s3990_s28, %s5060_s28   ;;  %s3903_s27 = sphi %s3988_s27, %s5059_s27   ;;  %s3899_s26 = sphi %s3986_s26, %s5058_s26   ;;  %s3895_s25 = sphi %s3984_s25, %s5057_s25  }
   0x8   : > { %s4009_s14 = sadd.s32 1, %s3907_s28   ;;  %s311_s15 = sadd.s32 1, %s3903_s27 }
   0x9   : > { %s308_s16 = ssub.s32 %s3907_s28, %s4009_s14  ;;  %p321_p0 = scmp.ne.s32.totalorder %s3903_s27, %s3899_s26 }
   0xa   : > { %p309_p1 = scmp.eq.s32.totalorder %s308_s16, 0  ;;  %p322_p2 = scmp.eq.s32.totalorder %s4005_s29, 1 }
   0xb   : > { %p327_p3 = scmp.ne.s32.totalorder %s3899_s26, %s3895_s25  ;;  %p328_p4 = scmp.eq.s32.totalorder %s3415_s30, 1 }
   0xc   : > { %s4020_s17 = scalar_select %p309_p1, %s3903_s27, %s311_s15  }
   0xd   : > { %p4022_p5 = por %p322_p2, %p321_p0  ;;  %p4026_p6 = por %p328_p4, %p327_p3 }
   0xe   : > { %p3418_p7 = scmp.ge.s32.totalorder %s3907_s28, 1  ;;  %p391_p8 = scmp.lt.s32.totalorder %s3907_s28, 3 }
  0x10   : > { %p392_p9 = pnand %p3418_p7, %p391_p8 }
  0x11   : > { %s5054_s2 = sld [smem:[#allocation7_spill]] (!%p392_p9)  ;;  %s5055_s1 = sld [smem:[#allocation6_spill]] (!%p392_p9)  ;;  %v3909_v2 = vmov (!%p392_p9), 0   ;;  %v3910_v6 = vmov (!%p392_p9), 1   ;;  %v3911_v11 = vmov (!%p392_p9), 2   ;;  %v956_v18 = vld [vmem:[%s5039_s4 + $0x10] sm:$0xff] (!%p392_p9)  ;;  %v502_v51 = vlaneseq (!%p392_p9) }
  0x12   : > { %395 = sbr.rel (%p392_p9) target bundleno = 1645 (0x66d), region = 72  ;;  %3826 = vset.pattern.permute.xlu1 (!%p392_p9), %v3909_v2  ;;  %3825 = vset.pattern.permute.xlu0 (!%p392_p9), %v3909_v2  ;;  %v959_v19 = vld [vmem:[%s5039_s4 + $0x28] sm:$0xff] (!%p392_p9)  ;;  %v961_v20 = vld [vmem:[%s5039_s4 + $0x38] sm:$0xff] (!%p392_p9)  ;;  %v954_v27 = vld [vmem:[%s5039_s4] sm:$0xff] (!%p392_p9)  ;;  %v3912_v32 = vmov (!%p392_p9), 0.0   ;;  %s5056_s0 = sld [smem:[#allocation5_spill]] (!%p392_p9) }
  0x13   : > { %v963_v21 = vld [vmem:[%s5039_s4 + $0x48] sm:$0xff] (!%p392_p9)  ;;  %v965_v23 = vld [vmem:[%s5039_s4 + $0x58] sm:$0xff] (!%p392_p9)  ;;  %1163 = vmatprep.mubr.f32.mxu0 (!%p392_p9), %v3912_v32  ;;  %1324 = vmatprep.mubr.f32.mxu1 (!%p392_p9), %v3912_v32  ;;  %v958_v34 = vld [vmem:[%s5039_s4 + $0x20] sm:$0xff] (!%p392_p9)  ;;  %v503_v56 = vshrl.u32 (!%p392_p9), %v502_v51, 7  ;;  %vm1050_vm0 = vcmask (!%p392_p9), 523264  }
  0x14   : > { %v967_v24 = vld [vmem:[%s5039_s4 + $0x68] sm:$0xff] (!%p392_p9)  ;;  %v969_v25 = vld [vmem:[%s5039_s4 + $0x78] sm:$0xff] (!%p392_p9)  ;;  %v960_v36 = vld [vmem:[%s5039_s4 + $0x30] sm:$0xff] (!%p392_p9) }
  0x15   : > { %v1518_v26 = vld [vmem:[%s5041_s6 + $0x8] sm:$0xff] (!%p392_p9)  ;;  %v1520_v28 = vld [vmem:[%s5041_s6 + $0x18] sm:$0xff] (!%p392_p9)  ;;  %v962_v38 = vld [vmem:[%s5039_s4 + $0x40] sm:$0xff] (!%p392_p9)  ;;  %v504_v61 = vsub.s32 (!%p392_p9), 0, %v503_v56  ;;  %v508_v62 = vsub.s32 (!%p392_p9), 4, %v503_v56 }
  0x16   : > { %v955_v29 = vld [vmem:[%s5039_s4 + $0x8] sm:$0xff] (!%p392_p9)  ;;  %v957_v31 = vld [vmem:[%s5039_s4 + $0x18] sm:$0xff] (!%p392_p9)  ;;  %v964_v40 = vld [vmem:[%s5039_s4 + $0x50] sm:$0xff] (!%p392_p9) }
  0x17   : > { %v452_v0 = vld [vmem:[%s5054_s2] sm:$0xff] (!%p392_p9)  ;;  %v453_v3 = vld [vmem:[%s5054_s2 + $0x8] sm:$0xff] (!%p392_p9)  ;;  %v447_v5 = vld [vmem:[%s5055_s1 + $0x18] sm:$0xff] (!%p392_p9) }
  0x18   : > { %v444_v1 = vld [vmem:[%s5055_s1] sm:$0xff] (!%p392_p9)  ;;  %572 = vperm.xlu1 (!%p392_p9), %3826, %v452_v0   ;;  %v445_v4 = vld [vmem:[%s5055_s1 + $0x8] sm:$0xff] (!%p392_p9)  ;;  %v454_v7 = vld [vmem:[%s5054_s2 + $0x10] sm:$0xff] (!%p392_p9) }
  0x19   : > { %462 = vperm.xlu0 %3825, %v444_v1   ;;  %v446_v8 = vld [vmem:[%s5055_s1 + $0x10] sm:$0xff]  ;;  %v449_v9 = vld [vmem:[%s5055_s1 + $0x28] sm:$0xff]  ;;  %v456_v10 = vld [vmem:[%s5054_s2 + $0x20] sm:$0xff] }
  0x1a   : > { %v451_v12 = vld [vmem:[%s5055_s1 + $0x38] sm:$0xff]  ;;  %v458_v14 = vld [vmem:[%s5054_s2 + $0x30] sm:$0xff]  ;;  %v448_v15 = vld [vmem:[%s5055_s1 + $0x20] sm:$0xff] }
  0x1b   : > { %v455_v13 = vld [vmem:[%s5054_s2 + $0x18] sm:$0xff]  ;;  %v450_v16 = vld [vmem:[%s5055_s1 + $0x30] sm:$0xff]  ;;  %v457_v17 = vld [vmem:[%s5054_s2 + $0x28] sm:$0xff]  ;;  %s3420_s1 = sshll.u32 %s4005_s29, 2 }
  0x1c   : > { %577 = vperm.xlu1 %3826, %v453_v3   ;;  %v459_v22 = vld [vmem:[%s5054_s2 + $0x38] sm:$0xff]  ;;  %v1522_v30 = vld [vmem:[%s5041_s6 + $0x28] sm:$0xff]  ;;  %v966_v42 = vld [vmem:[%s5039_s4 + $0x60] sm:$0xff]  ;;  %p436_p10 = scmp.lt.s32.totalorder %s3420_s1, 7  ;;  %s3461_s2 = sshll.u32 %s4005_s29, 8 }
  0x1d   : > { %467 = vperm.xlu0 %3825, %v445_v4   ;;  %v1524_v33 = vld [vmem:[%s5041_s6 + $0x38] sm:$0xff]  ;;  %v1526_v35 = vld [vmem:[%s5041_s6 + $0x48] sm:$0xff]  ;;  %v968_v44 = vld [vmem:[%s5039_s4 + $0x70] sm:$0xff]  ;;  %s4993_s22 = scalar_lea.hbm %s5048_s13, %s3461_s2 }
  0x1e   : > { %v1528_v37 = vld [vmem:[%s5041_s6 + $0x58] sm:$0xff]  ;;  %v1530_v39 = vld [vmem:[%s5041_s6 + $0x68] sm:$0xff]  ;;  %v1517_v46 = vld [vmem:[%s5041_s6] sm:$0xff]  ;;  %s5062_s1 = smov (!%p436_p10, %s3420_s1), 7 }
  0x1f   : > { %v1532_v41 = vld [vmem:[%s5041_s6 + $0x78] sm:$0xff]  ;;  %v1534_v43 = vld [vmem:[%s5041_s6 + $0x88] sm:$0xff]  ;;  %v1519_v50 = vld [vmem:[%s5041_s6 + $0x10] sm:$0xff]  ;;  %s3421_s15 = sshll.u32 %s5062_s1, 2  ;;  %s432_s1 = sand.u32 1, %s3899_s26  }
  0x20   : > { %3827 = vset.pattern.permute.xlu1 %v3910_v6  ;;  %v1536_v45 = vld [vmem:[%s5041_s6 + $0x98] sm:$0xff]  ;;  %v1538_v47 = vld [vmem:[%s5041_s6 + $0xa8] sm:$0xff]  ;;  %v1521_v55 = vld [vmem:[%s5041_s6 + $0x20] sm:$0xff]  ;;  %s439_s24 = scalar_lea.vmem %s5056_s0, %s3421_s15  ;;  %s3419_s30 = sshll.u32 %s432_s1, 4 }
  0x21   : > { %477 = vperm.xlu0 %3825, %v447_v5   ;;  %647 = vperm.xlu1 %3827, %v445_v4   ;;  %v1540_v52 = vld [vmem:[%s5041_s6 + $0xb8] sm:$0xff]  ;;  %v1542_v57 = vld [vmem:[%s5041_s6 + $0xc8] sm:$0xff]  ;;  %v1523_v60 = vld [vmem:[%s5041_s6 + $0x30] sm:$0xff]  ;;  %s434_s16 = scalar_lea.vmem [#allocation2], %s3419_s30  ;;  %s3342_s23 = scalar_lea.sflag [#allocation3], %s432_s1 }
  0x22   : > { %v442_v63 = vld [vmem:[%s439_s24] sm:$0x77]  ;;  %v443_v0 = vld [vmem:[%s439_s24 + $0x8] sm:$0x77]  ;;  %s3356_s15 = sshll.u32 %s434_s16, 4  ;;  %s3913_s24 = smov [#allocation2]   ;;  %s4995_s15 = int_to_ptr.vmem [resolvable:$true] %s3356_s15 }
  0x23   : > { %v1525_v3 = vld [vmem:[%s5041_s6 + $0x40] sm:$0xff]  ;;  %s3845_s29 = scalar_lea.vmem %s4995_s15, 256  ;;  %s3849_s30 = sshll.u32 %s3913_s24, 4  ;;  %s3850_s30 = int_to_ptr.vmem [resolvable:$false] %s3849_s30 }
  0x24   : > { %p3846_p11 = scmp.ne.s32.totalorder %s4995_s15, %s3845_s29  ;;  %s3851_s0 = scalar_lea.vmem %s3850_s30, 512 }
  0x25   : > { %582 = vperm.xlu0 %3825, %v454_v7   ;;  %3828 = vset.pattern.permute.xlu1 %v3909_v2  ;;  %p3852_p0 = scmp.lt.s32.totalorder %s4995_s15, %s3850_s30  ;;  %p3853_p1 = scmp.lt.s32.totalorder %s3851_s0, %s3845_s29 }
  0x26   : > { %472 = vperm.xlu1 %3828, %v446_v8   ;;  %p3847_p12 = pnand %p3846_p11, %p4022_p5 }
  0x27   : > { %p3854_p2 = por %p3853_p1, %p3852_p0 }
  0x28   : > { %p3848_p13 = pneg %p3847_p12 }
  0x29   : > { %487 = vperm.xlu0 %3825, %v449_v9  }
  0x2a   : > { %3829 = vset.pattern.permute.xlu1 %v3911_v11  ;;  %p3855_p3 = pnand %p3854_p2, %p3848_p13 }
  0x2b   : > { %775 = vperm.xlu1 %3829, %v444_v1  }
  0x2d   : > { %592 = vperm.xlu0 %3825, %v456_v10   ;;  %v1546_v10 = vld [vmem:[%s5041_s6 + $0xe8] sm:$0xff] }
  0x2f   : > { %779 = vperm.xlu1 %3829, %v445_v4   ;;  %v505_v4 = vrot.slane %v442_v63, %v504_v61 }
  0x31   : > { %497 = vperm.xlu0 %3825, %v451_v12  }
  0x33   : > { %3830 = vset.pattern.permute.xlu1 %v3909_v2 }
  0x34   : > { %587 = vperm.xlu1 %3830, %v455_v13   ;;  %v808_v13 = vsub.s32 2, %v503_v56 }
  0x35   : > { %602 = vperm.xlu0 %3825, %v458_v14   ;;  %v812_v14 = vsub.s32 6, %v503_v56 }
  0x38   : > { %3831 = vset.pattern.permute.xlu1 %v3910_v6 }
  0x39   : > { %3838 = vset.pattern.permute.xlu0 %v3910_v6  ;;  %655 = vperm.xlu1 %3831, %v447_v5  }
  0x3a   : > { %643 = vperm.xlu0 %3838, %v444_v1   ;;  %v1544_v1 = vld [vmem:[%s5041_s6 + $0xd8] sm:$0xff] }
  0x3d   : > { %3832 = vset.pattern.permute.xlu1 %v3909_v2 }
  0x3e   : > { %651 = vperm.xlu0 %3838, %v446_v8   ;;  %482 = vperm.xlu1 %3832, %v448_v15  }
  0x42   : > { %659 = vperm.xlu0 %3838, %v448_v15   ;;  %3833 = vset.pattern.permute.xlu1 %v3911_v11 }
  0x43   : > { %783 = vperm.xlu1 %3833, %v446_v8   ;;  %v517_v8 = vrot.slane %v443_v0, %v508_v62 }
  0x46   : > { %667 = vperm.xlu0 %3838, %v450_v16  }
  0x47   : > { %787 = vperm.xlu1 %3833, %v447_v5   ;;  %v509_v5 = vrot.slane %v442_v63, %v508_v62 }
  0x4a   : > { %3842 = vset.pattern.permute.xlu0 %v3911_v11 }
  0x4b   : > { %803 = vperm.xlu0 %3842, %v451_v12   ;;  %3834 = vset.pattern.permute.xlu1 %v3909_v2 }
  0x4c   : > { %597 = vperm.xlu1 %3834, %v457_v17   ;;  %v4232_v17 = vrot.slane %v509_v5, %v504_v61 }
  0x4f   : > { %3844 = vset.pattern.permute.xlu0 %v3909_v2 }
  0x50   : > { %3835 = vset.pattern.permute.xlu1 %v3910_v6  ;;  %982 = vperm.xlu0 %3844, %v956_v18  }
  0x51   : > { %663 = vperm.xlu1 %3835, %v449_v9  }
  0x54   : > { %997 = vperm.xlu0 %3844, %v959_v19   ;;  %v4236_v19 = vrot.slane %v517_v8, %v504_v61 }
  0x55   : > { %3836 = vset.pattern.permute.xlu1 %v3909_v2 }
  0x56   : > { %492 = vperm.xlu1 %3836, %v450_v16  }
  0x58   : > { %1007 = vperm.xlu0 %3844, %v961_v20  }
  0x5a   : > { %3837 = vset.pattern.permute.xlu1 %v3911_v11 }
  0x5b   : > { %791 = vperm.xlu1 %3837, %v448_v15   ;;  %v1527_v15 = vld [vmem:[%s5041_s6 + $0x50] sm:$0xff] }
  0x5c   : > { %1017 = vperm.xlu0 %3844, %v963_v21  }
  0x5f   : > { %795 = vperm.xlu1 %3837, %v449_v9   ;;  %v680_v9 = vsub.s32 5, %v503_v56 }
  0x60   : > { %1027 = vperm.xlu0 %3844, %v965_v23   ;;  %v1548_v23 = vld [vmem:[%s5041_s6 + $0xf8] sm:$0xff] }
  0x61   : > { %v681_v21 = vrot.slane %v442_v63, %v680_v9 }
  0x63   : > { %3839 = vset.pattern.permute.xlu1 %v3909_v2 }
  0x64   : > { %607 = vperm.xlu1 %3839, %v459_v22   ;;  %1037 = vperm.xlu0 %3844, %v967_v24   ;;  %v689_v22 = vrot.slane %v443_v0, %v680_v9 }
  0x68   : > { %3840 = vset.pattern.permute.xlu1 %v3910_v6  ;;  %1047 = vperm.xlu0 %3844, %v969_v25   ;;  %v513_v6 = vrot.slane %v443_v0, %v504_v61 }
  0x69   : > { %671 = vperm.xlu1 %3840, %v451_v12   ;;  %v676_v12 = vsub.s32 1, %v503_v56 }
  0x6a   : > { %v4234_v18 = vrot.slane %v513_v6, %v504_v61 }
  0x6b   : > { %v677_v25 = vrot.slane %v442_v63, %v676_v12 }
  0x6c   : > { %1556 = vperm.xlu0 %3844, %v1518_v26   ;;  %v685_v26 = vrot.slane %v443_v0, %v676_v12 }
  0x6d   : > { %3841 = vset.pattern.permute.xlu1 %v3911_v11 }
  0x6e   : > { %799 = vperm.xlu1 %3841, %v450_v16   ;;  %v4230_v16 = vrot.slane %v505_v4, %v504_v61 }
  0x70   : > { %1566 = vperm.xlu0 %3844, %v1520_v28   ;;  %v813_v28 = vrot.slane %v442_v63, %v812_v14 }
  0x72   : > { %3843 = vset.pattern.permute.xlu1 %v3909_v2 }
  0x73   : > { %972 = vperm.xlu1 %3843, %v954_v27   ;;  %v809_v27 = vrot.slane %v442_v63, %v808_v13 }
  0x74   : > { %1576 = vperm.xlu0 %3844, %v1522_v30   ;;  %v1529_v30 = vld [vmem:[%s5041_s6 + $0x60] sm:$0xff] }
  0x77   : > { %977 = vperm.xlu1 %3843, %v955_v29   ;;  %v817_v29 = vrot.slane %v443_v0, %v808_v13 }
  0x78   : > { %1586 = vperm.xlu0 %3844, %v1524_v33  }
  0x79   : > { %v4281_v51 = vrot.slane %v817_v29, %v808_v13 }
  0x7b   : > { %987 = vperm.xlu1 %3843, %v957_v31  }
  0x7c   : > { %1596 = vperm.xlu0 %3844, %v1526_v35   ;;  %v821_v35 = vrot.slane %v443_v0, %v812_v14  ;;  %v2386_v0 = vld [vmem:[%s5043_s8 + $0x18] sm:$0xff] }
  0x7f   : > { %992 = vperm.xlu1 %3843, %v958_v34  }
  0x80   : > { %1606 = vperm.xlu0 %3844, %v1528_v37  }
  0x83   : > { %1002 = vperm.xlu1 %3843, %v960_v36  }
  0x84   : > { %1616 = vperm.xlu0 %3844, %v1530_v39   ;;  %v4258_v39 = vrot.slane %v681_v21, %v676_v12 }
  0x87   : > { %1012 = vperm.xlu1 %3843, %v962_v38  }
  0x88   : > { %1626 = vperm.xlu0 %3844, %v1532_v41   ;;  %v2384_v41 = vld [vmem:[%s5043_s8 + $0x8] sm:$0xff] }
  0x8b   : > { %1022 = vperm.xlu1 %3843, %v964_v40   ;;  %v4260_v40 = vrot.slane %v689_v22, %v676_v12 }
  0x8c   : > { %1636 = vperm.xlu0 %3844, %v1534_v43  }
  0x8f   : > { %1032 = vperm.xlu1 %3843, %v966_v42  }
  0x90   : > { %1646 = vperm.xlu0 %3844, %v1536_v45   ;;  %v4271_v45 = vrot.slane %v677_v25, %v676_v12 }
  0x93   : > { %1042 = vperm.xlu1 %3843, %v968_v44  }
  0x94   : > { %1656 = vperm.xlu0 %3844, %v1538_v47  }
  0x97   : > { %v4182_v48 = vpop.permute.xlu1 %572  ;;  %1551 = vperm.xlu1 %3843, %v1517_v46   ;;  %v4273_v46 = vrot.slane %v685_v26, %v676_v12  ;;  %v2388_v26 = vld [vmem:[%s5043_s8 + $0x28] sm:$0xff] }
  0x98   : > { %v4184_v49 = vpop.permute.xlu0 %462  ;;  %1666 = vperm.xlu0 %3844, %v1540_v52   ;;  %v1531_v52 = vld [vmem:[%s5041_s6 + $0x70] sm:$0xff] }
  0x99   : > { %v538_v31 = vmul.f32 %v4230_v16, %v4184_v49  ;;  %v539_v33 = vmul.f32 %v4232_v17, %v4184_v49  ;;  %v540_v34 = vmul.f32 %v4234_v18, %v4184_v49  ;;  %v541_v36 = vmul.f32 %v4236_v19, %v4184_v49 }
  0x9a   : > { %v4277_v49 = vrot.slane %v809_v27, %v808_v13 }
  0x9b   : > { %v4192_v53 = vpop.permute.xlu1 %577  ;;  %1561 = vperm.xlu1 %3843, %v1519_v50   ;;  %v4279_v50 = vrot.slane %v813_v28, %v808_v13  ;;  %v4290_v56 = vadd.f32 %v4182_v48, %v540_v34  ;;  %v4301_v62 = vadd.f32 %v4182_v48, %v541_v36  ;;  %v1535_v36 = vld [vmem:[%s5041_s6 + $0x90] sm:$0xff] }
  0x9c   : > { %v4194_v54 = vpop.permute.xlu0 %467  ;;  %1676 = vperm.xlu0 %3844, %v1542_v57   ;;  %v4292_v57 = vrot.slane %v821_v35, %v808_v13  ;;  %v1533_v13 = vld [vmem:[%s5041_s6 + $0x80] sm:$0xff] }
  0x9d   : > { %v542_v37 = vmul.f32 %v4230_v16, %v4194_v54  ;;  %v543_v42 = vmul.f32 %v4232_v17, %v4194_v54  ;;  %v544_v43 = vmul.f32 %v4234_v18, %v4194_v54  ;;  %v545_v47 = vmul.f32 %v4236_v19, %v4194_v54 }
  0x9e   : > { %v4295_v54 = vadd.f32 %v4182_v48, %v539_v33 }
  0x9f   : > { %1571 = vperm.xlu1 %3843, %v1521_v55   ;;  %v4287_v55 = vadd.f32 %v4182_v48, %v538_v31  ;;  %v615_v5 = vadd.f32 %v4192_v53, %v543_v42  ;;  %v617_v12 = vadd.f32 %v4192_v53, %v545_v47 }
  0xa0   : > { %v4205_v58 = vpop.permute.xlu0 %477  ;;  %v4207_v59 = vpop.permute.xlu1 %647  ;;  %1686 = vperm.xlu0 %3844, %v1544_v1   ;;  %v616_v1 = vadd.f32 %v4192_v53, %v544_v43 }
  0xa1   : > { %v715_v61 = vmul.f32 %v4258_v39, %v4207_v59  ;;  %v717_v63 = vmul.f32 %v4260_v40, %v4207_v59  ;;  %v714_v6 = vmul.f32 %v4271_v45, %v4207_v59  ;;  %v716_v48 = vmul.f32 %v4273_v46, %v4207_v59 }
  0xa2   : > { %v550_v14 = vmul.f32 %v4230_v16, %v4205_v58  ;;  %v551_v59 = vmul.f32 %v4232_v17, %v4205_v58  ;;  %v553_v22 = vmul.f32 %v4236_v19, %v4205_v58 }
  0xa3   : > { %1581 = vperm.xlu1 %3843, %v1523_v60   ;;  %v614_v60 = vadd.f32 %v4192_v53, %v542_v37  ;;  %v552_v53 = vmul.f32 %v4234_v18, %v4205_v58  ;;  %v749_v25 = vadd.f32 %v717_v63, %v617_v12 }
  0xa4   : > { %v4215_v2 = vpop.permute.xlu0 %582  ;;  %1696 = vperm.xlu0 %3844, %v1546_v10  }
  0xa5   : > { %v4220_v7 = vpop.permute.xlu1 %472  ;;  %v746_v28 = vadd.f32 %v714_v6, %v614_v60 }
  0xa6   : > { %v546_v8 = vmul.f32 %v4230_v16, %v4220_v7  ;;  %v547_v9 = vmul.f32 %v4232_v17, %v4220_v7  ;;  %v549_v21 = vmul.f32 %v4236_v19, %v4220_v7 }
  0xa7   : > { %1591 = vperm.xlu1 %3843, %v1525_v3  }
  0xa8   : > { %v4225_v11 = vpop.permute.xlu0 %487  ;;  %1706 = vperm.xlu0 %3844, %v1548_v23   ;;  %v747_v23 = vadd.f32 %v715_v61, %v615_v5  ;;  %v618_v33 = vadd.f32 %v4215_v2, %v546_v8  ;;  %v619_v34 = vadd.f32 %v4215_v2, %v547_v9  ;;  %v2390_v61 = vld [vmem:[%s5043_s8 + $0x38] sm:$0xff] }
  0xaa   : > { %v4238_v20 = vpop.permute.xlu1 %775 }
  0xab   : > { %1601 = vperm.xlu1 %3843, %v1527_v15   ;;  %v548_v15 = vmul.f32 %v4234_v18, %v4220_v7  ;;  %v843_v42 = vmul.f32 %v4279_v50, %v4238_v20  ;;  %v845_v43 = vmul.f32 %v4292_v57, %v4238_v20  ;;  %v842_v63 = vmul.f32 %v4277_v49, %v4238_v20 }
  0xac   : > { %v4243_v24 = vpop.permute.xlu0 %592  ;;  %2406 = vperm.xlu0 %3844, %v2384_v41   ;;  %v621_v41 = vadd.f32 %v4215_v2, %v549_v21 }
  0xad   : > { %v620_v37 = vadd.f32 %v4215_v2, %v548_v15 }
  0xae   : > { %v780_v38 = vpop.permute.xlu1 %779 }
  0xaf   : > { %1611 = vperm.xlu1 %3843, %v1529_v30   ;;  %v847_v10 = vmul.f32 %v4279_v50, %v780_v38  ;;  %v849_v27 = vmul.f32 %v4292_v57, %v780_v38  ;;  %v846_v29 = vmul.f32 %v4277_v49, %v780_v38  ;;  %v748_v30 = vadd.f32 %v716_v48, %v616_v1 }
  0xb0   : > { %v4269_v44 = vpop.permute.xlu0 %497  ;;  %2416 = vperm.xlu0 %3844, %v2386_v0   ;;  %v848_v35 = vmul.f32 %v4281_v51, %v780_v38  ;;  %v844_v1 = vmul.f32 %v4281_v51, %v4238_v20 }
  0xb1   : > { %v4346_v58 = vadd.f32 %v847_v10, %v747_v23  ;;  %v4365_v2 = vadd.f32 %v849_v27, %v749_v25  ;;  %v4369_v0 = vadd.f32 %v846_v29, %v746_v28  ;;  %v1537_v10 = vld [vmem:[%s5041_s6 + $0xa0] sm:$0xff] }
  0xb2   : > { %v880_v9 = vadd.f32 %v848_v35, %v748_v30  ;;  %v1539_v30 = vld [vmem:[%s5041_s6 + $0xb0] sm:$0xff] }
  0xb3   : > { %v4309_v3 = vpop.permute.xlu1 %587  ;;  %1621 = vperm.xlu1 %3843, %v1531_v52   ;;  %v911_v8 = vmax.f32 %v4346_v58, 0.0 }
  0xb4   : > { %v4311_v4 = vpop.permute.xlu0 %602  ;;  %2426 = vperm.xlu0 %3844, %v2388_v26   ;;  %v622_v5 = vadd.f32 %v4309_v3, %v550_v14  ;;  %v623_v6 = vadd.f32 %v4309_v3, %v551_v59  ;;  %v625_v12 = vadd.f32 %v4309_v3, %v553_v22  ;;  %v2392_v22 = vld [vmem:[%s5043_s8 + $0x48] sm:$0xff] }
  0xb7   : > { %1631 = vperm.xlu1 %3843, %v1533_v13  }
  0xb8   : > { %v656_v7 = vpop.permute.xlu1 %655  ;;  %2436 = vperm.xlu0 %3844, %v2390_v61  }
  0xb9   : > { %v644_v31 = vpop.permute.xlu0 %643  ;;  %v722_v13 = vmul.f32 %v4271_v45, %v656_v7  ;;  %v723_v15 = vmul.f32 %v4258_v39, %v656_v7  ;;  %v725_v20 = vmul.f32 %v4260_v40, %v656_v7 }
  0xba   : > { %v710_v47 = vmul.f32 %v4271_v45, %v644_v31  ;;  %v711_v52 = vmul.f32 %v4258_v39, %v644_v31  ;;  %v712_v38 = vmul.f32 %v4273_v46, %v644_v31  ;;  %v713_v60 = vmul.f32 %v4260_v40, %v644_v31 }
  0xbb   : > { %1641 = vperm.xlu1 %3843, %v1535_v36   ;;  %v724_v31 = vmul.f32 %v4273_v46, %v656_v7  ;;  %v755_v58 = vadd.f32 %v723_v15, %v623_v6  ;;  %v757_v35 = vadd.f32 %v725_v20, %v625_v12  ;;  %v754_v36 = vadd.f32 %v722_v13, %v622_v5 }
  0xbc   : > { %v743_v14 = vadd.f32 %v711_v52, %v4295_v54  ;;  %v745_v59 = vadd.f32 %v713_v60, %v4301_v62  ;;  %v742_v23 = vadd.f32 %v710_v47, %v4287_v55  ;;  %v744_v25 = vadd.f32 %v712_v38, %v4290_v56  ;;  %2446 = vperm.xlu0 %3844, %v2392_v22  }
  0xbd   : > { %v652_v48 = vpop.permute.xlu0 %651  ;;  %v4383_v21 = vpop.permute.xlu1 %482  ;;  %v624_v54 = vadd.f32 %v4309_v3, %v552_v53  ;;  %v913_v62 = vmax.f32 %v4365_v2, 0.0  ;;  %v910_v55 = vmax.f32 %v4369_v0, 0.0  ;;  %v912_v56 = vmax.f32 %v880_v9, 0.0  ;;  %v2394_v53 = vld [vmem:[%s5043_s8 + $0x58] sm:$0xff] }
  0xbe   : > { %v718_v26 = vmul.f32 %v4271_v45, %v652_v48  ;;  %v719_v27 = vmul.f32 %v4258_v39, %v652_v48  ;;  %v720_v28 = vmul.f32 %v4273_v46, %v652_v48  ;;  %v721_v29 = vmul.f32 %v4260_v40, %v652_v48 }
  0xbf   : > { %1651 = vperm.xlu1 %3843, %v1537_v10   ;;  %v875_v52 = vadd.f32 %v843_v42, %v743_v14  ;;  %v877_v38 = vadd.f32 %v845_v43, %v745_v59  ;;  %v874_v60 = vadd.f32 %v842_v63, %v742_v23  ;;  %v876_v3 = vadd.f32 %v844_v1, %v744_v25  ;;  %v1541_v43 = vld [vmem:[%s5041_s6 + $0xc0] sm:$0xff] }
  0xc0   : > { %v750_v61 = vadd.f32 %v718_v26, %v618_v33  ;;  %v751_v2 = vadd.f32 %v719_v27, %v619_v34  ;;  %v752_v0 = vadd.f32 %v720_v28, %v620_v37  ;;  %v753_v48 = vadd.f32 %v721_v29, %v621_v41  ;;  %2456 = vperm.xlu0 %3844, %v2394_v53   ;;  %v1543_v26 = vld [vmem:[%s5041_s6 + $0xd0] sm:$0xff] }
  0xc1   : > { %v907_v63 = vmax.f32 %v875_v52, 0.0  ;;  %v909_v1 = vmax.f32 %v877_v38, 0.0  ;;  %v906_v9 = vmax.f32 %v874_v60, 0.0  ;;  %v908_v33 = vmax.f32 %v876_v3, 0.0 }
  0xc2   : > { %v784_v47 = vpop.permute.xlu1 %783  ;;  %v756_v27 = vadd.f32 %v724_v31, %v624_v54  ;;  %v1545_v54 = vld [vmem:[%s5041_s6 + $0xe0] sm:$0xff] }
  0xc3   : > { %1661 = vperm.xlu1 %3843, %v1539_v30   ;;  %v850_v7 = vmul.f32 %v4277_v49, %v784_v47  ;;  %v851_v6 = vmul.f32 %v4279_v50, %v784_v47  ;;  %v852_v5 = vmul.f32 %v4281_v51, %v784_v47  ;;  %v853_v42 = vmul.f32 %v4292_v57, %v784_v47 }
  0xc4   : > { %v3462_v13 = vpack.c.bf16 %v911_v8, %v907_v63  ;;  %v3478_v15 = vpack.c.bf16 %v913_v62, %v909_v1  ;;  %v3464_v20 = vpack.c.bf16 %v910_v55, %v906_v9  ;;  %v3480_v14 = vpack.c.bf16 %v912_v56, %v908_v33  ;;  %v2396_v8 = vld [vmem:[%s5043_s8 + $0x68] sm:$0xff] }
  0xc5   : > { %v883_v37 = vadd.f32 %v851_v6, %v751_v2  ;;  %v885_v41 = vadd.f32 %v853_v42, %v753_v48  ;;  %v882_v10 = vadd.f32 %v850_v7, %v750_v61  ;;  %v884_v12 = vadd.f32 %v852_v5, %v752_v0  ;;  %2466 = vperm.xlu0 %3844, %v2396_v8   ;;  %v1547_v6 = vld [vmem:[%s5041_s6 + $0xf0] sm:$0xff]  ;;  %v660_v5 = vpop.permute.xlu0 %659  ;;  %v2874_v42 = vld [vmem:[%s5045_s10 + $0x8] sm:$0xff] }
  0xc6   : > { %v788_v34 = vpop.permute.xlu1 %787  ;;  %3463 = vmatprep.subr.bf16.mxu0 %v3462_v13  ;;  %3479 = vmatprep.subr.bf16.mxu1 %v3478_v15  ;;  %v554_v0 = vmul.f32 %v4230_v16, %v4383_v21  ;;  %v555_v48 = vmul.f32 %v4232_v17, %v4383_v21  ;;  %v557_v63 = vmul.f32 %v4236_v19, %v4383_v21 }
  0xc7   : > { %1671 = vperm.xlu1 %3843, %v1541_v43   ;;  %v854_v59 = vmul.f32 %v4277_v49, %v788_v34  ;;  %v855_v23 = vmul.f32 %v4279_v50, %v788_v34  ;;  %v856_v25 = vmul.f32 %v4281_v51, %v788_v34  ;;  %v857_v22 = vmul.f32 %v4292_v57, %v788_v34 }
  0xc8   : > { %3465 = vmatpush1.bf16.msra.mxu0 %v3464_v20  ;;  %3481 = vmatpush1.bf16.msra.mxu1 %v3480_v14  ;;  %v915_v30 = vmax.f32 %v883_v37, 0.0  ;;  %v917_v47 = vmax.f32 %v885_v41, 0.0  ;;  %v914_v52 = vmax.f32 %v882_v10, 0.0  ;;  %v916_v38 = vmax.f32 %v884_v12, 0.0  ;;  %v2383_v37 = vld [vmem:[%s5043_s8] sm:$0xff]  ;;  %v2876_v12 = vld [vmem:[%s5045_s10 + $0x18] sm:$0xff] }
  0xc9   : > { %v887_v28 = vadd.f32 %v855_v23, %v755_v58  ;;  %v889_v29 = vadd.f32 %v857_v22, %v757_v35  ;;  %v886_v62 = vadd.f32 %v854_v59, %v754_v36  ;;  %v888_v56 = vadd.f32 %v856_v25, %v756_v27  ;;  %v2398_v58 = vld [vmem:[%s5043_s8 + $0x78] sm:$0xff] }
  0xca   : > { %2476 = vperm.xlu0 %3844, %v2398_v58   ;;  %v556_v43 = vmul.f32 %v4234_v18, %v4383_v21  ;;  %v626_v1 = vadd.f32 %v4243_v24, %v554_v0  ;;  %v627_v9 = vadd.f32 %v4243_v24, %v555_v48  ;;  %v726_v33 = vmul.f32 %v4271_v45, %v660_v5 }
  0xcb   : > { %v4423_v55 = vpop.permute.xlu1 %597  ;;  %1681 = vperm.xlu1 %3843, %v1543_v26   ;;  %v919_v31 = vmax.f32 %v887_v28, 0.0  ;;  %v921_v60 = vmax.f32 %v889_v29, 0.0  ;;  %v918_v3 = vmax.f32 %v886_v62, 0.0  ;;  %v920_v53 = vmax.f32 %v888_v56, 0.0  ;;  %v2385_v28 = vld [vmem:[%s5043_s8 + $0x10] sm:$0xff]  ;;  %v668_v56 = vpop.permute.xlu0 %667 }
  0xcc   : > { %v727_v34 = vmul.f32 %v4258_v39, %v660_v5  ;;  %v558_v41 = vmul.f32 %v4230_v16, %v4225_v11  ;;  %v559_v21 = vmul.f32 %v4232_v17, %v4225_v11  ;;  %v560_v13 = vmul.f32 %v4234_v18, %v4225_v11 }
  0xcd   : > { %v3466_v35 = vpack.c.bf16 %v919_v31, %v915_v30  ;;  %v3482_v36 = vpack.c.bf16 %v921_v60, %v917_v47  ;;  %v3468_v61 = vpack.c.bf16 %v918_v3, %v914_v52  ;;  %v3484_v2 = vpack.c.bf16 %v920_v53, %v916_v38  ;;  %v2878_v30 = vld [vmem:[%s5045_s10 + $0x28] sm:$0xff] }
  0xce   : > { %2888 = vperm.xlu0 %3844, %v2874_v42   ;;  %v561_v15 = vmul.f32 %v4236_v19, %v4225_v11  ;;  %v4465_v20 = vmul.f32 %v4230_v16, %v4269_v44  ;;  %v4469_v14 = vmul.f32 %v4232_v17, %v4269_v44  ;;  %v4473_v59 = vmul.f32 %v4234_v18, %v4269_v44 }
  0xcf   : > { %1691 = vperm.xlu1 %3843, %v1545_v54   ;;  %3467 = vmatprep.subr.bf16.mxu0 %v3466_v35  ;;  %v4477_v23 = vmul.f32 %v4236_v19, %v4269_v44  ;;  %v628_v25 = vadd.f32 %v4243_v24, %v556_v43  ;;  %v629_v11 = vadd.f32 %v4243_v24, %v557_v63 }
  0xd0   : > { %v664_v7 = vpop.permute.xlu1 %663  ;;  %3483 = vmatprep.subr.bf16.mxu1 %v3482_v36  ;;  %3469 = vmatpush1.bf16.msra.mxu0 %v3468_v61  ;;  %v728_v22 = vmul.f32 %v4273_v46, %v660_v5  ;;  %v729_v26 = vmul.f32 %v4260_v40, %v660_v5  ;;  %v758_v27 = vadd.f32 %v726_v33, %v626_v1  ;;  %v2880_v5 = vld [vmem:[%s5045_s10 + $0x38] sm:$0xff] }
  0xd1   : > { %3485 = vmatpush1.bf16.msra.mxu1 %v3484_v2  ;;  %v759_v8 = vadd.f32 %v727_v34, %v627_v9  ;;  %v730_v29 = vmul.f32 %v4271_v45, %v664_v7  ;;  %v731_v44 = vmul.f32 %v4258_v39, %v664_v7  ;;  %v732_v62 = vmul.f32 %v4273_v46, %v664_v7 }
  0xd2   : > { %2898 = vperm.xlu0 %3844, %v2876_v12   ;;  %v733_v24 = vmul.f32 %v4260_v40, %v664_v7  ;;  %v630_v47 = vadd.f32 %v4423_v55, %v558_v41  ;;  %v631_v52 = vadd.f32 %v4423_v55, %v559_v21  ;;  %v632_v38 = vadd.f32 %v4423_v55, %v560_v13 }
  0xd3   : > { %1701 = vperm.xlu1 %3843, %v1547_v6   ;;  %v633_v54 = vadd.f32 %v4423_v55, %v561_v15  ;;  %v760_v35 = vadd.f32 %v728_v22, %v628_v25  ;;  %v761_v36 = vadd.f32 %v729_v26, %v629_v11  ;;  %v4502_v61 = vmul.f32 %v4271_v45, %v668_v56  ;;  %v2387_v55 = vld [vmem:[%s5043_s8 + $0x20] sm:$0xff]  ;;  %v2389_v25 = vld [vmem:[%s5043_s8 + $0x30] sm:$0xff] }
  0xd4   : > { %v4505_v2 = vmul.f32 %v4258_v39, %v668_v56  ;;  %v762_v0 = vadd.f32 %v730_v29, %v630_v47  ;;  %v763_v48 = vadd.f32 %v731_v44, %v631_v52  ;;  %v764_v7 = vadd.f32 %v732_v62, %v632_v38 }
  0xd5   : > { %v493_v10 = vpop.permute.xlu1 %492  ;;  %v765_v6 = vadd.f32 %v733_v24, %v633_v54 }
  0xd6   : > { %2908 = vperm.xlu0 %3844, %v2878_v30   ;;  %v562_v21 = vmul.f32 %v4230_v16, %v493_v10  ;;  %v563_v12 = vmul.f32 %v4232_v17, %v493_v10  ;;  %v564_v13 = vmul.f32 %v4234_v18, %v493_v10  ;;  %v565_v15 = vmul.f32 %v4236_v19, %v493_v10 }
  0xd7   : > { %2401 = vperm.xlu1 %3843, %v2383_v37   ;;  %v736_v19 = vmul.f32 %v4273_v46, %v668_v56  ;;  %v737_v10 = vmul.f32 %v4260_v40, %v668_v56  ;;  %v2391_v56 = vld [vmem:[%s5043_s8 + $0x40] sm:$0xff] }
  0xda   : > { %v792_v31 = vpop.permute.xlu1 %791  ;;  %2918 = vperm.xlu0 %3844, %v2880_v5  }
  0xdb   : > { %v858_v60 = vmul.f32 %v4277_v49, %v792_v31  ;;  %v859_v3 = vmul.f32 %v4279_v50, %v792_v31  ;;  %v860_v53 = vmul.f32 %v4281_v51, %v792_v31  ;;  %v861_v58 = vmul.f32 %v4292_v57, %v792_v31  ;;  %2411 = vperm.xlu1 %3843, %v2385_v28  }
  0xdd   : > { %v891_v43 = vadd.f32 %v859_v3, %v759_v8  ;;  %v893_v63 = vadd.f32 %v861_v58, %v761_v36  ;;  %v890_v1 = vadd.f32 %v858_v60, %v758_v27  ;;  %v892_v9 = vadd.f32 %v860_v53, %v760_v35  ;;  %v804_v8 = vpop.permute.xlu0 %803 }
  0xde   : > { %v796_v42 = vpop.permute.xlu1 %795  ;;  %v870_v47 = vmul.f32 %v4277_v49, %v804_v8  ;;  %v871_v52 = vmul.f32 %v4279_v50, %v804_v8  ;;  %v634_v3 = vadd.f32 %v4311_v4, %v562_v21  ;;  %v635_v53 = vadd.f32 %v4311_v4, %v563_v12 }
  0xdf   : > { %v862_v33 = vmul.f32 %v4277_v49, %v796_v42  ;;  %v863_v34 = vmul.f32 %v4279_v50, %v796_v42  ;;  %v864_v37 = vmul.f32 %v4281_v51, %v796_v42  ;;  %v865_v41 = vmul.f32 %v4292_v57, %v796_v42  ;;  %2421 = vperm.xlu1 %3843, %v2387_v55  }
  0xe0   : > { %v923_v28 = vmax.f32 %v891_v43, 0.0  ;;  %v925_v29 = vmax.f32 %v893_v63, 0.0  ;;  %v922_v44 = vmax.f32 %v890_v1, 0.0  ;;  %v924_v16 = vmax.f32 %v892_v9, 0.0 }
  0xe1   : > { %v895_v11 = vadd.f32 %v863_v34, %v763_v48  ;;  %v897_v22 = vadd.f32 %v865_v41, %v765_v6  ;;  %v894_v26 = vadd.f32 %v862_v33, %v762_v0  ;;  %v896_v27 = vadd.f32 %v864_v37, %v764_v7 }
  0xe2   : > { %v872_v58 = vmul.f32 %v4281_v51, %v804_v8  ;;  %v873_v35 = vmul.f32 %v4292_v57, %v804_v8  ;;  %v636_v36 = vadd.f32 %v4311_v4, %v564_v13  ;;  %v637_v55 = vadd.f32 %v4311_v4, %v565_v15 }
  0xe3   : > { %v608_v62 = vpop.permute.xlu1 %607  ;;  %v927_v17 = vmax.f32 %v895_v11, 0.0  ;;  %v929_v24 = vmax.f32 %v897_v22, 0.0  ;;  %v926_v18 = vmax.f32 %v894_v26, 0.0  ;;  %v928_v30 = vmax.f32 %v896_v27, 0.0  ;;  %2431 = vperm.xlu1 %3843, %v2389_v25  }
  0xe4   : > { %v638_v0 = vadd.f32 %v608_v62, %v4465_v20  ;;  %v639_v48 = vadd.f32 %v608_v62, %v4469_v14  ;;  %v640_v7 = vadd.f32 %v608_v62, %v4473_v59  ;;  %v641_v6 = vadd.f32 %v608_v62, %v4477_v23  ;;  %v2393_v20 = vld [vmem:[%s5043_s8 + $0x50] sm:$0xff] }
  0xe5   : > { %v3470_v38 = vpack.c.bf16 %v927_v17, %v923_v28  ;;  %v3486_v54 = vpack.c.bf16 %v929_v24, %v925_v29  ;;  %v3472_v31 = vpack.c.bf16 %v926_v18, %v922_v44  ;;  %v3488_v60 = vpack.c.bf16 %v928_v30, %v924_v16  ;;  %v2873_v24 = vld [vmem:[%s5045_s10] sm:$0xff]  ;;  %v2875_v30 = vld [vmem:[%s5045_s10 + $0x10] sm:$0xff] }
  0xe6   : > { %v766_v9 = vadd.f32 %v4502_v61, %v634_v3  ;;  %v767_v33 = vadd.f32 %v4505_v2, %v635_v53  ;;  %v769_v34 = vadd.f32 %v737_v10, %v637_v55  ;;  %v2395_v61 = vld [vmem:[%s5043_s8 + $0x60] sm:$0xff]  ;;  %v944_v3 = vld [vmem:[%s5038_s3 + $0x30] sm:$0xff]  ;;  %v945_v53 = vld [vmem:[%s5038_s3 + $0x38] sm:$0xff] }
  0xe7   : > { %3471 = vmatprep.subr.bf16.mxu0 %v3470_v38  ;;  %3487 = vmatprep.subr.bf16.mxu1 %v3486_v54  ;;  %v938_v18 = vld [vmem:[%s5038_s3] sm:$0xff]  ;;  %v941_v38 = vld [vmem:[%s5038_s3 + $0x18] sm:$0xff] }
  0xe8   : > { %v672_v5 = vpop.permute.xlu1 %671  ;;  %3473 = vmatpush1.bf16.msra.mxu0 %v3472_v31  ;;  %3489 = vmatpush1.bf16.msra.mxu1 %v3488_v60  ;;  %v2877_v10 = vld [vmem:[%s5045_s10 + $0x20] sm:$0xff]  ;;  %v943_v60 = vld [vmem:[%s5038_s3 + $0x28] sm:$0xff] }
  0xe9   : > { %v738_v42 = vmul.f32 %v4271_v45, %v672_v5  ;;  %v739_v43 = vmul.f32 %v4258_v39, %v672_v5  ;;  %v740_v63 = vmul.f32 %v4273_v46, %v672_v5  ;;  %v741_v4 = vmul.f32 %v4260_v40, %v672_v5  ;;  %2441 = vperm.xlu1 %3843, %v2391_v56   ;;  %v3180_v54 = vld [vmem:[%s5047_s12] sm:$0x7]  ;;  %v948_v56 = vld [vmem:[%s5038_s3 + $0x50] sm:$0xff] }
  0xea   : > { %v768_v45 = vadd.f32 %v736_v19, %v636_v36  ;;  %v939_v19 = vld [vmem:[%s5038_s3 + $0x8] sm:$0xff]  ;;  %v942_v31 = vld [vmem:[%s5038_s3 + $0x20] sm:$0xff]  ;;  %v949_v36 = vld [vmem:[%s5038_s3 + $0x58] sm:$0xff] }
  0xeb   : > { %v770_v14 = vadd.f32 %v738_v42, %v638_v0  ;;  %v771_v59 = vadd.f32 %v739_v43, %v639_v48  ;;  %v772_v1 = vadd.f32 %v740_v63, %v640_v7  ;;  %v773_v23 = vadd.f32 %v741_v4, %v641_v6  ;;  %v950_v55 = vld [vmem:[%s5038_s3 + $0x60] sm:$0xff]  ;;  %v951_v0 = vld [vmem:[%s5038_s3 + $0x68] sm:$0xff]  ;;  %v952_v48 = vld [vmem:[%s5038_s3 + $0x70] sm:$0xff] }
  0xec   : > { %v953_v7 = vld [vmem:[%s5038_s3 + $0x78] sm:$0xff] }
  0xed   : > { %v800_v39 = vpop.permute.xlu1 %799  ;;  %v903_v37 = vadd.f32 %v871_v52, %v771_v59  ;;  %v905_v46 = vadd.f32 %v873_v35, %v773_v23  ;;  %v902_v41 = vadd.f32 %v870_v47, %v770_v14  ;;  %v904_v40 = vadd.f32 %v872_v58, %v772_v1  ;;  %2451 = vperm.xlu1 %3843, %v2393_v20   ;;  %v940_v47 = vld [vmem:[%s5038_s3 + $0x10] sm:$0xff]  ;;  %v946_v58 = vld [vmem:[%s5038_s3 + $0x40] sm:$0xff]  ;;  %v947_v35 = vld [vmem:[%s5038_s3 + $0x48] sm:$0xff] }
  0xee   : > { %v866_v21 = vmul.f32 %v4277_v49, %v800_v39  ;;  %v867_v12 = vmul.f32 %v4279_v50, %v800_v39  ;;  %v868_v13 = vmul.f32 %v4281_v51, %v800_v39  ;;  %v869_v15 = vmul.f32 %v4292_v57, %v800_v39  ;;  %v2397_v51 = vld [vmem:[%s5043_s8 + $0x70] sm:$0xff] }
  0xef   : > { %v935_v26 = vmax.f32 %v903_v37, 0.0  ;;  %v937_v27 = vmax.f32 %v905_v46, 0.0  ;;  %v934_v8 = vmax.f32 %v902_v41, 0.0  ;;  %v936_v28 = vmax.f32 %v904_v40, 0.0  ;;  %v2879_v52 = vld [vmem:[%s5045_s10 + $0x30] sm:$0xff] }
  0xf0   : > { %v899_v2 = vadd.f32 %v867_v12, %v767_v33  ;;  %v901_v25 = vadd.f32 %v869_v15, %v769_v34  ;;  %v898_v11 = vadd.f32 %v866_v21, %v766_v9  ;;  %v900_v22 = vadd.f32 %v868_v13, %v768_v45 }
  0xf1   : > { %2461 = vperm.xlu1 %3843, %v2395_v61  }
  0xf2   : > { %v931_v49 = vmax.f32 %v899_v2, 0.0  ;;  %v933_v29 = vmax.f32 %v901_v25, 0.0  ;;  %v930_v50 = vmax.f32 %v898_v11, 0.0  ;;  %v932_v44 = vmax.f32 %v900_v22, 0.0  ;;  %v973_v6 = vpop.permute.xlu1 %972 }
  0xf4   : > { %v3474_v57 = vpack.c.bf16 %v935_v26, %v931_v49  ;;  %v3490_v16 = vpack.c.bf16 %v937_v27, %v933_v29  ;;  %v3476_v62 = vpack.c.bf16 %v934_v8, %v930_v50  ;;  %v3492_v17 = vpack.c.bf16 %v936_v28, %v932_v44  ;;  %v983_v28 = vpop.permute.xlu0 %982 }
  0xf5   : > { %2471 = vperm.xlu1 %3843, %v2397_v51  }
  0xf6   : > { %3475 = vmatprep.subr.bf16.mxu0 %v3474_v57  ;;  %3491 = vmatprep.subr.bf16.mxu1 %v3490_v16  ;;  %v978_v4 = vpop.permute.xlu1 %977 }
  0xf7   : > { %3477 = vmatpush1.bf16.msra.mxu0 %v3476_v62  ;;  %3493 = vmatpush1.bf16.msra.mxu1 %v3492_v17 }
  0xf9   : > { %2883 = vperm.xlu1 %3843, %v2873_v24  }
  0xfa   : > { %3422 = vmatmul.mubr.msk.f32.vlgmr.msra.gmra.mrb[0].mxu0 %vm1050_vm0, %v938_v18  ;;  %3438 = vmatmul.mubr.msk.f32.vlgmr.msra.gmra.mrb[0].mxu1 %vm1050_vm0, %v938_v18  ;;  %v988_v50 = vpop.permute.xlu1 %987 }
  0xfb   : > { %1169 = vmatprep.mubr.f32.mxu0 %v3912_v32  ;;  %1330 = vmatprep.mubr.f32.mxu1 %v3912_v32 }
  0xfd   : > { %2893 = vperm.xlu1 %3843, %v2875_v30  }
  0xfe   : > { %3423 = vmatmul.mubr.msk.f32.gmra.mrb[2].mxu0 %vm1050_vm0, %v939_v19  ;;  %3439 = vmatmul.mubr.msk.f32.gmra.mrb[2].mxu1 %vm1050_vm0, %v939_v19 }
  0xff   : > { %1175 = vmatprep.mubr.f32.mxu0 %v3912_v32  ;;  %1336 = vmatprep.mubr.f32.mxu1 %v3912_v32 }
 0x101   : > { %2903 = vperm.xlu1 %3843, %v2877_v10  }
 0x102   : > { %3424 = vmatmul.mubr.msk.f32.gmra.mrb[4].mxu0 %vm1050_vm0, %v940_v47  ;;  %3440 = vmatmul.mubr.msk.f32.gmra.mrb[4].mxu1 %vm1050_vm0, %v940_v47 }
 0x103   : > { %1181 = vmatprep.mubr.f32.mxu0 %v3912_v32  ;;  %1342 = vmatprep.mubr.f32.mxu1 %v3912_v32 }
 0x105   : > { %2913 = vperm.xlu1 %3843, %v2879_v52  }
 0x106   : > { %3425 = vmatmul.mubr.msk.f32.gmra.mrb[6].mxu0 %vm1050_vm0, %v941_v38  ;;  %3441 = vmatmul.mubr.msk.f32.gmra.mrb[6].mxu1 %vm1050_vm0, %v941_v38 }
 0x107   : > { %1187 = vmatprep.mubr.f32.mxu0 %v3912_v32  ;;  %1348 = vmatprep.mubr.f32.mxu1 %v3912_v32 }
 0x109   : > { %3183 = vperm.xlu1 %3843, %v3180_v54  }
 0x10a   : > { %3426 = vmatmul.mubr.msk.f32.gmra.mrb[8].mxu0 %vm1050_vm0, %v942_v31  ;;  %3442 = vmatmul.mubr.msk.f32.gmra.mrb[8].mxu1 %vm1050_vm0, %v942_v31 }
 0x10b   : > { %1193 = vmatprep.mubr.f32.mxu0 %v3912_v32  ;;  %1354 = vmatprep.mubr.f32.mxu1 %v3912_v32 }
 0x10e   : > { %3427 = vmatmul.mubr.msk.f32.gmra.mrb[10].mxu0 %vm1050_vm0, %v943_v60  ;;  %3443 = vmatmul.mubr.msk.f32.gmra.mrb[10].mxu1 %vm1050_vm0, %v943_v60 }
 0x10f   : > { %1199 = vmatprep.mubr.f32.mxu0 %v3912_v32  ;;  %1360 = vmatprep.mubr.f32.mxu1 %v3912_v32 }
 0x112   : > { %3428 = vmatmul.mubr.msk.f32.gmra.mrb[12].mxu0 %vm1050_vm0, %v944_v3  ;;  %3444 = vmatmul.mubr.msk.f32.gmra.mrb[12].mxu1 %vm1050_vm0, %v944_v3 }
 0x113   : > { %1205 = vmatprep.mubr.f32.mxu0 %v3912_v32  ;;  %1366 = vmatprep.mubr.f32.mxu1 %v3912_v32 }
 0x116   : > { %3429 = vmatmul.mubr.msk.f32.gmra.mrb[14].mxu0 %vm1050_vm0, %v945_v53  ;;  %3445 = vmatmul.mubr.msk.f32.gmra.mrb[14].mxu1 %vm1050_vm0, %v945_v53 }
 0x117   : > { %1211 = vmatprep.mubr.f32.mxu0 %v3912_v32  ;;  %1372 = vmatprep.mubr.f32.mxu1 %v3912_v32 }
 0x11a   : > { %3430 = vmatmul.mubr.msk.f32.gmra.mrb[16].mxu0 %vm1050_vm0, %v946_v58  ;;  %3446 = vmatmul.mubr.msk.f32.gmra.mrb[16].mxu1 %vm1050_vm0, %v946_v58 }
 0x11b   : > { %1217 = vmatprep.mubr.f32.mxu0 %v3912_v32  ;;  %1378 = vmatprep.mubr.f32.mxu1 %v3912_v32 }
 0x11e   : > { %3431 = vmatmul.mubr.msk.f32.gmra.mrb[18].mxu0 %vm1050_vm0, %v947_v35  ;;  %3447 = vmatmul.mubr.msk.f32.gmra.mrb[18].mxu1 %vm1050_vm0, %v947_v35 }
 0x11f   : > { %1223 = vmatprep.mubr.f32.mxu0 %v3912_v32  ;;  %1384 = vmatprep.mubr.f32.mxu1 %v3912_v32 }
 0x122   : > { %3432 = vmatmul.mubr.msk.f32.gmra.mrb[20].mxu0 %vm1050_vm0, %v948_v56  ;;  %3448 = vmatmul.mubr.msk.f32.gmra.mrb[20].mxu1 %vm1050_vm0, %v948_v56 }
 0x123   : > { %1229 = vmatprep.mubr.f32.mxu0 %v3912_v32  ;;  %1390 = vmatprep.mubr.f32.mxu1 %v3912_v32 }
 0x126   : > { %3433 = vmatmul.mubr.msk.f32.gmra.mrb[22].mxu0 %vm1050_vm0, %v949_v36  ;;  %3449 = vmatmul.mubr.msk.f32.gmra.mrb[22].mxu1 %vm1050_vm0, %v949_v36 }
 0x127   : > { %1235 = vmatprep.mubr.f32.mxu0 %v3912_v32  ;;  %1396 = vmatprep.mubr.f32.mxu1 %v3912_v32 }
 0x12a   : > { %3434 = vmatmul.mubr.msk.f32.gmra.mrb[24].mxu0 %vm1050_vm0, %v950_v55  ;;  %3450 = vmatmul.mubr.msk.f32.gmra.mrb[24].mxu1 %vm1050_vm0, %v950_v55 }
 0x12b   : > { %1241 = vmatprep.mubr.f32.mxu0 %v3912_v32  ;;  %1402 = vmatprep.mubr.f32.mxu1 %v3912_v32 }
 0x12e   : > { %3435 = vmatmul.mubr.msk.f32.gmra.mrb[26].mxu0 %vm1050_vm0, %v951_v0  ;;  %3451 = vmatmul.mubr.msk.f32.gmra.mrb[26].mxu1 %vm1050_vm0, %v951_v0 }
 0x12f   : > { %1247 = vmatprep.mubr.f32.mxu0 %v3912_v32  ;;  %1408 = vmatprep.mubr.f32.mxu1 %v3912_v32 }
 0x132   : > { %3436 = vmatmul.mubr.msk.f32.gmra.mrb[28].mxu0 %vm1050_vm0, %v952_v48  ;;  %3452 = vmatmul.mubr.msk.f32.gmra.mrb[28].mxu1 %vm1050_vm0, %v952_v48 }
 0x133   : > { %1253 = vmatprep.mubr.f32.mxu0 %v3912_v32  ;;  %1414 = vmatprep.mubr.f32.mxu1 %v3912_v32 }
 0x136   : > { %3437 = vmatmul.mubr.msk.f32.gmra.mrb[30].mxu0 %vm1050_vm0, %v953_v7  ;;  %3453 = vmatmul.mubr.msk.f32.gmra.mrb[30].mxu1 %vm1050_vm0, %v953_v7  ;;  %v993_v7 = vpop.permute.xlu1 %992 }
 0x137   : > { %1773 = vmatprep.mubr.f32.mxu0 %v3912_v32  ;;  %2030 = vmatprep.mubr.f32.mxu1 %v3912_v32 }
 0x1cd   : > { %v1165_v5 = vpop.f32.mrb[0].mxu0  ;;  %v1326_v42 = vpop.f32.mrb[0].mxu1 }
 0x1ce   : > { %v1167_v43 = vpop.f32.mrb[1].mxu0  ;;  %v1328_v63 = vpop.f32.mrb[1].mxu1  ;;  %v1166_v20 = vadd.f32 %v1165_v5, %v973_v6  ;;  %v1327_v14 = vadd.f32 %v1326_v42, %v973_v6 }
 0x1cf   : > { %v1168_v59 = vadd.f32 %v1167_v43, %v973_v6  ;;  %v1329_v1 = vadd.f32 %v1328_v63, %v973_v6  ;;  %v998_v42 = vpop.permute.xlu0 %997 }
 0x1d0   : > { %v1421_v41 = vmax.f32 %v1166_v20, 0.0  ;;  %v1423_v40 = vmax.f32 %v1327_v14, 0.0 }
 0x1d1   : > { %v1171_v23 = vpop.f32.mrb[2].mxu0  ;;  %v1332_v9 = vpop.f32.mrb[2].mxu1  ;;  %v1422_v13 = vmax.f32 %v1168_v59, 0.0  ;;  %v1424_v15 = vmax.f32 %v1329_v1, 0.0 }
 0x1d2   : > { %v1172_v33 = vadd.f32 %v1171_v23, %v978_v4  ;;  %v1333_v45 = vadd.f32 %v1332_v9, %v978_v4  ;;  %v1173_v34 = vpop.f32.mrb[3].mxu0  ;;  %v1334_v39 = vpop.f32.mrb[3].mxu1 }
 0x1d3   : > { %v1174_v37 = vadd.f32 %v1173_v34, %v978_v4  ;;  %v1335_v46 = vadd.f32 %v1334_v39, %v978_v4 }
 0x1d4   : > { %v1425_v21 = vmax.f32 %v1172_v33, 0.0  ;;  %v1427_v12 = vmax.f32 %v1333_v45, 0.0 }
 0x1d5   : > { %v1426_v61 = vmax.f32 %v1174_v37, 0.0  ;;  %v1428_v2 = vmax.f32 %v1335_v46, 0.0  ;;  %v1177_v25 = vpop.f32.mrb[4].mxu0  ;;  %v1338_v11 = vpop.f32.mrb[4].mxu1 }
 0x1d6   : > { %v3496_v22 = vpack.c.bf16 %v1425_v21, %v1421_v41  ;;  %v3528_v26 = vpack.c.bf16 %v1427_v12, %v1423_v40  ;;  %v1179_v27 = vpop.f32.mrb[5].mxu0  ;;  %v1340_v8 = vpop.f32.mrb[5].mxu1  ;;  %v1178_v44 = vadd.f32 %v1177_v25, %v983_v28  ;;  %v1339_v51 = vadd.f32 %v1338_v11, %v983_v28 }
 0x1d7   : > { %v3494_v49 = vpack.c.bf16 %v1426_v61, %v1422_v13  ;;  %v3526_v29 = vpack.c.bf16 %v1428_v2, %v1424_v15  ;;  %v1180_v57 = vadd.f32 %v1179_v27, %v983_v28  ;;  %v1341_v16 = vadd.f32 %v1340_v8, %v983_v28  ;;  %v1008_v28 = vpop.permute.xlu0 %1007 }
 0x1d8   : > { %v1429_v52 = vmax.f32 %v1178_v44, 0.0  ;;  %v1431_v38 = vmax.f32 %v1339_v51, 0.0 }
 0x1d9   : > { %v1183_v62 = vpop.f32.mrb[6].mxu0  ;;  %v1344_v17 = vpop.f32.mrb[6].mxu1  ;;  %3495 = vmatprep.subr.bf16.mxu0 %v3494_v49  ;;  %3527 = vmatprep.subr.bf16.mxu1 %v3526_v29  ;;  %v1430_v60 = vmax.f32 %v1180_v57, 0.0  ;;  %v1432_v3 = vmax.f32 %v1341_v16, 0.0 }
 0x1da   : > { %v1184_v24 = vadd.f32 %v1183_v62, %v988_v50  ;;  %v1345_v18 = vadd.f32 %v1344_v17, %v988_v50  ;;  %v1185_v30 = vpop.f32.mrb[7].mxu0  ;;  %v1346_v19 = vpop.f32.mrb[7].mxu1  ;;  %3497 = vmatpush1.bf16.msra.mxu0 %v3496_v22  ;;  %3529 = vmatpush1.bf16.msra.mxu1 %v3528_v26 }
 0x1db   : > { %v1186_v10 = vadd.f32 %v1185_v30, %v988_v50  ;;  %v1347_v47 = vadd.f32 %v1346_v19, %v988_v50  ;;  %v1003_v26 = vpop.permute.xlu1 %1002 }
 0x1dc   : > { %v1433_v54 = vmax.f32 %v1184_v24, 0.0  ;;  %v1435_v31 = vmax.f32 %v1345_v18, 0.0 }
 0x1dd   : > { %v1434_v53 = vmax.f32 %v1186_v10, 0.0  ;;  %v1436_v58 = vmax.f32 %v1347_v47, 0.0  ;;  %v1189_v35 = vpop.f32.mrb[8].mxu0  ;;  %v1350_v56 = vpop.f32.mrb[8].mxu1 }
 0x1de   : > { %v3500_v36 = vpack.c.bf16 %v1433_v54, %v1429_v52  ;;  %v3532_v55 = vpack.c.bf16 %v1435_v31, %v1431_v38  ;;  %v1191_v0 = vpop.f32.mrb[9].mxu0  ;;  %v1352_v48 = vpop.f32.mrb[9].mxu1  ;;  %v1190_v43 = vadd.f32 %v1189_v35, %v993_v7  ;;  %v1351_v63 = vadd.f32 %v1350_v56, %v993_v7 }
 0x1df   : > { %v3498_v6 = vpack.c.bf16 %v1434_v53, %v1430_v60  ;;  %v3530_v5 = vpack.c.bf16 %v1436_v58, %v1432_v3  ;;  %v1192_v4 = vadd.f32 %v1191_v0, %v993_v7  ;;  %v1353_v20 = vadd.f32 %v1352_v48, %v993_v7  ;;  %v1018_v7 = vpop.permute.xlu0 %1017 }
 0x1e0   : > { %v1437_v39 = vmax.f32 %v1190_v43, 0.0  ;;  %v1439_v37 = vmax.f32 %v1351_v63, 0.0 }
 0x1e1   : > { %v1195_v14 = vpop.f32.mrb[10].mxu0  ;;  %v1356_v59 = vpop.f32.mrb[10].mxu1  ;;  %3499 = vmatprep.subr.bf16.mxu0 %v3498_v6  ;;  %3531 = vmatprep.subr.bf16.mxu1 %v3530_v5  ;;  %v1438_v40 = vmax.f32 %v1192_v4, 0.0  ;;  %v1440_v21 = vmax.f32 %v1353_v20, 0.0 }
 0x1e2   : > { %v1196_v1 = vadd.f32 %v1195_v14, %v998_v42  ;;  %v1357_v23 = vadd.f32 %v1356_v59, %v998_v42  ;;  %v1197_v9 = vpop.f32.mrb[11].mxu0  ;;  %v1358_v33 = vpop.f32.mrb[11].mxu1  ;;  %3501 = vmatpush1.bf16.msra.mxu0 %v3500_v36  ;;  %3533 = vmatpush1.bf16.msra.mxu1 %v3532_v55 }
 0x1e3   : > { %v1198_v45 = vadd.f32 %v1197_v9, %v998_v42  ;;  %v1359_v34 = vadd.f32 %v1358_v33, %v998_v42  ;;  %v1013_v55 = vpop.permute.xlu1 %1012 }
 0x1e4   : > { %v1441_v46 = vmax.f32 %v1196_v1, 0.0  ;;  %v1443_v41 = vmax.f32 %v1357_v23, 0.0 }
 0x1e5   : > { %v1442_v12 = vmax.f32 %v1198_v45, 0.0  ;;  %v1444_v13 = vmax.f32 %v1359_v34, 0.0  ;;  %v1201_v15 = vpop.f32.mrb[12].mxu0  ;;  %v1362_v61 = vpop.f32.mrb[12].mxu1 }
 0x1e6   : > { %v3504_v2 = vpack.c.bf16 %v1441_v46, %v1437_v39  ;;  %v3536_v25 = vpack.c.bf16 %v1443_v41, %v1439_v37  ;;  %v1203_v11 = vpop.f32.mrb[13].mxu0  ;;  %v1364_v22 = vpop.f32.mrb[13].mxu1  ;;  %v1202_v49 = vadd.f32 %v1201_v15, %v1003_v26  ;;  %v1363_v29 = vadd.f32 %v1362_v61, %v1003_v26 }
 0x1e7   : > { %v3502_v27 = vpack.c.bf16 %v1442_v12, %v1438_v40  ;;  %v3534_v8 = vpack.c.bf16 %v1444_v13, %v1440_v21  ;;  %v1204_v50 = vadd.f32 %v1203_v11, %v1003_v26  ;;  %v1365_v44 = vadd.f32 %v1364_v22, %v1003_v26  ;;  %v1028_v26 = vpop.permute.xlu0 %1027 }
 0x1e8   : > { %v1445_v19 = vmax.f32 %v1202_v49, 0.0  ;;  %v1447_v10 = vmax.f32 %v1363_v29, 0.0 }
 0x1e9   : > { %v1207_v51 = vpop.f32.mrb[14].mxu0  ;;  %v1368_v57 = vpop.f32.mrb[14].mxu1  ;;  %3503 = vmatprep.subr.bf16.mxu0 %v3502_v27  ;;  %3535 = vmatprep.subr.bf16.mxu1 %v3534_v8  ;;  %v1446_v38 = vmax.f32 %v1204_v50, 0.0  ;;  %v1448_v54 = vmax.f32 %v1365_v44, 0.0 }
 0x1ea   : > { %v1208_v16 = vadd.f32 %v1207_v51, %v1008_v28  ;;  %v1369_v62 = vadd.f32 %v1368_v57, %v1008_v28  ;;  %v1209_v17 = vpop.f32.mrb[15].mxu0  ;;  %v1370_v24 = vpop.f32.mrb[15].mxu1  ;;  %3505 = vmatpush1.bf16.msra.mxu0 %v3504_v2  ;;  %3537 = vmatpush1.bf16.msra.mxu1 %v3536_v25 }
 0x1eb   : > { %v1210_v18 = vadd.f32 %v1209_v17, %v1008_v28  ;;  %v1371_v30 = vadd.f32 %v1370_v24, %v1008_v28  ;;  %v1023_v25 = vpop.permute.xlu1 %1022 }
 0x1ec   : > { %v1449_v47 = vmax.f32 %v1208_v16, 0.0  ;;  %v1451_v52 = vmax.f32 %v1369_v62, 0.0 }
 0x1ed   : > { %v1450_v31 = vmax.f32 %v1210_v18, 0.0  ;;  %v1452_v60 = vmax.f32 %v1371_v30, 0.0  ;;  %v1213_v3 = vpop.f32.mrb[16].mxu0  ;;  %v1374_v53 = vpop.f32.mrb[16].mxu1 }
 0x1ee   : > { %v3508_v58 = vpack.c.bf16 %v1449_v47, %v1445_v19  ;;  %v3540_v35 = vpack.c.bf16 %v1451_v52, %v1447_v10  ;;  %v1215_v56 = vpop.f32.mrb[17].mxu0  ;;  %v1376_v36 = vpop.f32.mrb[17].mxu1  ;;  %v1214_v6 = vadd.f32 %v1213_v3, %v1013_v55  ;;  %v1375_v5 = vadd.f32 %v1374_v53, %v1013_v55 }
 0x1ef   : > { %v3506_v0 = vpack.c.bf16 %v1450_v31, %v1446_v38  ;;  %v3538_v48 = vpack.c.bf16 %v1452_v60, %v1448_v54  ;;  %v1216_v42 = vadd.f32 %v1215_v56, %v1013_v55  ;;  %v1377_v43 = vadd.f32 %v1376_v36, %v1013_v55  ;;  %v1038_v55 = vpop.permute.xlu0 %1037 }
 0x1f0   : > { %v1453_v33 = vmax.f32 %v1214_v6, 0.0  ;;  %v1455_v45 = vmax.f32 %v1375_v5, 0.0 }
 0x1f1   : > { %v1219_v63 = vpop.f32.mrb[18].mxu0  ;;  %v1380_v4 = vpop.f32.mrb[18].mxu1  ;;  %3507 = vmatprep.subr.bf16.mxu0 %v3506_v0  ;;  %3539 = vmatprep.subr.bf16.mxu1 %v3538_v48  ;;  %v1454_v37 = vmax.f32 %v1216_v42, 0.0  ;;  %v1456_v46 = vmax.f32 %v1377_v43, 0.0 }
 0x1f2   : > { %v1220_v20 = vadd.f32 %v1219_v63, %v1018_v7  ;;  %v1381_v14 = vadd.f32 %v1380_v4, %v1018_v7  ;;  %v1221_v59 = vpop.f32.mrb[19].mxu0  ;;  %v1382_v1 = vpop.f32.mrb[19].mxu1  ;;  %3509 = vmatpush1.bf16.msra.mxu0 %v3508_v58  ;;  %3541 = vmatpush1.bf16.msra.mxu1 %v3540_v35 }
 0x1f3   : > { %v1222_v23 = vadd.f32 %v1221_v59, %v1018_v7  ;;  %v1383_v9 = vadd.f32 %v1382_v1, %v1018_v7  ;;  %v1033_v35 = vpop.permute.xlu1 %1032 }
 0x1f4   : > { %v1457_v34 = vmax.f32 %v1220_v20, 0.0  ;;  %v1459_v39 = vmax.f32 %v1381_v14, 0.0 }
 0x1f5   : > { %v1458_v41 = vmax.f32 %v1222_v23, 0.0  ;;  %v1460_v40 = vmax.f32 %v1383_v9, 0.0  ;;  %v1225_v21 = vpop.f32.mrb[20].mxu0  ;;  %v1386_v12 = vpop.f32.mrb[20].mxu1 }
 0x1f6   : > { %v3512_v13 = vpack.c.bf16 %v1457_v34, %v1453_v33  ;;  %v3544_v15 = vpack.c.bf16 %v1459_v39, %v1455_v45  ;;  %v1227_v61 = vpop.f32.mrb[21].mxu0  ;;  %v1388_v2 = vpop.f32.mrb[21].mxu1  ;;  %v1226_v27 = vadd.f32 %v1225_v21, %v1023_v25  ;;  %v1387_v8 = vadd.f32 %v1386_v12, %v1023_v25 }
 0x1f7   : > { %v3510_v11 = vpack.c.bf16 %v1458_v41, %v1454_v37  ;;  %v3542_v22 = vpack.c.bf16 %v1460_v40, %v1456_v46  ;;  %v1228_v28 = vadd.f32 %v1227_v61, %v1023_v25  ;;  %v1389_v49 = vadd.f32 %v1388_v2, %v1023_v25  ;;  %v1048_v25 = vpop.permute.xlu0 %1047 }
 0x1f8   : > { %v1461_v24 = vmax.f32 %v1226_v27, 0.0  ;;  %v1463_v18 = vmax.f32 %v1387_v8, 0.0 }
 0x1f9   : > { %v1231_v29 = vpop.f32.mrb[22].mxu0  ;;  %v1392_v50 = vpop.f32.mrb[22].mxu1  ;;  %3511 = vmatprep.subr.bf16.mxu0 %v3510_v11  ;;  %3543 = vmatprep.subr.bf16.mxu1 %v3542_v22  ;;  %v1462_v10 = vmax.f32 %v1228_v28, 0.0  ;;  %v1464_v47 = vmax.f32 %v1389_v49, 0.0 }
 0x1fa   : > { %v1232_v44 = vadd.f32 %v1231_v29, %v1028_v26  ;;  %v1393_v51 = vadd.f32 %v1392_v50, %v1028_v26  ;;  %v1233_v57 = vpop.f32.mrb[23].mxu0  ;;  %v1394_v16 = vpop.f32.mrb[23].mxu1  ;;  %3513 = vmatpush1.bf16.msra.mxu0 %v3512_v13  ;;  %3545 = vmatpush1.bf16.msra.mxu1 %v3544_v15 }
 0x1fb   : > { %v1234_v62 = vadd.f32 %v1233_v57, %v1028_v26  ;;  %v1395_v17 = vadd.f32 %v1394_v16, %v1028_v26  ;;  %v1043_v15 = vpop.permute.xlu1 %1042 }
 0x1fc   : > { %v1465_v30 = vmax.f32 %v1232_v44, 0.0  ;;  %v1467_v19 = vmax.f32 %v1393_v51, 0.0 }
 0x1fd   : > { %v1466_v52 = vmax.f32 %v1234_v62, 0.0  ;;  %v1468_v38 = vmax.f32 %v1395_v17, 0.0  ;;  %v1237_v54 = vpop.f32.mrb[24].mxu0  ;;  %v1398_v31 = vpop.f32.mrb[24].mxu1 }
 0x1fe   : > { %v3516_v60 = vpack.c.bf16 %v1465_v30, %v1461_v24  ;;  %v3548_v3 = vpack.c.bf16 %v1467_v19, %v1463_v18  ;;  %v1239_v53 = vpop.f32.mrb[25].mxu0  ;;  %v1400_v58 = vpop.f32.mrb[25].mxu1  ;;  %v1238_v0 = vadd.f32 %v1237_v54, %v1033_v35  ;;  %v1399_v48 = vadd.f32 %v1398_v31, %v1033_v35  ;;  %v1485_v31 = vld [vmem:[%s5040_s5] sm:$0xff] }
 0x1ff   : > { %v3514_v56 = vpack.c.bf16 %v1466_v52, %v1462_v10  ;;  %v3546_v36 = vpack.c.bf16 %v1468_v38, %v1464_v47  ;;  %v1240_v7 = vadd.f32 %v1239_v53, %v1033_v35  ;;  %v1401_v6 = vadd.f32 %v1400_v58, %v1033_v35  ;;  %v1488_v53 = vld [vmem:[%s5040_s5 + $0x18] sm:$0xff]  ;;  %v1489_v58 = vld [vmem:[%s5040_s5 + $0x20] sm:$0xff]  ;;  %v1490_v35 = vld [vmem:[%s5040_s5 + $0x28] sm:$0xff] }
 0x200   : > { %v1469_v1 = vmax.f32 %v1238_v0, 0.0  ;;  %v1471_v23 = vmax.f32 %v1399_v48, 0.0  ;;  %v1494_v0 = vld [vmem:[%s5040_s5 + $0x48] sm:$0xff]  ;;  %v1495_v48 = vld [vmem:[%s5040_s5 + $0x50] sm:$0xff] }
 0x201   : > { %v1243_v5 = vpop.f32.mrb[26].mxu0  ;;  %v1404_v42 = vpop.f32.mrb[26].mxu1  ;;  %3515 = vmatprep.subr.bf16.mxu0 %v3514_v56  ;;  %3547 = vmatprep.subr.bf16.mxu1 %v3546_v36  ;;  %v1470_v45 = vmax.f32 %v1240_v7, 0.0  ;;  %v1472_v34 = vmax.f32 %v1401_v6, 0.0  ;;  %v1491_v56 = vld [vmem:[%s5040_s5 + $0x30] sm:$0xff]  ;;  %v1492_v36 = vld [vmem:[%s5040_s5 + $0x38] sm:$0xff] }
 0x202   : > { %v1244_v43 = vadd.f32 %v1243_v5, %v1038_v55  ;;  %v1405_v63 = vadd.f32 %v1404_v42, %v1038_v55  ;;  %v1245_v4 = vpop.f32.mrb[27].mxu0  ;;  %v1406_v20 = vpop.f32.mrb[27].mxu1  ;;  %3517 = vmatpush1.bf16.msra.mxu0 %v3516_v60  ;;  %3549 = vmatpush1.bf16.msra.mxu1 %v3548_v3  ;;  %v1486_v60 = vld [vmem:[%s5040_s5 + $0x8] sm:$0xff]  ;;  %v1487_v3 = vld [vmem:[%s5040_s5 + $0x10] sm:$0xff]  ;;  %v1496_v7 = vld [vmem:[%s5040_s5 + $0x58] sm:$0xff] }
 0x203   : > { %v1246_v14 = vadd.f32 %v1245_v4, %v1038_v55  ;;  %v1407_v59 = vadd.f32 %v1406_v20, %v1038_v55  ;;  %v1493_v55 = vld [vmem:[%s5040_s5 + $0x40] sm:$0xff]  ;;  %v1498_v5 = vld [vmem:[%s5040_s5 + $0x68] sm:$0xff]  ;;  %v1499_v42 = vld [vmem:[%s5040_s5 + $0x70] sm:$0xff] }
 0x204   : > { %v1473_v9 = vmax.f32 %v1244_v43, 0.0  ;;  %v1475_v33 = vmax.f32 %v1405_v63, 0.0  ;;  %v1497_v6 = vld [vmem:[%s5040_s5 + $0x60] sm:$0xff]  ;;  %v1500_v43 = vld [vmem:[%s5040_s5 + $0x78] sm:$0xff]  ;;  %v1502_v4 = vld [vmem:[%s5040_s5 + $0x88] sm:$0xff] }
 0x205   : > { %v1474_v39 = vmax.f32 %v1246_v14, 0.0  ;;  %v1476_v37 = vmax.f32 %v1407_v59, 0.0  ;;  %v1249_v46 = vpop.f32.mrb[28].mxu0  ;;  %v1410_v41 = vpop.f32.mrb[28].mxu1  ;;  %v1501_v63 = vld [vmem:[%s5040_s5 + $0x80] sm:$0xff]  ;;  %v1503_v20 = vld [vmem:[%s5040_s5 + $0x90] sm:$0xff] }
 0x206   : > { %v3520_v40 = vpack.c.bf16 %v1473_v9, %v1469_v1  ;;  %v3552_v21 = vpack.c.bf16 %v1475_v33, %v1471_v23  ;;  %v1251_v12 = vpop.f32.mrb[29].mxu0  ;;  %v1412_v13 = vpop.f32.mrb[29].mxu1  ;;  %v1250_v11 = vadd.f32 %v1249_v46, %v1043_v15  ;;  %v1411_v22 = vadd.f32 %v1410_v41, %v1043_v15  ;;  %v1504_v14 = vld [vmem:[%s5040_s5 + $0x98] sm:$0xff]  ;;  %v1505_v59 = vld [vmem:[%s5040_s5 + $0xa0] sm:$0xff]  ;;  %v1506_v1 = vld [vmem:[%s5040_s5 + $0xa8] sm:$0xff] }
 0x207   : > { %v3518_v61 = vpack.c.bf16 %v1474_v39, %v1470_v45  ;;  %v3550_v2 = vpack.c.bf16 %v1476_v37, %v1472_v34  ;;  %v1252_v26 = vadd.f32 %v1251_v12, %v1043_v15  ;;  %v1413_v27 = vadd.f32 %v1412_v13, %v1043_v15  ;;  %v1507_v23 = vld [vmem:[%s5040_s5 + $0xb0] sm:$0xff]  ;;  %v1508_v9 = vld [vmem:[%s5040_s5 + $0xb8] sm:$0xff]  ;;  %v1509_v33 = vld [vmem:[%s5040_s5 + $0xc0] sm:$0xff] }
 0x208   : > { %v1477_v16 = vmax.f32 %v1250_v11, 0.0  ;;  %v1479_v62 = vmax.f32 %v1411_v22, 0.0  ;;  %v1510_v45 = vld [vmem:[%s5040_s5 + $0xc8] sm:$0xff]  ;;  %v1511_v34 = vld [vmem:[%s5040_s5 + $0xd0] sm:$0xff]  ;;  %v1512_v39 = vld [vmem:[%s5040_s5 + $0xd8] sm:$0xff] }
 0x209   : > { %v1255_v8 = vpop.f32.mrb[30].mxu0  ;;  %v1416_v28 = vpop.f32.mrb[30].mxu1  ;;  %3519 = vmatprep.subr.bf16.mxu0 %v3518_v61  ;;  %3551 = vmatprep.subr.bf16.mxu1 %v3550_v2  ;;  %v1478_v18 = vmax.f32 %v1252_v26, 0.0  ;;  %v1480_v30 = vmax.f32 %v1413_v27, 0.0  ;;  %v1513_v37 = vld [vmem:[%s5040_s5 + $0xe0] sm:$0xff]  ;;  %v1514_v46 = vld [vmem:[%s5040_s5 + $0xe8] sm:$0xff] }
 0x20a   : > { %v1256_v49 = vadd.f32 %v1255_v8, %v1048_v25  ;;  %v1417_v29 = vadd.f32 %v1416_v28, %v1048_v25  ;;  %v1257_v50 = vpop.f32.mrb[31].mxu0  ;;  %v1418_v44 = vpop.f32.mrb[31].mxu1  ;;  %3521 = vmatpush1.bf16.msra.mxu0 %v3520_v40  ;;  %3553 = vmatpush1.bf16.msra.mxu1 %v3552_v21  ;;  %v1515_v41 = vld [vmem:[%s5040_s5 + $0xf0] sm:$0xff]  ;;  %v1516_v40 = vld [vmem:[%s5040_s5 + $0xf8] sm:$0xff] }
 0x20b   : > { %v1258_v51 = vadd.f32 %v1257_v50, %v1048_v25  ;;  %v1419_v57 = vadd.f32 %v1418_v44, %v1048_v25  ;;  %v1552_v61 = vpop.permute.xlu1 %1551  ;;  %v1557_v2 = vpop.permute.xlu0 %1556  ;;  %v2352_v44 = vld [vmem:[%s5042_s7 + $0x8] sm:$0xff] }
 0x20c   : > { %v1481_v17 = vmax.f32 %v1256_v49, 0.0  ;;  %v1483_v24 = vmax.f32 %v1417_v29, 0.0 }
 0x20d   : > { %v1482_v19 = vmax.f32 %v1258_v51, 0.0  ;;  %v1484_v10 = vmax.f32 %v1419_v57, 0.0 }
 0x20e   : > { %v3524_v47 = vpack.c.bf16 %v1481_v17, %v1477_v16  ;;  %v3556_v52 = vpack.c.bf16 %v1483_v24, %v1479_v62 }
 0x20f   : > { %v3522_v38 = vpack.c.bf16 %v1482_v19, %v1478_v18  ;;  %v3554_v54 = vpack.c.bf16 %v1484_v10, %v1480_v30 }
 0x211   : > { %3523 = vmatprep.subr.bf16.mxu0 %v3522_v38  ;;  %3555 = vmatprep.subr.bf16.mxu1 %v3554_v54 }
 0x212   : > { %3525 = vmatpush1.bf16.msra.mxu0 %v3524_v47  ;;  %3557 = vmatpush1.bf16.msra.mxu1 %v3556_v52 }
 0x215   : > { %1774 = vmatmul.mubr.f32.vlgmr.msra.gmra.mrb[32].mxu0 %v1485_v31  ;;  %2031 = vmatmul.mubr.f32.vlgmr.msra.gmra.mrb[32].mxu1 %v1485_v31 }
 0x216   : > { %1779 = vmatprep.mubr.f32.mxu0 %v3912_v32  ;;  %2036 = vmatprep.mubr.f32.mxu1 %v3912_v32 }
 0x219   : > { %1780 = vmatmul.mubr.f32.gmra.mrb[34].mxu0 %v1486_v60  ;;  %2037 = vmatmul.mubr.f32.gmra.mrb[34].mxu1 %v1486_v60 }
 0x21a   : > { %1785 = vmatprep.mubr.f32.mxu0 %v3912_v32  ;;  %2042 = vmatprep.mubr.f32.mxu1 %v3912_v32 }
 0x21d   : > { %1786 = vmatmul.mubr.f32.gmra.mrb[36].mxu0 %v1487_v3  ;;  %2043 = vmatmul.mubr.f32.gmra.mrb[36].mxu1 %v1487_v3  ;;  %v1562_v3 = vpop.permute.xlu1 %1561 }
 0x21e   : > { %1791 = vmatprep.mubr.f32.mxu0 %v3912_v32  ;;  %2048 = vmatprep.mubr.f32.mxu1 %v3912_v32 }
 0x221   : > { %1792 = vmatmul.mubr.f32.gmra.mrb[38].mxu0 %v1488_v53  ;;  %2049 = vmatmul.mubr.f32.gmra.mrb[38].mxu1 %v1488_v53 }
 0x222   : > { %1797 = vmatprep.mubr.f32.mxu0 %v3912_v32  ;;  %2054 = vmatprep.mubr.f32.mxu1 %v3912_v32 }
 0x225   : > { %1798 = vmatmul.mubr.f32.gmra.mrb[40].mxu0 %v1489_v58  ;;  %2055 = vmatmul.mubr.f32.gmra.mrb[40].mxu1 %v1489_v58 }
 0x226   : > { %1803 = vmatprep.mubr.f32.mxu0 %v3912_v32  ;;  %2060 = vmatprep.mubr.f32.mxu1 %v3912_v32 }
 0x229   : > { %1804 = vmatmul.mubr.f32.gmra.mrb[42].mxu0 %v1490_v35  ;;  %2061 = vmatmul.mubr.f32.gmra.mrb[42].mxu1 %v1490_v35  ;;  %v1567_v35 = vpop.permute.xlu0 %1566 }
 0x22a   : > { %1809 = vmatprep.mubr.f32.mxu0 %v3912_v32  ;;  %2066 = vmatprep.mubr.f32.mxu1 %v3912_v32 }
 0x22d   : > { %1810 = vmatmul.mubr.f32.gmra.mrb[44].mxu0 %v1491_v56  ;;  %2067 = vmatmul.mubr.f32.gmra.mrb[44].mxu1 %v1491_v56 }
 0x22e   : > { %1815 = vmatprep.mubr.f32.mxu0 %v3912_v32  ;;  %2072 = vmatprep.mubr.f32.mxu1 %v3912_v32 }
 0x231   : > { %1816 = vmatmul.mubr.f32.gmra.mrb[46].mxu0 %v1492_v36  ;;  %2073 = vmatmul.mubr.f32.gmra.mrb[46].mxu1 %v1492_v36 }
 0x232   : > { %1821 = vmatprep.mubr.f32.mxu0 %v3912_v32  ;;  %2078 = vmatprep.mubr.f32.mxu1 %v3912_v32 }
 0x235   : > { %1822 = vmatmul.mubr.f32.gmra.mrb[48].mxu0 %v1493_v55  ;;  %2079 = vmatmul.mubr.f32.gmra.mrb[48].mxu1 %v1493_v55 }
 0x236   : > { %1827 = vmatprep.mubr.f32.mxu0 %v3912_v32  ;;  %2084 = vmatprep.mubr.f32.mxu1 %v3912_v32 }
 0x239   : > { %1828 = vmatmul.mubr.f32.gmra.mrb[50].mxu0 %v1494_v0  ;;  %2085 = vmatmul.mubr.f32.gmra.mrb[50].mxu1 %v1494_v0 }
 0x23a   : > { %1833 = vmatprep.mubr.f32.mxu0 %v3912_v32  ;;  %2090 = vmatprep.mubr.f32.mxu1 %v3912_v32 }
 0x23d   : > { %1834 = vmatmul.mubr.f32.gmra.mrb[52].mxu0 %v1495_v48  ;;  %2091 = vmatmul.mubr.f32.gmra.mrb[52].mxu1 %v1495_v48 }
 0x23e   : > { %1839 = vmatprep.mubr.f32.mxu0 %v3912_v32  ;;  %2096 = vmatprep.mubr.f32.mxu1 %v3912_v32 }
 0x241   : > { %1840 = vmatmul.mubr.f32.gmra.mrb[54].mxu0 %v1496_v7  ;;  %2097 = vmatmul.mubr.f32.gmra.mrb[54].mxu1 %v1496_v7 }
 0x242   : > { %1845 = vmatprep.mubr.f32.mxu0 %v3912_v32  ;;  %2102 = vmatprep.mubr.f32.mxu1 %v3912_v32 }
 0x245   : > { %1846 = vmatmul.mubr.f32.gmra.mrb[56].mxu0 %v1497_v6  ;;  %2103 = vmatmul.mubr.f32.gmra.mrb[56].mxu1 %v1497_v6 }
 0x246   : > { %1851 = vmatprep.mubr.f32.mxu0 %v3912_v32  ;;  %2108 = vmatprep.mubr.f32.mxu1 %v3912_v32 }
 0x249   : > { %1852 = vmatmul.mubr.f32.gmra.mrb[58].mxu0 %v1498_v5  ;;  %2109 = vmatmul.mubr.f32.gmra.mrb[58].mxu1 %v1498_v5 }
 0x24a   : > { %1857 = vmatprep.mubr.f32.mxu0 %v3912_v32  ;;  %2114 = vmatprep.mubr.f32.mxu1 %v3912_v32 }
 0x24d   : > { %1858 = vmatmul.mubr.f32.gmra.mrb[60].mxu0 %v1499_v42  ;;  %2115 = vmatmul.mubr.f32.gmra.mrb[60].mxu1 %v1499_v42 }
 0x24e   : > { %1863 = vmatprep.mubr.f32.mxu0 %v3912_v32  ;;  %2120 = vmatprep.mubr.f32.mxu1 %v3912_v32 }
 0x251   : > { %1864 = vmatmul.mubr.f32.gmra.mrb[62].mxu0 %v1500_v43  ;;  %2121 = vmatmul.mubr.f32.gmra.mrb[62].mxu1 %v1500_v43 }
 0x252   : > { %1869 = vmatprep.mubr.f32.mxu0 %v3912_v32  ;;  %2126 = vmatprep.mubr.f32.mxu1 %v3912_v32 }
 0x255   : > { %1870 = vmatmul.mubr.f32.gmra.mrb[64].mxu0 %v1501_v63  ;;  %2127 = vmatmul.mubr.f32.gmra.mrb[64].mxu1 %v1501_v63 }
 0x256   : > { %1875 = vmatprep.mubr.f32.mxu0 %v3912_v32  ;;  %2132 = vmatprep.mubr.f32.mxu1 %v3912_v32 }
 0x259   : > { %1876 = vmatmul.mubr.f32.gmra.mrb[66].mxu0 %v1502_v4  ;;  %2133 = vmatmul.mubr.f32.gmra.mrb[66].mxu1 %v1502_v4 }
 0x25a   : > { %1881 = vmatprep.mubr.f32.mxu0 %v3912_v32  ;;  %2138 = vmatprep.mubr.f32.mxu1 %v3912_v32 }
 0x25d   : > { %1882 = vmatmul.mubr.f32.gmra.mrb[68].mxu0 %v1503_v20  ;;  %2139 = vmatmul.mubr.f32.gmra.mrb[68].mxu1 %v1503_v20 }
 0x25e   : > { %1887 = vmatprep.mubr.f32.mxu0 %v3912_v32  ;;  %2144 = vmatprep.mubr.f32.mxu1 %v3912_v32 }
 0x261   : > { %1888 = vmatmul.mubr.f32.gmra.mrb[70].mxu0 %v1504_v14  ;;  %2145 = vmatmul.mubr.f32.gmra.mrb[70].mxu1 %v1504_v14 }
 0x262   : > { %1893 = vmatprep.mubr.f32.mxu0 %v3912_v32  ;;  %2150 = vmatprep.mubr.f32.mxu1 %v3912_v32 }
 0x265   : > { %1894 = vmatmul.mubr.f32.gmra.mrb[72].mxu0 %v1505_v59  ;;  %2151 = vmatmul.mubr.f32.gmra.mrb[72].mxu1 %v1505_v59 }
 0x266   : > { %1899 = vmatprep.mubr.f32.mxu0 %v3912_v32  ;;  %2156 = vmatprep.mubr.f32.mxu1 %v3912_v32 }
 0x269   : > { %1900 = vmatmul.mubr.f32.gmra.mrb[74].mxu0 %v1506_v1  ;;  %2157 = vmatmul.mubr.f32.gmra.mrb[74].mxu1 %v1506_v1 }
 0x26a   : > { %1905 = vmatprep.mubr.f32.mxu0 %v3912_v32  ;;  %2162 = vmatprep.mubr.f32.mxu1 %v3912_v32 }
 0x26d   : > { %1906 = vmatmul.mubr.f32.gmra.mrb[76].mxu0 %v1507_v23  ;;  %2163 = vmatmul.mubr.f32.gmra.mrb[76].mxu1 %v1507_v23 }
 0x26e   : > { %1911 = vmatprep.mubr.f32.mxu0 %v3912_v32  ;;  %2168 = vmatprep.mubr.f32.mxu1 %v3912_v32 }
 0x271   : > { %1912 = vmatmul.mubr.f32.gmra.mrb[78].mxu0 %v1508_v9  ;;  %2169 = vmatmul.mubr.f32.gmra.mrb[78].mxu1 %v1508_v9 }
 0x272   : > { %1917 = vmatprep.mubr.f32.mxu0 %v3912_v32  ;;  %2174 = vmatprep.mubr.f32.mxu1 %v3912_v32 }
 0x275   : > { %1918 = vmatmul.mubr.f32.gmra.mrb[80].mxu0 %v1509_v33  ;;  %2175 = vmatmul.mubr.f32.gmra.mrb[80].mxu1 %v1509_v33 }
 0x276   : > { %1923 = vmatprep.mubr.f32.mxu0 %v3912_v32  ;;  %2180 = vmatprep.mubr.f32.mxu1 %v3912_v32 }
 0x279   : > { %1924 = vmatmul.mubr.f32.gmra.mrb[82].mxu0 %v1510_v45  ;;  %2181 = vmatmul.mubr.f32.gmra.mrb[82].mxu1 %v1510_v45 }
 0x27a   : > { %1929 = vmatprep.mubr.f32.mxu0 %v3912_v32  ;;  %2186 = vmatprep.mubr.f32.mxu1 %v3912_v32 }
 0x27d   : > { %1930 = vmatmul.mubr.f32.gmra.mrb[84].mxu0 %v1511_v34  ;;  %2187 = vmatmul.mubr.f32.gmra.mrb[84].mxu1 %v1511_v34 }
 0x27e   : > { %1935 = vmatprep.mubr.f32.mxu0 %v3912_v32  ;;  %2192 = vmatprep.mubr.f32.mxu1 %v3912_v32 }
 0x281   : > { %1936 = vmatmul.mubr.f32.gmra.mrb[86].mxu0 %v1512_v39  ;;  %2193 = vmatmul.mubr.f32.gmra.mrb[86].mxu1 %v1512_v39 }
 0x282   : > { %1941 = vmatprep.mubr.f32.mxu0 %v3912_v32  ;;  %2198 = vmatprep.mubr.f32.mxu1 %v3912_v32 }
 0x285   : > { %1942 = vmatmul.mubr.f32.gmra.mrb[88].mxu0 %v1513_v37  ;;  %2199 = vmatmul.mubr.f32.gmra.mrb[88].mxu1 %v1513_v37 }
 0x286   : > { %1947 = vmatprep.mubr.f32.mxu0 %v3912_v32  ;;  %2204 = vmatprep.mubr.f32.mxu1 %v3912_v32 }
 0x289   : > { %1948 = vmatmul.mubr.f32.gmra.mrb[90].mxu0 %v1514_v46  ;;  %2205 = vmatmul.mubr.f32.gmra.mrb[90].mxu1 %v1514_v46 }
 0x28a   : > { %1953 = vmatprep.mubr.f32.mxu0 %v3912_v32  ;;  %2210 = vmatprep.mubr.f32.mxu1 %v3912_v32 }
 0x28d   : > { %1954 = vmatmul.mubr.f32.gmra.mrb[92].mxu0 %v1515_v41  ;;  %2211 = vmatmul.mubr.f32.gmra.mrb[92].mxu1 %v1515_v41 }
 0x28e   : > { %1959 = vmatprep.mubr.f32.mxu0 %v3912_v32  ;;  %2216 = vmatprep.mubr.f32.mxu1 %v3912_v32 }
 0x291   : > { %1960 = vmatmul.mubr.f32.gmra.mrb[94].mxu0 %v1516_v40  ;;  %2217 = vmatmul.mubr.f32.gmra.mrb[94].mxu1 %v1516_v40 }
 0x292   : > { %2543 = vmatprep.mubr.f32.mxu0 %v2352_v44  ;;  %2704 = vmatprep.mubr.f32.mxu1 %v2352_v44 }
 0x2e8   : > { %v1775_v21 = vpop.f32.mrb[32].mxu0  ;;  %v2032_v12 = vpop.f32.mrb[32].mxu1 }
 0x2e9   : > { %v1777_v13 = vpop.f32.mrb[33].mxu0  ;;  %v2034_v15 = vpop.f32.mrb[33].mxu1  ;;  %v1776_v25 = vadd.f32 %v1775_v21, %v1552_v61  ;;  %v2033_v11 = vadd.f32 %v2032_v12, %v1552_v61 }
 0x2ea   : > { %v1778_v22 = vadd.f32 %v1777_v13, %v1552_v61  ;;  %v2035_v26 = vadd.f32 %v2034_v15, %v1552_v61  ;;  %v1572_v21 = vpop.permute.xlu1 %1571  ;;  %v1577_v15 = vpop.permute.xlu0 %1576 }
 0x2eb   : > { %v2223_v16 = vmax.f32 %v1776_v25, 0.0  ;;  %v2225_v62 = vmax.f32 %v2033_v11, 0.0 }
 0x2ec   : > { %v1781_v27 = vpop.f32.mrb[34].mxu0  ;;  %v2038_v8 = vpop.f32.mrb[34].mxu1  ;;  %v2224_v18 = vmax.f32 %v1778_v22, 0.0  ;;  %v2226_v30 = vmax.f32 %v2035_v26, 0.0 }
 0x2ed   : > { %v1782_v28 = vadd.f32 %v1781_v27, %v1557_v2  ;;  %v2039_v49 = vadd.f32 %v2038_v8, %v1557_v2  ;;  %v1783_v29 = vpop.f32.mrb[35].mxu0  ;;  %v2040_v50 = vpop.f32.mrb[35].mxu1 }
 0x2ee   : > { %v1784_v51 = vadd.f32 %v1783_v29, %v1557_v2  ;;  %v2041_v57 = vadd.f32 %v2040_v50, %v1557_v2 }
 0x2ef   : > { %v2227_v17 = vmax.f32 %v1782_v28, 0.0  ;;  %v2229_v24 = vmax.f32 %v2039_v49, 0.0 }
 0x2f0   : > { %v2228_v19 = vmax.f32 %v1784_v51, 0.0  ;;  %v2230_v10 = vmax.f32 %v2041_v57, 0.0  ;;  %v1787_v47 = vpop.f32.mrb[36].mxu0  ;;  %v2044_v52 = vpop.f32.mrb[36].mxu1 }
 0x2f1   : > { %v3560_v38 = vpack.c.bf16 %v2227_v17, %v2223_v16  ;;  %v3624_v54 = vpack.c.bf16 %v2229_v24, %v2225_v62  ;;  %v1789_v31 = vpop.f32.mrb[37].mxu0  ;;  %v2046_v60 = vpop.f32.mrb[37].mxu1  ;;  %v1788_v56 = vadd.f32 %v1787_v47, %v1562_v3  ;;  %v2045_v36 = vadd.f32 %v2044_v52, %v1562_v3 }
 0x2f2   : > { %v3558_v53 = vpack.c.bf16 %v2228_v19, %v2224_v18  ;;  %v3622_v58 = vpack.c.bf16 %v2230_v10, %v2226_v30  ;;  %v1790_v55 = vadd.f32 %v1789_v31, %v1562_v3  ;;  %v2047_v0 = vadd.f32 %v2046_v60, %v1562_v3  ;;  %v1587_v3 = vpop.permute.xlu0 %1586 }
 0x2f3   : > { %v2231_v20 = vmax.f32 %v1788_v56, 0.0  ;;  %v2233_v14 = vmax.f32 %v2045_v36, 0.0 }
 0x2f4   : > { %v1793_v48 = vpop.f32.mrb[38].mxu0  ;;  %v2050_v7 = vpop.f32.mrb[38].mxu1  ;;  %3559 = vmatprep.subr.bf16.mxu0 %v3558_v53  ;;  %3623 = vmatprep.subr.bf16.mxu1 %v3622_v58  ;;  %v2232_v23 = vmax.f32 %v1790_v55, 0.0  ;;  %v2234_v9 = vmax.f32 %v2047_v0, 0.0 }
 0x2f5   : > { %v1794_v6 = vadd.f32 %v1793_v48, %v1567_v35  ;;  %v2051_v5 = vadd.f32 %v2050_v7, %v1567_v35  ;;  %v1795_v42 = vpop.f32.mrb[39].mxu0  ;;  %v2052_v43 = vpop.f32.mrb[39].mxu1  ;;  %3561 = vmatpush1.bf16.msra.mxu0 %v3560_v38  ;;  %3625 = vmatpush1.bf16.msra.mxu1 %v3624_v54 }
 0x2f6   : > { %v1796_v63 = vadd.f32 %v1795_v42, %v1567_v35  ;;  %v2053_v4 = vadd.f32 %v2052_v43, %v1567_v35  ;;  %v1582_v54 = vpop.permute.xlu1 %1581 }
 0x2f7   : > { %v2235_v59 = vmax.f32 %v1794_v6, 0.0  ;;  %v2237_v1 = vmax.f32 %v2051_v5, 0.0 }
 0x2f8   : > { %v2236_v33 = vmax.f32 %v1796_v63, 0.0  ;;  %v2238_v45 = vmax.f32 %v2053_v4, 0.0  ;;  %v1799_v34 = vpop.f32.mrb[40].mxu0  ;;  %v2056_v39 = vpop.f32.mrb[40].mxu1 }
 0x2f9   : > { %v3564_v37 = vpack.c.bf16 %v2235_v59, %v2231_v20  ;;  %v3628_v46 = vpack.c.bf16 %v2237_v1, %v2233_v14  ;;  %v1801_v41 = vpop.f32.mrb[41].mxu0  ;;  %v2058_v40 = vpop.f32.mrb[41].mxu1  ;;  %v1800_v61 = vadd.f32 %v1799_v34, %v1572_v21  ;;  %v2057_v2 = vadd.f32 %v2056_v39, %v1572_v21 }
 0x2fa   : > { %v3562_v12 = vpack.c.bf16 %v2236_v33, %v2232_v23  ;;  %v3626_v13 = vpack.c.bf16 %v2238_v45, %v2234_v9  ;;  %v1802_v25 = vadd.f32 %v1801_v41, %v1572_v21  ;;  %v2059_v11 = vadd.f32 %v2058_v40, %v1572_v21  ;;  %v1597_v21 = vpop.permute.xlu0 %1596 }
 0x2fb   : > { %v2239_v44 = vmax.f32 %v1800_v61, 0.0  ;;  %v2241_v51 = vmax.f32 %v2057_v2, 0.0 }
 0x2fc   : > { %v1805_v22 = vpop.f32.mrb[42].mxu0  ;;  %v2062_v26 = vpop.f32.mrb[42].mxu1  ;;  %3563 = vmatprep.subr.bf16.mxu0 %v3562_v12  ;;  %3627 = vmatprep.subr.bf16.mxu1 %v3626_v13  ;;  %v2240_v62 = vmax.f32 %v1802_v25, 0.0  ;;  %v2242_v17 = vmax.f32 %v2059_v11, 0.0 }
 0x2fd   : > { %v1806_v27 = vadd.f32 %v1805_v22, %v1577_v15  ;;  %v2063_v8 = vadd.f32 %v2062_v26, %v1577_v15  ;;  %v1807_v28 = vpop.f32.mrb[43].mxu0  ;;  %v2064_v49 = vpop.f32.mrb[43].mxu1  ;;  %3565 = vmatpush1.bf16.msra.mxu0 %v3564_v37  ;;  %3629 = vmatpush1.bf16.msra.mxu1 %v3628_v46 }
 0x2fe   : > { %v1808_v29 = vadd.f32 %v1807_v28, %v1577_v15  ;;  %v2065_v50 = vadd.f32 %v2064_v49, %v1577_v15  ;;  %v1592_v46 = vpop.permute.xlu1 %1591 }
 0x2ff   : > { %v2243_v57 = vmax.f32 %v1806_v27, 0.0  ;;  %v2245_v16 = vmax.f32 %v2063_v8, 0.0 }
 0x300   : > { %v2244_v24 = vmax.f32 %v1808_v29, 0.0  ;;  %v2246_v18 = vmax.f32 %v2065_v50, 0.0  ;;  %v1811_v30 = vpop.f32.mrb[44].mxu0  ;;  %v2068_v19 = vpop.f32.mrb[44].mxu1 }
 0x301   : > { %v3568_v10 = vpack.c.bf16 %v2243_v57, %v2239_v44  ;;  %v3632_v47 = vpack.c.bf16 %v2245_v16, %v2241_v51  ;;  %v1813_v52 = vpop.f32.mrb[45].mxu0  ;;  %v2070_v38 = vpop.f32.mrb[45].mxu1  ;;  %v1812_v53 = vadd.f32 %v1811_v30, %v1582_v54  ;;  %v2069_v58 = vadd.f32 %v2068_v19, %v1582_v54 }
 0x302   : > { %v3566_v31 = vpack.c.bf16 %v2244_v24, %v2240_v62  ;;  %v3630_v60 = vpack.c.bf16 %v2246_v18, %v2242_v17  ;;  %v1814_v35 = vadd.f32 %v1813_v52, %v1582_v54  ;;  %v2071_v56 = vadd.f32 %v2070_v38, %v1582_v54  ;;  %v1607_v54 = vpop.permute.xlu0 %1606 }
 0x303   : > { %v2247_v43 = vmax.f32 %v1812_v53, 0.0  ;;  %v2249_v63 = vmax.f32 %v2069_v58, 0.0 }
 0x304   : > { %v1817_v36 = vpop.f32.mrb[46].mxu0  ;;  %v2074_v55 = vpop.f32.mrb[46].mxu1  ;;  %3567 = vmatprep.subr.bf16.mxu0 %v3566_v31  ;;  %3631 = vmatprep.subr.bf16.mxu1 %v3630_v60  ;;  %v2248_v14 = vmax.f32 %v1814_v35, 0.0  ;;  %v2250_v59 = vmax.f32 %v2071_v56, 0.0 }
 0x305   : > { %v1818_v0 = vadd.f32 %v1817_v36, %v1587_v3  ;;  %v2075_v48 = vadd.f32 %v2074_v55, %v1587_v3  ;;  %v1819_v7 = vpop.f32.mrb[47].mxu0  ;;  %v2076_v6 = vpop.f32.mrb[47].mxu1  ;;  %3569 = vmatpush1.bf16.msra.mxu0 %v3568_v10  ;;  %3633 = vmatpush1.bf16.msra.mxu1 %v3632_v47 }
 0x306   : > { %v1820_v5 = vadd.f32 %v1819_v7, %v1587_v3  ;;  %v2077_v42 = vadd.f32 %v2076_v6, %v1587_v3  ;;  %v1602_v47 = vpop.permute.xlu1 %1601 }
 0x307   : > { %v2251_v4 = vmax.f32 %v1818_v0, 0.0  ;;  %v2253_v20 = vmax.f32 %v2075_v48, 0.0 }
 0x308   : > { %v2252_v1 = vmax.f32 %v1820_v5, 0.0  ;;  %v2254_v23 = vmax.f32 %v2077_v42, 0.0  ;;  %v1823_v9 = vpop.f32.mrb[48].mxu0  ;;  %v2080_v33 = vpop.f32.mrb[48].mxu1 }
 0x309   : > { %v3572_v45 = vpack.c.bf16 %v2251_v4, %v2247_v43  ;;  %v3636_v34 = vpack.c.bf16 %v2253_v20, %v2249_v63  ;;  %v1825_v39 = vpop.f32.mrb[49].mxu0  ;;  %v2082_v37 = vpop.f32.mrb[49].mxu1  ;;  %v1824_v12 = vadd.f32 %v1823_v9, %v1592_v46  ;;  %v2081_v13 = vadd.f32 %v2080_v33, %v1592_v46 }
 0x30a   : > { %v3570_v41 = vpack.c.bf16 %v2252_v1, %v2248_v14  ;;  %v3634_v40 = vpack.c.bf16 %v2254_v23, %v2250_v59  ;;  %v1826_v15 = vadd.f32 %v1825_v39, %v1592_v46  ;;  %v2083_v61 = vadd.f32 %v2082_v37, %v1592_v46  ;;  %v1617_v46 = vpop.permute.xlu0 %1616 }
 0x30b   : > { %v2255_v49 = vmax.f32 %v1824_v12, 0.0  ;;  %v2257_v29 = vmax.f32 %v2081_v13, 0.0 }
 0x30c   : > { %v1829_v2 = vpop.f32.mrb[50].mxu0  ;;  %v2086_v25 = vpop.f32.mrb[50].mxu1  ;;  %3571 = vmatprep.subr.bf16.mxu0 %v3570_v41  ;;  %3635 = vmatprep.subr.bf16.mxu1 %v3634_v40  ;;  %v2256_v51 = vmax.f32 %v1826_v15, 0.0  ;;  %v2258_v57 = vmax.f32 %v2083_v61, 0.0 }
 0x30d   : > { %v1830_v11 = vadd.f32 %v1829_v2, %v1597_v21  ;;  %v2087_v22 = vadd.f32 %v2086_v25, %v1597_v21  ;;  %v1831_v26 = vpop.f32.mrb[51].mxu0  ;;  %v2088_v27 = vpop.f32.mrb[51].mxu1  ;;  %3573 = vmatpush1.bf16.msra.mxu0 %v3572_v45  ;;  %3637 = vmatpush1.bf16.msra.mxu1 %v3636_v34 }
 0x30e   : > { %v1832_v8 = vadd.f32 %v1831_v26, %v1597_v21  ;;  %v2089_v28 = vadd.f32 %v2088_v27, %v1597_v21  ;;  %v1612_v34 = vpop.permute.xlu1 %1611 }
 0x30f   : > { %v2259_v50 = vmax.f32 %v1830_v11, 0.0  ;;  %v2261_v44 = vmax.f32 %v2087_v22, 0.0 }
 0x310   : > { %v2260_v16 = vmax.f32 %v1832_v8, 0.0  ;;  %v2262_v62 = vmax.f32 %v2089_v28, 0.0  ;;  %v1835_v17 = vpop.f32.mrb[52].mxu0  ;;  %v2092_v24 = vpop.f32.mrb[52].mxu1 }
 0x311   : > { %v3576_v18 = vpack.c.bf16 %v2259_v50, %v2255_v49  ;;  %v3640_v30 = vpack.c.bf16 %v2261_v44, %v2257_v29  ;;  %v1837_v19 = vpop.f32.mrb[53].mxu0  ;;  %v2094_v10 = vpop.f32.mrb[53].mxu1  ;;  %v1836_v31 = vadd.f32 %v1835_v17, %v1602_v47  ;;  %v2093_v60 = vadd.f32 %v2092_v24, %v1602_v47 }
 0x312   : > { %v3574_v52 = vpack.c.bf16 %v2260_v16, %v2256_v51  ;;  %v3638_v38 = vpack.c.bf16 %v2262_v62, %v2258_v57  ;;  %v1838_v3 = vadd.f32 %v1837_v19, %v1602_v47  ;;  %v2095_v53 = vadd.f32 %v2094_v10, %v1602_v47  ;;  %v1627_v47 = vpop.permute.xlu0 %1626 }
 0x313   : > { %v2263_v6 = vmax.f32 %v1836_v31, 0.0  ;;  %v2265_v5 = vmax.f32 %v2093_v60, 0.0 }
 0x314   : > { %v1841_v58 = vpop.f32.mrb[54].mxu0  ;;  %v2098_v35 = vpop.f32.mrb[54].mxu1  ;;  %3575 = vmatprep.subr.bf16.mxu0 %v3574_v52  ;;  %3639 = vmatprep.subr.bf16.mxu1 %v3638_v38  ;;  %v2264_v63 = vmax.f32 %v1838_v3, 0.0  ;;  %v2266_v4 = vmax.f32 %v2095_v53, 0.0 }
 0x315   : > { %v1842_v56 = vadd.f32 %v1841_v58, %v1607_v54  ;;  %v2099_v36 = vadd.f32 %v2098_v35, %v1607_v54  ;;  %v1843_v55 = vpop.f32.mrb[55].mxu0  ;;  %v2100_v0 = vpop.f32.mrb[55].mxu1  ;;  %3577 = vmatpush1.bf16.msra.mxu0 %v3576_v18  ;;  %3641 = vmatpush1.bf16.msra.mxu1 %v3640_v30 }
 0x316   : > { %v1844_v48 = vadd.f32 %v1843_v55, %v1607_v54  ;;  %v2101_v7 = vadd.f32 %v2100_v0, %v1607_v54  ;;  %v1622_v30 = vpop.permute.xlu1 %1621 }
 0x317   : > { %v2267_v42 = vmax.f32 %v1842_v56, 0.0  ;;  %v2269_v43 = vmax.f32 %v2099_v36, 0.0 }
 0x318   : > { %v2268_v20 = vmax.f32 %v1844_v48, 0.0  ;;  %v2270_v14 = vmax.f32 %v2101_v7, 0.0  ;;  %v1847_v59 = vpop.f32.mrb[56].mxu0  ;;  %v2104_v1 = vpop.f32.mrb[56].mxu1 }
 0x319   : > { %v3580_v23 = vpack.c.bf16 %v2267_v42, %v2263_v6  ;;  %v3644_v9 = vpack.c.bf16 %v2269_v43, %v2265_v5  ;;  %v1849_v33 = vpop.f32.mrb[57].mxu0  ;;  %v2106_v45 = vpop.f32.mrb[57].mxu1  ;;  %v1848_v41 = vadd.f32 %v1847_v59, %v1612_v34  ;;  %v2105_v40 = vadd.f32 %v2104_v1, %v1612_v34 }
 0x31a   : > { %v3578_v39 = vpack.c.bf16 %v2268_v20, %v2264_v63  ;;  %v3642_v37 = vpack.c.bf16 %v2270_v14, %v2266_v4  ;;  %v1850_v21 = vadd.f32 %v1849_v33, %v1612_v34  ;;  %v2107_v12 = vadd.f32 %v2106_v45, %v1612_v34  ;;  %v1637_v34 = vpop.permute.xlu0 %1636 }
 0x31b   : > { %v2271_v27 = vmax.f32 %v1848_v41, 0.0  ;;  %v2273_v8 = vmax.f32 %v2105_v40, 0.0 }
 0x31c   : > { %v1853_v13 = vpop.f32.mrb[58].mxu0  ;;  %v2110_v15 = vpop.f32.mrb[58].mxu1  ;;  %3579 = vmatprep.subr.bf16.mxu0 %v3578_v39  ;;  %3643 = vmatprep.subr.bf16.mxu1 %v3642_v37  ;;  %v2272_v29 = vmax.f32 %v1850_v21, 0.0  ;;  %v2274_v50 = vmax.f32 %v2107_v12, 0.0 }
 0x31d   : > { %v1854_v61 = vadd.f32 %v1853_v13, %v1617_v46  ;;  %v2111_v2 = vadd.f32 %v2110_v15, %v1617_v46  ;;  %v1855_v25 = vpop.f32.mrb[59].mxu0  ;;  %v2112_v11 = vpop.f32.mrb[59].mxu1  ;;  %3581 = vmatpush1.bf16.msra.mxu0 %v3580_v23  ;;  %3645 = vmatpush1.bf16.msra.mxu1 %v3644_v9 }
 0x31e   : > { %v1856_v22 = vadd.f32 %v1855_v25, %v1617_v46  ;;  %v2113_v26 = vadd.f32 %v2112_v11, %v1617_v46  ;;  %v1632_v9 = vpop.permute.xlu1 %1631 }
 0x31f   : > { %v2275_v28 = vmax.f32 %v1854_v61, 0.0  ;;  %v2277_v49 = vmax.f32 %v2111_v2, 0.0 }
 0x320   : > { %v2276_v44 = vmax.f32 %v1856_v22, 0.0  ;;  %v2278_v51 = vmax.f32 %v2113_v26, 0.0  ;;  %v1859_v57 = vpop.f32.mrb[60].mxu0  ;;  %v2116_v16 = vpop.f32.mrb[60].mxu1 }
 0x321   : > { %v3584_v62 = vpack.c.bf16 %v2275_v28, %v2271_v27  ;;  %v3648_v17 = vpack.c.bf16 %v2277_v49, %v2273_v8  ;;  %v1861_v24 = vpop.f32.mrb[61].mxu0  ;;  %v2118_v18 = vpop.f32.mrb[61].mxu1  ;;  %v1860_v52 = vadd.f32 %v1859_v57, %v1622_v30  ;;  %v2117_v38 = vadd.f32 %v2116_v16, %v1622_v30 }
 0x322   : > { %v3582_v19 = vpack.c.bf16 %v2276_v44, %v2272_v29  ;;  %v3646_v10 = vpack.c.bf16 %v2278_v51, %v2274_v50  ;;  %v1862_v54 = vadd.f32 %v1861_v24, %v1622_v30  ;;  %v2119_v31 = vadd.f32 %v2118_v18, %v1622_v30  ;;  %v1647_v30 = vpop.permute.xlu0 %1646 }
 0x323   : > { %v2279_v0 = vmax.f32 %v1860_v52, 0.0  ;;  %v2281_v48 = vmax.f32 %v2117_v38, 0.0 }
 0x324   : > { %v1865_v60 = vpop.f32.mrb[62].mxu0  ;;  %v2122_v3 = vpop.f32.mrb[62].mxu1  ;;  %3583 = vmatprep.subr.bf16.mxu0 %v3582_v19  ;;  %3647 = vmatprep.subr.bf16.mxu1 %v3646_v10  ;;  %v2280_v5 = vmax.f32 %v1862_v54, 0.0  ;;  %v2282_v42 = vmax.f32 %v2119_v31, 0.0 }
 0x325   : > { %v1866_v53 = vadd.f32 %v1865_v60, %v1627_v47  ;;  %v2123_v58 = vadd.f32 %v2122_v3, %v1627_v47  ;;  %v1867_v35 = vpop.f32.mrb[63].mxu0  ;;  %v2124_v56 = vpop.f32.mrb[63].mxu1  ;;  %3585 = vmatpush1.bf16.msra.mxu0 %v3584_v62  ;;  %3649 = vmatpush1.bf16.msra.mxu1 %v3648_v17 }
 0x326   : > { %v1868_v36 = vadd.f32 %v1867_v35, %v1627_v47  ;;  %v2125_v55 = vadd.f32 %v2124_v56, %v1627_v47  ;;  %v1642_v17 = vpop.permute.xlu1 %1641 }
 0x327   : > { %v2283_v7 = vmax.f32 %v1866_v53, 0.0  ;;  %v2285_v6 = vmax.f32 %v2123_v58, 0.0 }
 0x328   : > { %v2284_v43 = vmax.f32 %v1868_v36, 0.0  ;;  %v2286_v63 = vmax.f32 %v2125_v55, 0.0  ;;  %v1871_v4 = vpop.f32.mrb[64].mxu0  ;;  %v2128_v20 = vpop.f32.mrb[64].mxu1 }
 0x329   : > { %v3588_v14 = vpack.c.bf16 %v2283_v7, %v2279_v0  ;;  %v3652_v59 = vpack.c.bf16 %v2285_v6, %v2281_v48  ;;  %v1873_v1 = vpop.f32.mrb[65].mxu0  ;;  %v2130_v23 = vpop.f32.mrb[65].mxu1  ;;  %v1872_v39 = vadd.f32 %v1871_v4, %v1632_v9  ;;  %v2129_v37 = vadd.f32 %v2128_v20, %v1632_v9 }
 0x32a   : > { %v3586_v33 = vpack.c.bf16 %v2284_v43, %v2280_v5  ;;  %v3650_v45 = vpack.c.bf16 %v2286_v63, %v2282_v42  ;;  %v1874_v46 = vadd.f32 %v1873_v1, %v1632_v9  ;;  %v2131_v41 = vadd.f32 %v2130_v23, %v1632_v9  ;;  %v1657_v9 = vpop.permute.xlu0 %1656 }
 0x32b   : > { %v2287_v11 = vmax.f32 %v1872_v39, 0.0  ;;  %v2289_v22 = vmax.f32 %v2129_v37, 0.0 }
 0x32c   : > { %v1877_v40 = vpop.f32.mrb[66].mxu0  ;;  %v2134_v21 = vpop.f32.mrb[66].mxu1  ;;  %3587 = vmatprep.subr.bf16.mxu0 %v3586_v33  ;;  %3651 = vmatprep.subr.bf16.mxu1 %v3650_v45  ;;  %v2288_v8 = vmax.f32 %v1874_v46, 0.0  ;;  %v2290_v28 = vmax.f32 %v2131_v41, 0.0 }
 0x32d   : > { %v1878_v12 = vadd.f32 %v1877_v40, %v1637_v34  ;;  %v2135_v13 = vadd.f32 %v2134_v21, %v1637_v34  ;;  %v1879_v15 = vpop.f32.mrb[67].mxu0  ;;  %v2136_v61 = vpop.f32.mrb[67].mxu1  ;;  %3589 = vmatpush1.bf16.msra.mxu0 %v3588_v14  ;;  %3653 = vmatpush1.bf16.msra.mxu1 %v3652_v59 }
 0x32e   : > { %v1880_v2 = vadd.f32 %v1879_v15, %v1637_v34  ;;  %v2137_v25 = vadd.f32 %v2136_v61, %v1637_v34  ;;  %v1652_v59 = vpop.permute.xlu1 %1651 }
 0x32f   : > { %v2291_v26 = vmax.f32 %v1878_v12, 0.0  ;;  %v2293_v27 = vmax.f32 %v2135_v13, 0.0 }
 0x330   : > { %v2292_v49 = vmax.f32 %v1880_v2, 0.0  ;;  %v2294_v29 = vmax.f32 %v2137_v25, 0.0  ;;  %v1883_v50 = vpop.f32.mrb[68].mxu0  ;;  %v2140_v44 = vpop.f32.mrb[68].mxu1 }
 0x331   : > { %v3592_v51 = vpack.c.bf16 %v2291_v26, %v2287_v11  ;;  %v3656_v57 = vpack.c.bf16 %v2293_v27, %v2289_v22  ;;  %v1885_v16 = vpop.f32.mrb[69].mxu0  ;;  %v2142_v62 = vpop.f32.mrb[69].mxu1  ;;  %v1884_v19 = vadd.f32 %v1883_v50, %v1642_v17  ;;  %v2141_v10 = vadd.f32 %v2140_v44, %v1642_v17 }
 0x332   : > { %v3590_v24 = vpack.c.bf16 %v2292_v49, %v2288_v8  ;;  %v3654_v18 = vpack.c.bf16 %v2294_v29, %v2290_v28  ;;  %v1886_v47 = vadd.f32 %v1885_v16, %v1642_v17  ;;  %v2143_v52 = vadd.f32 %v2142_v62, %v1642_v17  ;;  %v1667_v17 = vpop.permute.xlu0 %1666 }
 0x333   : > { %v2295_v56 = vmax.f32 %v1884_v19, 0.0  ;;  %v2297_v36 = vmax.f32 %v2141_v10, 0.0 }
 0x334   : > { %v1889_v38 = vpop.f32.mrb[70].mxu0  ;;  %v2146_v54 = vpop.f32.mrb[70].mxu1  ;;  %3591 = vmatprep.subr.bf16.mxu0 %v3590_v24  ;;  %3655 = vmatprep.subr.bf16.mxu1 %v3654_v18  ;;  %v2296_v48 = vmax.f32 %v1886_v47, 0.0  ;;  %v2298_v7 = vmax.f32 %v2143_v52, 0.0 }
 0x335   : > { %v1890_v31 = vadd.f32 %v1889_v38, %v1647_v30  ;;  %v2147_v60 = vadd.f32 %v2146_v54, %v1647_v30  ;;  %v1891_v3 = vpop.f32.mrb[71].mxu0  ;;  %v2148_v53 = vpop.f32.mrb[71].mxu1  ;;  %3593 = vmatpush1.bf16.msra.mxu0 %v3592_v51  ;;  %3657 = vmatpush1.bf16.msra.mxu1 %v3656_v57 }
 0x336   : > { %v1892_v58 = vadd.f32 %v1891_v3, %v1647_v30  ;;  %v2149_v35 = vadd.f32 %v2148_v53, %v1647_v30  ;;  %v1662_v57 = vpop.permute.xlu1 %1661 }
 0x337   : > { %v2299_v55 = vmax.f32 %v1890_v31, 0.0  ;;  %v2301_v0 = vmax.f32 %v2147_v60, 0.0 }
 0x338   : > { %v2300_v6 = vmax.f32 %v1892_v58, 0.0  ;;  %v2302_v5 = vmax.f32 %v2149_v35, 0.0  ;;  %v1895_v42 = vpop.f32.mrb[72].mxu0  ;;  %v2152_v43 = vpop.f32.mrb[72].mxu1 }
 0x339   : > { %v3596_v63 = vpack.c.bf16 %v2299_v55, %v2295_v56  ;;  %v3660_v4 = vpack.c.bf16 %v2301_v0, %v2297_v36  ;;  %v1897_v20 = vpop.f32.mrb[73].mxu0  ;;  %v2154_v14 = vpop.f32.mrb[73].mxu1  ;;  %v1896_v33 = vadd.f32 %v1895_v42, %v1652_v59  ;;  %v2153_v45 = vadd.f32 %v2152_v43, %v1652_v59 }
 0x33a   : > { %v3594_v1 = vpack.c.bf16 %v2300_v6, %v2296_v48  ;;  %v3658_v23 = vpack.c.bf16 %v2302_v5, %v2298_v7  ;;  %v1898_v34 = vadd.f32 %v1897_v20, %v1652_v59  ;;  %v2155_v39 = vadd.f32 %v2154_v14, %v1652_v59  ;;  %v1677_v59 = vpop.permute.xlu0 %1676 }
 0x33b   : > { %v2303_v61 = vmax.f32 %v1896_v33, 0.0  ;;  %v2305_v2 = vmax.f32 %v2153_v45, 0.0 }
 0x33c   : > { %v1901_v37 = vpop.f32.mrb[74].mxu0  ;;  %v2158_v46 = vpop.f32.mrb[74].mxu1  ;;  %3595 = vmatprep.subr.bf16.mxu0 %v3594_v1  ;;  %3659 = vmatprep.subr.bf16.mxu1 %v3658_v23  ;;  %v2304_v22 = vmax.f32 %v1898_v34, 0.0  ;;  %v2306_v26 = vmax.f32 %v2155_v39, 0.0 }
 0x33d   : > { %v1902_v41 = vadd.f32 %v1901_v37, %v1657_v9  ;;  %v2159_v40 = vadd.f32 %v2158_v46, %v1657_v9  ;;  %v1903_v21 = vpop.f32.mrb[75].mxu0  ;;  %v2160_v12 = vpop.f32.mrb[75].mxu1  ;;  %3597 = vmatpush1.bf16.msra.mxu0 %v3596_v63  ;;  %3661 = vmatpush1.bf16.msra.mxu1 %v3660_v4 }
 0x33e   : > { %v1904_v13 = vadd.f32 %v1903_v21, %v1657_v9  ;;  %v2161_v15 = vadd.f32 %v2160_v12, %v1657_v9  ;;  %v1672_v4 = vpop.permute.xlu1 %1671 }
 0x33f   : > { %v2307_v25 = vmax.f32 %v1902_v41, 0.0  ;;  %v2309_v11 = vmax.f32 %v2159_v40, 0.0 }
 0x340   : > { %v2308_v27 = vmax.f32 %v1904_v13, 0.0  ;;  %v2310_v8 = vmax.f32 %v2161_v15, 0.0  ;;  %v1907_v28 = vpop.f32.mrb[76].mxu0  ;;  %v2164_v49 = vpop.f32.mrb[76].mxu1 }
 0x341   : > { %v3600_v29 = vpack.c.bf16 %v2307_v25, %v2303_v61  ;;  %v3664_v50 = vpack.c.bf16 %v2309_v11, %v2305_v2  ;;  %v1909_v44 = vpop.f32.mrb[77].mxu0  ;;  %v2166_v51 = vpop.f32.mrb[77].mxu1  ;;  %v1908_v24 = vadd.f32 %v1907_v28, %v1662_v57  ;;  %v2165_v18 = vadd.f32 %v2164_v49, %v1662_v57 }
 0x342   : > { %v3598_v16 = vpack.c.bf16 %v2308_v27, %v2304_v22  ;;  %v3662_v62 = vpack.c.bf16 %v2310_v8, %v2306_v26  ;;  %v1910_v30 = vadd.f32 %v1909_v44, %v1662_v57  ;;  %v2167_v19 = vadd.f32 %v2166_v51, %v1662_v57  ;;  %v1687_v57 = vpop.permute.xlu0 %1686 }
 0x343   : > { %v2311_v53 = vmax.f32 %v1908_v24, 0.0  ;;  %v2313_v58 = vmax.f32 %v2165_v18, 0.0 }
 0x344   : > { %v1913_v10 = vpop.f32.mrb[78].mxu0  ;;  %v2170_v47 = vpop.f32.mrb[78].mxu1  ;;  %3599 = vmatprep.subr.bf16.mxu0 %v3598_v16  ;;  %3663 = vmatprep.subr.bf16.mxu1 %v3662_v62  ;;  %v2312_v36 = vmax.f32 %v1910_v30, 0.0  ;;  %v2314_v55 = vmax.f32 %v2167_v19, 0.0 }
 0x345   : > { %v1914_v52 = vadd.f32 %v1913_v10, %v1667_v17  ;;  %v2171_v38 = vadd.f32 %v2170_v47, %v1667_v17  ;;  %v1915_v54 = vpop.f32.mrb[79].mxu0  ;;  %v2172_v31 = vpop.f32.mrb[79].mxu1  ;;  %3601 = vmatpush1.bf16.msra.mxu0 %v3600_v29  ;;  %3665 = vmatpush1.bf16.msra.mxu1 %v3664_v50 }
 0x346   : > { %v1916_v60 = vadd.f32 %v1915_v54, %v1667_v17  ;;  %v2173_v3 = vadd.f32 %v2172_v31, %v1667_v17  ;;  %v1682_v50 = vpop.permute.xlu1 %1681 }
 0x347   : > { %v2315_v35 = vmax.f32 %v1914_v52, 0.0  ;;  %v2317_v56 = vmax.f32 %v2171_v38, 0.0 }
 0x348   : > { %v2316_v0 = vmax.f32 %v1916_v60, 0.0  ;;  %v2318_v48 = vmax.f32 %v2173_v3, 0.0  ;;  %v1919_v7 = vpop.f32.mrb[80].mxu0  ;;  %v2176_v6 = vpop.f32.mrb[80].mxu1 }
 0x349   : > { %v3604_v5 = vpack.c.bf16 %v2315_v35, %v2311_v53  ;;  %v3668_v42 = vpack.c.bf16 %v2317_v56, %v2313_v58  ;;  %v1921_v43 = vpop.f32.mrb[81].mxu0  ;;  %v2178_v63 = vpop.f32.mrb[81].mxu1  ;;  %v1920_v1 = vadd.f32 %v1919_v7, %v1672_v4  ;;  %v2177_v23 = vadd.f32 %v2176_v6, %v1672_v4 }
 0x34a   : > { %v3602_v20 = vpack.c.bf16 %v2316_v0, %v2312_v36  ;;  %v3666_v14 = vpack.c.bf16 %v2318_v48, %v2314_v55  ;;  %v1922_v9 = vadd.f32 %v1921_v43, %v1672_v4  ;;  %v2179_v33 = vadd.f32 %v2178_v63, %v1672_v4  ;;  %v1697_v4 = vpop.permute.xlu0 %1696 }
 0x34b   : > { %v2319_v12 = vmax.f32 %v1920_v1, 0.0  ;;  %v2321_v13 = vmax.f32 %v2177_v23, 0.0 }
 0x34c   : > { %v1925_v45 = vpop.f32.mrb[82].mxu0  ;;  %v2182_v34 = vpop.f32.mrb[82].mxu1  ;;  %3603 = vmatprep.subr.bf16.mxu0 %v3602_v20  ;;  %3667 = vmatprep.subr.bf16.mxu1 %v3666_v14  ;;  %v2320_v2 = vmax.f32 %v1922_v9, 0.0  ;;  %v2322_v25 = vmax.f32 %v2179_v33, 0.0 }
 0x34d   : > { %v1926_v39 = vadd.f32 %v1925_v45, %v1677_v59  ;;  %v2183_v37 = vadd.f32 %v2182_v34, %v1677_v59  ;;  %v1927_v46 = vpop.f32.mrb[83].mxu0  ;;  %v2184_v41 = vpop.f32.mrb[83].mxu1  ;;  %3605 = vmatpush1.bf16.msra.mxu0 %v3604_v5  ;;  %3669 = vmatpush1.bf16.msra.mxu1 %v3668_v42 }
 0x34e   : > { %v1928_v40 = vadd.f32 %v1927_v46, %v1677_v59  ;;  %v2185_v21 = vadd.f32 %v2184_v41, %v1677_v59  ;;  %v1692_v42 = vpop.permute.xlu1 %1691 }
 0x34f   : > { %v2323_v15 = vmax.f32 %v1926_v39, 0.0  ;;  %v2325_v61 = vmax.f32 %v2183_v37, 0.0 }
 0x350   : > { %v2324_v11 = vmax.f32 %v1928_v40, 0.0  ;;  %v2326_v22 = vmax.f32 %v2185_v21, 0.0  ;;  %v1931_v26 = vpop.f32.mrb[84].mxu0  ;;  %v2188_v27 = vpop.f32.mrb[84].mxu1 }
 0x351   : > { %v3608_v8 = vpack.c.bf16 %v2323_v15, %v2319_v12  ;;  %v3672_v28 = vpack.c.bf16 %v2325_v61, %v2321_v13  ;;  %v1933_v49 = vpop.f32.mrb[85].mxu0  ;;  %v2190_v29 = vpop.f32.mrb[85].mxu1  ;;  %v1932_v16 = vadd.f32 %v1931_v26, %v1682_v50  ;;  %v2189_v62 = vadd.f32 %v2188_v27, %v1682_v50 }
 0x352   : > { %v3606_v44 = vpack.c.bf16 %v2324_v11, %v2320_v2  ;;  %v3670_v51 = vpack.c.bf16 %v2326_v22, %v2322_v25  ;;  %v1934_v17 = vadd.f32 %v1933_v49, %v1682_v50  ;;  %v2191_v24 = vadd.f32 %v2190_v29, %v1682_v50  ;;  %v1707_v50 = vpop.permute.xlu0 %1706 }
 0x353   : > { %v2327_v31 = vmax.f32 %v1932_v16, 0.0  ;;  %v2329_v60 = vmax.f32 %v2189_v62, 0.0 }
 0x354   : > { %v1937_v18 = vpop.f32.mrb[86].mxu0  ;;  %v2194_v30 = vpop.f32.mrb[86].mxu1  ;;  %3607 = vmatprep.subr.bf16.mxu0 %v3606_v44  ;;  %3671 = vmatprep.subr.bf16.mxu1 %v3670_v51  ;;  %v2328_v58 = vmax.f32 %v1934_v17, 0.0  ;;  %v2330_v35 = vmax.f32 %v2191_v24, 0.0 }
 0x355   : > { %v1938_v19 = vadd.f32 %v1937_v18, %v1687_v57  ;;  %v2195_v10 = vadd.f32 %v2194_v30, %v1687_v57  ;;  %v1939_v47 = vpop.f32.mrb[87].mxu0  ;;  %v2196_v52 = vpop.f32.mrb[87].mxu1  ;;  %3609 = vmatpush1.bf16.msra.mxu0 %v3608_v8  ;;  %3673 = vmatpush1.bf16.msra.mxu1 %v3672_v28 }
 0x356   : > { %v1940_v38 = vadd.f32 %v1939_v47, %v1687_v57  ;;  %v2197_v54 = vadd.f32 %v2196_v52, %v1687_v57  ;;  %v1702_v28 = vpop.permute.xlu1 %1701 }
 0x357   : > { %v2331_v3 = vmax.f32 %v1938_v19, 0.0  ;;  %v2333_v53 = vmax.f32 %v2195_v10, 0.0 }
 0x358   : > { %v2332_v56 = vmax.f32 %v1940_v38, 0.0  ;;  %v2334_v36 = vmax.f32 %v2197_v54, 0.0  ;;  %v1943_v55 = vpop.f32.mrb[88].mxu0  ;;  %v2200_v0 = vpop.f32.mrb[88].mxu1 }
 0x359   : > { %v3612_v48 = vpack.c.bf16 %v2331_v3, %v2327_v31  ;;  %v3676_v7 = vpack.c.bf16 %v2333_v53, %v2329_v60  ;;  %v1945_v6 = vpop.f32.mrb[89].mxu0  ;;  %v2202_v5 = vpop.f32.mrb[89].mxu1  ;;  %v1944_v20 = vadd.f32 %v1943_v55, %v1692_v42  ;;  %v2201_v14 = vadd.f32 %v2200_v0, %v1692_v42  ;;  %v2351_v0 = vld [vmem:[%s5042_s7] sm:$0xff] }
 0x35a   : > { %v3610_v43 = vpack.c.bf16 %v2332_v56, %v2328_v58  ;;  %v3674_v63 = vpack.c.bf16 %v2334_v36, %v2330_v35  ;;  %v1946_v59 = vadd.f32 %v1945_v6, %v1692_v42  ;;  %v2203_v1 = vadd.f32 %v2202_v5, %v1692_v42  ;;  %v2356_v6 = vld [vmem:[%s5042_s7 + $0x28] sm:$0xff]  ;;  %v2355_v5 = vld [vmem:[%s5042_s7 + $0x20] sm:$0xff]  ;;  %v2358_v42 = vld [vmem:[%s5042_s7 + $0x38] sm:$0xff] }
 0x35b   : > { %v2335_v41 = vmax.f32 %v1944_v20, 0.0  ;;  %v2337_v40 = vmax.f32 %v2201_v14, 0.0  ;;  %v2362_v20 = vld [vmem:[%s5042_s7 + $0x58] sm:$0xff]  ;;  %v2361_v14 = vld [vmem:[%s5042_s7 + $0x50] sm:$0xff] }
 0x35c   : > { %v1949_v23 = vpop.f32.mrb[90].mxu0  ;;  %v2206_v9 = vpop.f32.mrb[90].mxu1  ;;  %3611 = vmatprep.subr.bf16.mxu0 %v3610_v43  ;;  %3675 = vmatprep.subr.bf16.mxu1 %v3674_v63  ;;  %v2336_v13 = vmax.f32 %v1946_v59, 0.0  ;;  %v2338_v15 = vmax.f32 %v2203_v1, 0.0  ;;  %v2357_v43 = vld [vmem:[%s5042_s7 + $0x30] sm:$0xff]  ;;  %v2360_v63 = vld [vmem:[%s5042_s7 + $0x48] sm:$0xff] }
 0x35d   : > { %v1950_v33 = vadd.f32 %v1949_v23, %v1697_v4  ;;  %v2207_v45 = vadd.f32 %v2206_v9, %v1697_v4  ;;  %v1951_v34 = vpop.f32.mrb[91].mxu0  ;;  %v2208_v39 = vpop.f32.mrb[91].mxu1  ;;  %3613 = vmatpush1.bf16.msra.mxu0 %v3612_v48  ;;  %3677 = vmatpush1.bf16.msra.mxu1 %v3676_v7  ;;  %v2354_v48 = vld [vmem:[%s5042_s7 + $0x18] sm:$0xff]  ;;  %v2353_v7 = vld [vmem:[%s5042_s7 + $0x10] sm:$0xff]  ;;  %v2364_v59 = vld [vmem:[%s5042_s7 + $0x68] sm:$0xff] }
 0x35e   : > { %v1952_v37 = vadd.f32 %v1951_v34, %v1697_v4  ;;  %v2209_v46 = vadd.f32 %v2208_v39, %v1697_v4  ;;  %v2359_v4 = vld [vmem:[%s5042_s7 + $0x40] sm:$0xff]  ;;  %v2366_v23 = vld [vmem:[%s5042_s7 + $0x78] sm:$0xff]  ;;  %v2365_v9 = vld [vmem:[%s5042_s7 + $0x70] sm:$0xff] }
 0x35f   : > { %v2339_v21 = vmax.f32 %v1950_v33, 0.0  ;;  %v2341_v12 = vmax.f32 %v2207_v45, 0.0  ;;  %v2363_v1 = vld [vmem:[%s5042_s7 + $0x60] sm:$0xff]  ;;  %v2368_v33 = vld [vmem:[%s5042_s7 + $0x88] sm:$0xff]  ;;  %v2370_v34 = vld [vmem:[%s5042_s7 + $0x98] sm:$0xff] }
 0x360   : > { %v2340_v61 = vmax.f32 %v1952_v37, 0.0  ;;  %v2342_v2 = vmax.f32 %v2209_v46, 0.0  ;;  %v1955_v25 = vpop.f32.mrb[92].mxu0  ;;  %v2212_v11 = vpop.f32.mrb[92].mxu1  ;;  %v2367_v45 = vld [vmem:[%s5042_s7 + $0x80] sm:$0xff]  ;;  %v2369_v39 = vld [vmem:[%s5042_s7 + $0x90] sm:$0xff] }
 0x361   : > { %v3616_v22 = vpack.c.bf16 %v2339_v21, %v2335_v41  ;;  %v3680_v26 = vpack.c.bf16 %v2341_v12, %v2337_v40  ;;  %v1957_v27 = vpop.f32.mrb[93].mxu0  ;;  %v2214_v8 = vpop.f32.mrb[93].mxu1  ;;  %v1956_v44 = vadd.f32 %v1955_v25, %v1702_v28  ;;  %v2213_v51 = vadd.f32 %v2212_v11, %v1702_v28  ;;  %v2372_v37 = vld [vmem:[%s5042_s7 + $0xa8] sm:$0xff]  ;;  %v2371_v46 = vld [vmem:[%s5042_s7 + $0xa0] sm:$0xff]  ;;  %v2374_v41 = vld [vmem:[%s5042_s7 + $0xb8] sm:$0xff] }
 0x362   : > { %v3614_v49 = vpack.c.bf16 %v2340_v61, %v2336_v13  ;;  %v3678_v29 = vpack.c.bf16 %v2342_v2, %v2338_v15  ;;  %v1958_v57 = vadd.f32 %v1957_v27, %v1702_v28  ;;  %v2215_v16 = vadd.f32 %v2214_v8, %v1702_v28  ;;  %v2373_v40 = vld [vmem:[%s5042_s7 + $0xb0] sm:$0xff]  ;;  %v2376_v21 = vld [vmem:[%s5042_s7 + $0xc8] sm:$0xff]  ;;  %v2375_v12 = vld [vmem:[%s5042_s7 + $0xc0] sm:$0xff]  ;;  %v2402_v28 = vpop.permute.xlu1 %2401 }
 0x363   : > { %v2343_v52 = vmax.f32 %v1956_v44, 0.0  ;;  %v2345_v38 = vmax.f32 %v2213_v51, 0.0  ;;  %v2378_v13 = vld [vmem:[%s5042_s7 + $0xd8] sm:$0xff]  ;;  %v2377_v15 = vld [vmem:[%s5042_s7 + $0xd0] sm:$0xff]  ;;  %v2380_v61 = vld [vmem:[%s5042_s7 + $0xe8] sm:$0xff] }
 0x364   : > { %v1961_v62 = vpop.f32.mrb[94].mxu0  ;;  %v2218_v17 = vpop.f32.mrb[94].mxu1  ;;  %3615 = vmatprep.subr.bf16.mxu0 %v3614_v49  ;;  %3679 = vmatprep.subr.bf16.mxu1 %v3678_v29  ;;  %v2344_v60 = vmax.f32 %v1958_v57, 0.0  ;;  %v2346_v3 = vmax.f32 %v2215_v16, 0.0  ;;  %v2379_v2 = vld [vmem:[%s5042_s7 + $0xe0] sm:$0xff]  ;;  %v2382_v25 = vld [vmem:[%s5042_s7 + $0xf8] sm:$0xff] }
 0x365   : > { %v1962_v24 = vadd.f32 %v1961_v62, %v1707_v50  ;;  %v2219_v18 = vadd.f32 %v2218_v17, %v1707_v50  ;;  %v1963_v30 = vpop.f32.mrb[95].mxu0  ;;  %v2220_v19 = vpop.f32.mrb[95].mxu1  ;;  %3617 = vmatpush1.bf16.msra.mxu0 %v3616_v22  ;;  %3681 = vmatpush1.bf16.msra.mxu1 %v3680_v26  ;;  %v2381_v11 = vld [vmem:[%s5042_s7 + $0xf0] sm:$0xff] }
 0x366   : > { %v1964_v10 = vadd.f32 %v1963_v30, %v1707_v50  ;;  %v2221_v47 = vadd.f32 %v2220_v19, %v1707_v50  ;;  %v2407_v49 = vpop.permute.xlu0 %2406 }
 0x367   : > { %v2347_v54 = vmax.f32 %v1962_v24, 0.0  ;;  %v2349_v31 = vmax.f32 %v2219_v18, 0.0 }
 0x368   : > { %v2348_v53 = vmax.f32 %v1964_v10, 0.0  ;;  %v2350_v58 = vmax.f32 %v2221_v47, 0.0 }
 0x369   : > { %v3620_v35 = vpack.c.bf16 %v2347_v54, %v2343_v52  ;;  %v3684_v56 = vpack.c.bf16 %v2349_v31, %v2345_v38 }
 0x36a   : > { %v3618_v36 = vpack.c.bf16 %v2348_v53, %v2344_v60  ;;  %v3682_v55 = vpack.c.bf16 %v2350_v58, %v2346_v3 }
 0x36c   : > { %3619 = vmatprep.subr.bf16.mxu0 %v3618_v36  ;;  %3683 = vmatprep.subr.bf16.mxu1 %v3682_v55 }
 0x36d   : > { %3621 = vmatpush1.bf16.msra.mxu0 %v3620_v35  ;;  %3685 = vmatpush1.bf16.msra.mxu1 %v3684_v56 }
 0x370   : > { %2544 = vmatmul.mubr.f32.vlgmr.msra.gmra.mrb[96].mxu0 %v2351_v0  ;;  %2705 = vmatmul.mubr.f32.vlgmr.msra.gmra.mrb[96].mxu1 %v2351_v0  ;;  %v2412_v0 = vpop.permute.xlu1 %2411 }
 0x371   : > { %2549 = vmatprep.mubr.f32.mxu0 %v2354_v48  ;;  %2710 = vmatprep.mubr.f32.mxu1 %v2354_v48 }
 0x374   : > { %2550 = vmatmul.mubr.f32.gmra.mrb[98].mxu0 %v2353_v7  ;;  %2711 = vmatmul.mubr.f32.gmra.mrb[98].mxu1 %v2353_v7 }
 0x375   : > { %2555 = vmatprep.mubr.f32.mxu0 %v2356_v6  ;;  %2716 = vmatprep.mubr.f32.mxu1 %v2356_v6  ;;  %v2417_v6 = vpop.permute.xlu0 %2416 }
 0x378   : > { %2556 = vmatmul.mubr.f32.gmra.mrb[100].mxu0 %v2355_v5  ;;  %2717 = vmatmul.mubr.f32.gmra.mrb[100].mxu1 %v2355_v5 }
 0x379   : > { %2561 = vmatprep.mubr.f32.mxu0 %v2358_v42  ;;  %2722 = vmatprep.mubr.f32.mxu1 %v2358_v42 }
 0x37c   : > { %2562 = vmatmul.mubr.f32.gmra.mrb[102].mxu0 %v2357_v43  ;;  %2723 = vmatmul.mubr.f32.gmra.mrb[102].mxu1 %v2357_v43 }
 0x37d   : > { %2567 = vmatprep.mubr.f32.mxu0 %v2360_v63  ;;  %2728 = vmatprep.mubr.f32.mxu1 %v2360_v63 }
 0x380   : > { %2568 = vmatmul.mubr.f32.gmra.mrb[104].mxu0 %v2359_v4  ;;  %2729 = vmatmul.mubr.f32.gmra.mrb[104].mxu1 %v2359_v4 }
 0x381   : > { %2573 = vmatprep.mubr.f32.mxu0 %v2362_v20  ;;  %2734 = vmatprep.mubr.f32.mxu1 %v2362_v20 }
 0x384   : > { %2574 = vmatmul.mubr.f32.gmra.mrb[106].mxu0 %v2361_v14  ;;  %2735 = vmatmul.mubr.f32.gmra.mrb[106].mxu1 %v2361_v14 }
 0x385   : > { %2579 = vmatprep.mubr.f32.mxu0 %v2364_v59  ;;  %2740 = vmatprep.mubr.f32.mxu1 %v2364_v59 }
 0x388   : > { %2580 = vmatmul.mubr.f32.gmra.mrb[108].mxu0 %v2363_v1  ;;  %2741 = vmatmul.mubr.f32.gmra.mrb[108].mxu1 %v2363_v1 }
 0x389   : > { %2585 = vmatprep.mubr.f32.mxu0 %v2366_v23  ;;  %2746 = vmatprep.mubr.f32.mxu1 %v2366_v23 }
 0x38c   : > { %2586 = vmatmul.mubr.f32.gmra.mrb[110].mxu0 %v2365_v9  ;;  %2747 = vmatmul.mubr.f32.gmra.mrb[110].mxu1 %v2365_v9 }
 0x38d   : > { %2591 = vmatprep.mubr.f32.mxu0 %v2368_v33  ;;  %2752 = vmatprep.mubr.f32.mxu1 %v2368_v33 }
 0x390   : > { %2592 = vmatmul.mubr.f32.gmra.mrb[112].mxu0 %v2367_v45  ;;  %2753 = vmatmul.mubr.f32.gmra.mrb[112].mxu1 %v2367_v45 }
 0x391   : > { %2597 = vmatprep.mubr.f32.mxu0 %v2370_v34  ;;  %2758 = vmatprep.mubr.f32.mxu1 %v2370_v34 }
 0x394   : > { %2598 = vmatmul.mubr.f32.gmra.mrb[114].mxu0 %v2369_v39  ;;  %2759 = vmatmul.mubr.f32.gmra.mrb[114].mxu1 %v2369_v39 }
 0x395   : > { %2603 = vmatprep.mubr.f32.mxu0 %v2372_v37  ;;  %2764 = vmatprep.mubr.f32.mxu1 %v2372_v37 }
 0x398   : > { %2604 = vmatmul.mubr.f32.gmra.mrb[116].mxu0 %v2371_v46  ;;  %2765 = vmatmul.mubr.f32.gmra.mrb[116].mxu1 %v2371_v46 }
 0x399   : > { %2609 = vmatprep.mubr.f32.mxu0 %v2374_v41  ;;  %2770 = vmatprep.mubr.f32.mxu1 %v2374_v41 }
 0x39c   : > { %2610 = vmatmul.mubr.f32.gmra.mrb[118].mxu0 %v2373_v40  ;;  %2771 = vmatmul.mubr.f32.gmra.mrb[118].mxu1 %v2373_v40 }
 0x39d   : > { %2615 = vmatprep.mubr.f32.mxu0 %v2376_v21  ;;  %2776 = vmatprep.mubr.f32.mxu1 %v2376_v21 }
 0x3a0   : > { %2616 = vmatmul.mubr.f32.gmra.mrb[120].mxu0 %v2375_v12  ;;  %2777 = vmatmul.mubr.f32.gmra.mrb[120].mxu1 %v2375_v12 }
 0x3a1   : > { %2621 = vmatprep.mubr.f32.mxu0 %v2378_v13  ;;  %2782 = vmatprep.mubr.f32.mxu1 %v2378_v13 }
 0x3a4   : > { %2622 = vmatmul.mubr.f32.gmra.mrb[122].mxu0 %v2377_v15  ;;  %2783 = vmatmul.mubr.f32.gmra.mrb[122].mxu1 %v2377_v15 }
 0x3a5   : > { %2627 = vmatprep.mubr.f32.mxu0 %v2380_v61  ;;  %2788 = vmatprep.mubr.f32.mxu1 %v2380_v61 }
 0x3a8   : > { %2628 = vmatmul.mubr.f32.gmra.mrb[124].mxu0 %v2379_v2  ;;  %2789 = vmatmul.mubr.f32.gmra.mrb[124].mxu1 %v2379_v2 }
 0x3a9   : > { %2633 = vmatprep.mubr.f32.mxu0 %v2382_v25  ;;  %2794 = vmatprep.mubr.f32.mxu1 %v2382_v25 }
 0x3ac   : > { %2634 = vmatmul.mubr.f32.gmra.mrb[126].mxu0 %v2381_v11  ;;  %2795 = vmatmul.mubr.f32.gmra.mrb[126].mxu1 %v2381_v11  ;;  %v2422_v11 = vpop.permute.xlu1 %2421 }
 0x3ad   : > { %2985 = vmatprep.mubr.f32.mxu0 %v3912_v32  ;;  %3098 = vmatprep.mubr.f32.mxu1 %v3912_v32 }
 0x443   : > { %v2545_v22 = vpop.f32.mrb[96].mxu0  ;;  %v2706_v26 = vpop.f32.mrb[96].mxu1 }
 0x444   : > { %v2547_v27 = vpop.f32.mrb[97].mxu0  ;;  %v2708_v8 = vpop.f32.mrb[97].mxu1  ;;  %v2546_v29 = vadd.f32 %v2545_v22, %v2402_v28  ;;  %v2707_v50 = vadd.f32 %v2706_v26, %v2402_v28 }
 0x445   : > { %v2548_v44 = vadd.f32 %v2547_v27, %v2402_v28  ;;  %v2709_v51 = vadd.f32 %v2708_v8, %v2402_v28  ;;  %v2427_v27 = vpop.permute.xlu0 %2426 }
 0x446   : > { %v2801_v10 = vmax.f32 %v2546_v29, 0.0  ;;  %v2803_v47 = vmax.f32 %v2707_v50, 0.0 }
 0x447   : > { %v2551_v57 = vpop.f32.mrb[98].mxu0  ;;  %v2712_v16 = vpop.f32.mrb[98].mxu1  ;;  %v2802_v54 = vmax.f32 %v2548_v44, 0.0  ;;  %v2804_v31 = vmax.f32 %v2709_v51, 0.0 }
 0x448   : > { %v2552_v62 = vadd.f32 %v2551_v57, %v2407_v49  ;;  %v2713_v17 = vadd.f32 %v2712_v16, %v2407_v49  ;;  %v2553_v24 = vpop.f32.mrb[99].mxu0  ;;  %v2714_v18 = vpop.f32.mrb[99].mxu1 }
 0x449   : > { %v2554_v30 = vadd.f32 %v2553_v24, %v2407_v49  ;;  %v2715_v19 = vadd.f32 %v2714_v18, %v2407_v49 }
 0x44a   : > { %v2805_v52 = vmax.f32 %v2552_v62, 0.0  ;;  %v2807_v38 = vmax.f32 %v2713_v17, 0.0 }
 0x44b   : > { %v2806_v60 = vmax.f32 %v2554_v30, 0.0  ;;  %v2808_v3 = vmax.f32 %v2715_v19, 0.0  ;;  %v2557_v53 = vpop.f32.mrb[100].mxu0  ;;  %v2718_v58 = vpop.f32.mrb[100].mxu1 }
 0x44c   : > { %v3688_v35 = vpack.c.bf16 %v2805_v52, %v2801_v10  ;;  %v3720_v56 = vpack.c.bf16 %v2807_v38, %v2803_v47  ;;  %v2559_v36 = vpop.f32.mrb[101].mxu0  ;;  %v2720_v55 = vpop.f32.mrb[101].mxu1  ;;  %v2558_v5 = vadd.f32 %v2557_v53, %v2412_v0  ;;  %v2719_v42 = vadd.f32 %v2718_v58, %v2412_v0 }
 0x44d   : > { %v3686_v48 = vpack.c.bf16 %v2806_v60, %v2802_v54  ;;  %v3718_v7 = vpack.c.bf16 %v2808_v3, %v2804_v31  ;;  %v2560_v43 = vadd.f32 %v2559_v36, %v2412_v0  ;;  %v2721_v63 = vadd.f32 %v2720_v55, %v2412_v0  ;;  %v2437_v0 = vpop.permute.xlu0 %2436 }
 0x44e   : > { %v2809_v45 = vmax.f32 %v2558_v5, 0.0  ;;  %v2811_v34 = vmax.f32 %v2719_v42, 0.0 }
 0x44f   : > { %v2563_v4 = vpop.f32.mrb[102].mxu0  ;;  %v2724_v20 = vpop.f32.mrb[102].mxu1  ;;  %3687 = vmatprep.subr.bf16.mxu0 %v3686_v48  ;;  %3719 = vmatprep.subr.bf16.mxu1 %v3718_v7  ;;  %v2810_v46 = vmax.f32 %v2560_v43, 0.0  ;;  %v2812_v41 = vmax.f32 %v2721_v63, 0.0 }
 0x450   : > { %v2564_v14 = vadd.f32 %v2563_v4, %v2417_v6  ;;  %v2725_v59 = vadd.f32 %v2724_v20, %v2417_v6  ;;  %v2565_v1 = vpop.f32.mrb[103].mxu0  ;;  %v2726_v23 = vpop.f32.mrb[103].mxu1  ;;  %3689 = vmatpush1.bf16.msra.mxu0 %v3688_v35  ;;  %3721 = vmatpush1.bf16.msra.mxu1 %v3720_v56 }
 0x451   : > { %v2566_v9 = vadd.f32 %v2565_v1, %v2417_v6  ;;  %v2727_v33 = vadd.f32 %v2726_v23, %v2417_v6  ;;  %v2432_v56 = vpop.permute.xlu1 %2431 }
 0x452   : > { %v2813_v39 = vmax.f32 %v2564_v14, 0.0  ;;  %v2815_v37 = vmax.f32 %v2725_v59, 0.0 }
 0x453   : > { %v2814_v40 = vmax.f32 %v2566_v9, 0.0  ;;  %v2816_v21 = vmax.f32 %v2727_v33, 0.0  ;;  %v2569_v12 = vpop.f32.mrb[104].mxu0  ;;  %v2730_v13 = vpop.f32.mrb[104].mxu1 }
 0x454   : > { %v3692_v15 = vpack.c.bf16 %v2813_v39, %v2809_v45  ;;  %v3724_v61 = vpack.c.bf16 %v2815_v37, %v2811_v34  ;;  %v2571_v2 = vpop.f32.mrb[105].mxu0  ;;  %v2732_v25 = vpop.f32.mrb[105].mxu1  ;;  %v2570_v8 = vadd.f32 %v2569_v12, %v2422_v11  ;;  %v2731_v28 = vadd.f32 %v2730_v13, %v2422_v11 }
 0x455   : > { %v3690_v22 = vpack.c.bf16 %v2814_v40, %v2810_v46  ;;  %v3722_v26 = vpack.c.bf16 %v2816_v21, %v2812_v41  ;;  %v2572_v49 = vadd.f32 %v2571_v2, %v2422_v11  ;;  %v2733_v29 = vadd.f32 %v2732_v25, %v2422_v11  ;;  %v2447_v11 = vpop.permute.xlu0 %2446 }
 0x456   : > { %v2817_v18 = vmax.f32 %v2570_v8, 0.0  ;;  %v2819_v30 = vmax.f32 %v2731_v28, 0.0 }
 0x457   : > { %v2575_v50 = vpop.f32.mrb[106].mxu0  ;;  %v2736_v44 = vpop.f32.mrb[106].mxu1  ;;  %3691 = vmatprep.subr.bf16.mxu0 %v3690_v22  ;;  %3723 = vmatprep.subr.bf16.mxu1 %v3722_v26  ;;  %v2818_v47 = vmax.f32 %v2572_v49, 0.0  ;;  %v2820_v52 = vmax.f32 %v2733_v29, 0.0 }
 0x458   : > { %v2576_v51 = vadd.f32 %v2575_v50, %v2427_v27  ;;  %v2737_v57 = vadd.f32 %v2736_v44, %v2427_v27  ;;  %v2577_v16 = vpop.f32.mrb[107].mxu0  ;;  %v2738_v62 = vpop.f32.mrb[107].mxu1  ;;  %3693 = vmatpush1.bf16.msra.mxu0 %v3692_v15  ;;  %3725 = vmatpush1.bf16.msra.mxu1 %v3724_v61 }
 0x459   : > { %v2578_v17 = vadd.f32 %v2577_v16, %v2427_v27  ;;  %v2739_v24 = vadd.f32 %v2738_v62, %v2427_v27  ;;  %v2442_v61 = vpop.permute.xlu1 %2441 }
 0x45a   : > { %v2821_v19 = vmax.f32 %v2576_v51, 0.0  ;;  %v2823_v10 = vmax.f32 %v2737_v57, 0.0 }
 0x45b   : > { %v2822_v38 = vmax.f32 %v2578_v17, 0.0  ;;  %v2824_v54 = vmax.f32 %v2739_v24, 0.0  ;;  %v2581_v31 = vpop.f32.mrb[108].mxu0  ;;  %v2742_v60 = vpop.f32.mrb[108].mxu1 }
 0x45c   : > { %v3696_v3 = vpack.c.bf16 %v2821_v19, %v2817_v18  ;;  %v3728_v53 = vpack.c.bf16 %v2823_v10, %v2819_v30  ;;  %v2583_v58 = vpop.f32.mrb[109].mxu0  ;;  %v2744_v35 = vpop.f32.mrb[109].mxu1  ;;  %v2582_v48 = vadd.f32 %v2581_v31, %v2432_v56  ;;  %v2743_v7 = vadd.f32 %v2742_v60, %v2432_v56 }
 0x45d   : > { %v3694_v36 = vpack.c.bf16 %v2822_v38, %v2818_v47  ;;  %v3726_v55 = vpack.c.bf16 %v2824_v54, %v2820_v52  ;;  %v2584_v6 = vadd.f32 %v2583_v58, %v2432_v56  ;;  %v2745_v5 = vadd.f32 %v2744_v35, %v2432_v56  ;;  %v2457_v56 = vpop.permute.xlu0 %2456 }
 0x45e   : > { %v2825_v23 = vmax.f32 %v2582_v48, 0.0  ;;  %v2827_v9 = vmax.f32 %v2743_v7, 0.0 }
 0x45f   : > { %v2587_v42 = vpop.f32.mrb[110].mxu0  ;;  %v2748_v43 = vpop.f32.mrb[110].mxu1  ;;  %3695 = vmatprep.subr.bf16.mxu0 %v3694_v36  ;;  %3727 = vmatprep.subr.bf16.mxu1 %v3726_v55  ;;  %v2826_v34 = vmax.f32 %v2584_v6, 0.0  ;;  %v2828_v39 = vmax.f32 %v2745_v5, 0.0 }
 0x460   : > { %v2588_v63 = vadd.f32 %v2587_v42, %v2437_v0  ;;  %v2749_v4 = vadd.f32 %v2748_v43, %v2437_v0  ;;  %v2589_v20 = vpop.f32.mrb[111].mxu0  ;;  %v2750_v14 = vpop.f32.mrb[111].mxu1  ;;  %3697 = vmatpush1.bf16.msra.mxu0 %v3696_v3  ;;  %3729 = vmatpush1.bf16.msra.mxu1 %v3728_v53 }
 0x461   : > { %v2590_v59 = vadd.f32 %v2589_v20, %v2437_v0  ;;  %v2751_v1 = vadd.f32 %v2750_v14, %v2437_v0  ;;  %v2452_v53 = vpop.permute.xlu1 %2451 }
 0x462   : > { %v2829_v33 = vmax.f32 %v2588_v63, 0.0  ;;  %v2831_v45 = vmax.f32 %v2749_v4, 0.0 }
 0x463   : > { %v2830_v37 = vmax.f32 %v2590_v59, 0.0  ;;  %v2832_v46 = vmax.f32 %v2751_v1, 0.0  ;;  %v2593_v41 = vpop.f32.mrb[112].mxu0  ;;  %v2754_v40 = vpop.f32.mrb[112].mxu1 }
 0x464   : > { %v3700_v21 = vpack.c.bf16 %v2829_v33, %v2825_v23  ;;  %v3732_v12 = vpack.c.bf16 %v2831_v45, %v2827_v9  ;;  %v2595_v13 = vpop.f32.mrb[113].mxu0  ;;  %v2756_v15 = vpop.f32.mrb[113].mxu1  ;;  %v2594_v22 = vadd.f32 %v2593_v41, %v2442_v61  ;;  %v2755_v26 = vadd.f32 %v2754_v40, %v2442_v61 }
 0x465   : > { %v3698_v2 = vpack.c.bf16 %v2830_v37, %v2826_v34  ;;  %v3730_v25 = vpack.c.bf16 %v2832_v46, %v2828_v39  ;;  %v2596_v27 = vadd.f32 %v2595_v13, %v2442_v61  ;;  %v2757_v8 = vadd.f32 %v2756_v15, %v2442_v61  ;;  %v2467_v61 = vpop.permute.xlu0 %2466 }
 0x466   : > { %v2833_v62 = vmax.f32 %v2594_v22, 0.0  ;;  %v2835_v17 = vmax.f32 %v2755_v26, 0.0 }
 0x467   : > { %v2599_v28 = vpop.f32.mrb[114].mxu0  ;;  %v2760_v49 = vpop.f32.mrb[114].mxu1  ;;  %3699 = vmatprep.subr.bf16.mxu0 %v3698_v2  ;;  %3731 = vmatprep.subr.bf16.mxu1 %v3730_v25  ;;  %v2834_v30 = vmax.f32 %v2596_v27, 0.0  ;;  %v2836_v19 = vmax.f32 %v2757_v8, 0.0 }
 0x468   : > { %v2600_v29 = vadd.f32 %v2599_v28, %v2447_v11  ;;  %v2761_v50 = vadd.f32 %v2760_v49, %v2447_v11  ;;  %v2601_v44 = vpop.f32.mrb[115].mxu0  ;;  %v2762_v51 = vpop.f32.mrb[115].mxu1  ;;  %3701 = vmatpush1.bf16.msra.mxu0 %v3700_v21  ;;  %3733 = vmatpush1.bf16.msra.mxu1 %v3732_v12 }
 0x469   : > { %v2602_v57 = vadd.f32 %v2601_v44, %v2447_v11  ;;  %v2763_v16 = vadd.f32 %v2762_v51, %v2447_v11  ;;  %v2462_v12 = vpop.permute.xlu1 %2461 }
 0x46a   : > { %v2837_v24 = vmax.f32 %v2600_v29, 0.0  ;;  %v2839_v18 = vmax.f32 %v2761_v50, 0.0 }
 0x46b   : > { %v2838_v10 = vmax.f32 %v2602_v57, 0.0  ;;  %v2840_v47 = vmax.f32 %v2763_v16, 0.0  ;;  %v2605_v52 = vpop.f32.mrb[116].mxu0  ;;  %v2766_v38 = vpop.f32.mrb[116].mxu1 }
 0x46c   : > { %v3704_v54 = vpack.c.bf16 %v2837_v24, %v2833_v62  ;;  %v3736_v31 = vpack.c.bf16 %v2839_v18, %v2835_v17  ;;  %v2607_v60 = vpop.f32.mrb[117].mxu0  ;;  %v2768_v3 = vpop.f32.mrb[117].mxu1  ;;  %v2606_v36 = vadd.f32 %v2605_v52, %v2452_v53  ;;  %v2767_v55 = vadd.f32 %v2766_v38, %v2452_v53 }
 0x46d   : > { %v3702_v58 = vpack.c.bf16 %v2838_v10, %v2834_v30  ;;  %v3734_v35 = vpack.c.bf16 %v2840_v47, %v2836_v19  ;;  %v2608_v0 = vadd.f32 %v2607_v60, %v2452_v53  ;;  %v2769_v48 = vadd.f32 %v2768_v3, %v2452_v53  ;;  %v2477_v53 = vpop.permute.xlu0 %2476 }
 0x46e   : > { %v2841_v14 = vmax.f32 %v2606_v36, 0.0  ;;  %v2843_v59 = vmax.f32 %v2767_v55, 0.0 }
 0x46f   : > { %v2611_v7 = vpop.f32.mrb[118].mxu0  ;;  %v2772_v6 = vpop.f32.mrb[118].mxu1  ;;  %3703 = vmatprep.subr.bf16.mxu0 %v3702_v58  ;;  %3735 = vmatprep.subr.bf16.mxu1 %v3734_v35  ;;  %v2842_v9 = vmax.f32 %v2608_v0, 0.0  ;;  %v2844_v33 = vmax.f32 %v2769_v48, 0.0 }
 0x470   : > { %v2612_v5 = vadd.f32 %v2611_v7, %v2457_v56  ;;  %v2773_v42 = vadd.f32 %v2772_v6, %v2457_v56  ;;  %v2613_v43 = vpop.f32.mrb[119].mxu0  ;;  %v2774_v63 = vpop.f32.mrb[119].mxu1  ;;  %3705 = vmatpush1.bf16.msra.mxu0 %v3704_v54  ;;  %3737 = vmatpush1.bf16.msra.mxu1 %v3736_v31 }
 0x471   : > { %v2614_v4 = vadd.f32 %v2613_v43, %v2457_v56  ;;  %v2775_v20 = vadd.f32 %v2774_v63, %v2457_v56  ;;  %v2472_v31 = vpop.permute.xlu1 %2471 }
 0x472   : > { %v2845_v1 = vmax.f32 %v2612_v5, 0.0  ;;  %v2847_v23 = vmax.f32 %v2773_v42, 0.0 }
 0x473   : > { %v2846_v45 = vmax.f32 %v2614_v4, 0.0  ;;  %v2848_v34 = vmax.f32 %v2775_v20, 0.0  ;;  %v2617_v39 = vpop.f32.mrb[120].mxu0  ;;  %v2778_v37 = vpop.f32.mrb[120].mxu1 }
 0x474   : > { %v3708_v46 = vpack.c.bf16 %v2845_v1, %v2841_v14  ;;  %v3740_v41 = vpack.c.bf16 %v2847_v23, %v2843_v59  ;;  %v2619_v40 = vpop.f32.mrb[121].mxu0  ;;  %v2780_v21 = vpop.f32.mrb[121].mxu1  ;;  %v2618_v2 = vadd.f32 %v2617_v39, %v2462_v12  ;;  %v2779_v25 = vadd.f32 %v2778_v37, %v2462_v12  ;;  %v2865_v37 = vld [vmem:[%s5044_s9] sm:$0xff] }
 0x475   : > { %v3706_v13 = vpack.c.bf16 %v2846_v45, %v2842_v9  ;;  %v3738_v15 = vpack.c.bf16 %v2848_v34, %v2844_v33  ;;  %v2620_v11 = vadd.f32 %v2619_v40, %v2462_v12  ;;  %v2781_v22 = vadd.f32 %v2780_v21, %v2462_v12  ;;  %v2868_v40 = vld [vmem:[%s5044_s9 + $0x18] sm:$0xff]  ;;  %v2869_v21 = vld [vmem:[%s5044_s9 + $0x20] sm:$0xff]  ;;  %v2870_v12 = vld [vmem:[%s5044_s9 + $0x28] sm:$0xff] }
 0x476   : > { %v2849_v51 = vmax.f32 %v2618_v2, 0.0  ;;  %v2851_v57 = vmax.f32 %v2779_v25, 0.0 }
 0x477   : > { %v2623_v26 = vpop.f32.mrb[122].mxu0  ;;  %v2784_v27 = vpop.f32.mrb[122].mxu1  ;;  %3707 = vmatprep.subr.bf16.mxu0 %v3706_v13  ;;  %3739 = vmatprep.subr.bf16.mxu1 %v3738_v15  ;;  %v2850_v17 = vmax.f32 %v2620_v11, 0.0  ;;  %v2852_v24 = vmax.f32 %v2781_v22, 0.0  ;;  %v2871_v13 = vld [vmem:[%s5044_s9 + $0x30] sm:$0xff]  ;;  %v2872_v15 = vld [vmem:[%s5044_s9 + $0x38] sm:$0xff] }
 0x478   : > { %v2624_v8 = vadd.f32 %v2623_v26, %v2467_v61  ;;  %v2785_v28 = vadd.f32 %v2784_v27, %v2467_v61  ;;  %v2625_v49 = vpop.f32.mrb[123].mxu0  ;;  %v2786_v29 = vpop.f32.mrb[123].mxu1  ;;  %3709 = vmatpush1.bf16.msra.mxu0 %v3708_v46  ;;  %3741 = vmatpush1.bf16.msra.mxu1 %v3740_v41  ;;  %v2866_v46 = vld [vmem:[%s5044_s9 + $0x8] sm:$0xff]  ;;  %v2867_v41 = vld [vmem:[%s5044_s9 + $0x10] sm:$0xff] }
 0x479   : > { %v2626_v50 = vadd.f32 %v2625_v49, %v2467_v61  ;;  %v2787_v44 = vadd.f32 %v2786_v29, %v2467_v61  ;;  %v2884_v22 = vpop.permute.xlu1 %2883  ;;  %v2889_v26 = vpop.permute.xlu0 %2888 }
 0x47a   : > { %v2853_v16 = vmax.f32 %v2624_v8, 0.0  ;;  %v2855_v62 = vmax.f32 %v2785_v28, 0.0 }
 0x47b   : > { %v2854_v18 = vmax.f32 %v2626_v50, 0.0  ;;  %v2856_v30 = vmax.f32 %v2787_v44, 0.0  ;;  %v2629_v19 = vpop.f32.mrb[124].mxu0  ;;  %v2790_v10 = vpop.f32.mrb[124].mxu1 }
 0x47c   : > { %v3712_v47 = vpack.c.bf16 %v2853_v16, %v2849_v51  ;;  %v3744_v52 = vpack.c.bf16 %v2855_v62, %v2851_v57  ;;  %v2631_v38 = vpop.f32.mrb[125].mxu0  ;;  %v2792_v54 = vpop.f32.mrb[125].mxu1  ;;  %v2630_v58 = vadd.f32 %v2629_v19, %v2472_v31  ;;  %v2791_v35 = vadd.f32 %v2790_v10, %v2472_v31 }
 0x47d   : > { %v3710_v60 = vpack.c.bf16 %v2854_v18, %v2850_v17  ;;  %v3742_v3 = vpack.c.bf16 %v2856_v30, %v2852_v24  ;;  %v2632_v56 = vadd.f32 %v2631_v38, %v2472_v31  ;;  %v2793_v36 = vadd.f32 %v2792_v54, %v2472_v31 }
 0x47e   : > { %v2857_v63 = vmax.f32 %v2630_v58, 0.0  ;;  %v2859_v4 = vmax.f32 %v2791_v35, 0.0  ;;  %v2894_v58 = vpop.permute.xlu1 %2893 }
 0x47f   : > { %v2635_v55 = vpop.f32.mrb[126].mxu0  ;;  %v2796_v0 = vpop.f32.mrb[126].mxu1  ;;  %3711 = vmatprep.subr.bf16.mxu0 %v3710_v60  ;;  %3743 = vmatprep.subr.bf16.mxu1 %v3742_v3  ;;  %v2858_v59 = vmax.f32 %v2632_v56, 0.0  ;;  %v2860_v1 = vmax.f32 %v2793_v36, 0.0 }
 0x480   : > { %v2636_v48 = vadd.f32 %v2635_v55, %v2477_v53  ;;  %v2797_v7 = vadd.f32 %v2796_v0, %v2477_v53  ;;  %v2637_v6 = vpop.f32.mrb[127].mxu0  ;;  %v2798_v5 = vpop.f32.mrb[127].mxu1  ;;  %3713 = vmatpush1.bf16.msra.mxu0 %v3712_v47  ;;  %3745 = vmatpush1.bf16.msra.mxu1 %v3744_v52 }
 0x481   : > { %v2638_v42 = vadd.f32 %v2637_v6, %v2477_v53  ;;  %v2799_v43 = vadd.f32 %v2798_v5, %v2477_v53  ;;  %v2899_v36 = vpop.permute.xlu0 %2898 }
 0x482   : > { %v2861_v20 = vmax.f32 %v2636_v48, 0.0  ;;  %v2863_v14 = vmax.f32 %v2797_v7, 0.0 }
 0x483   : > { %v2862_v23 = vmax.f32 %v2638_v42, 0.0  ;;  %v2864_v9 = vmax.f32 %v2799_v43, 0.0 }
 0x484   : > { %v3716_v33 = vpack.c.bf16 %v2861_v20, %v2857_v63  ;;  %v3748_v45 = vpack.c.bf16 %v2863_v14, %v2859_v4 }
 0x485   : > { %v3714_v34 = vpack.c.bf16 %v2862_v23, %v2858_v59  ;;  %v3746_v39 = vpack.c.bf16 %v2864_v9, %v2860_v1 }
 0x487   : > { %3715 = vmatprep.subr.bf16.mxu0 %v3714_v34  ;;  %3747 = vmatprep.subr.bf16.mxu1 %v3746_v39 }
 0x488   : > { %3717 = vmatpush1.bf16.msra.mxu0 %v3716_v33  ;;  %3749 = vmatpush1.bf16.msra.mxu1 %v3748_v45 }
 0x48b   : > { %2986 = vmatmul.mubr.f32.vlgmr.msra.gmra.mrb[128].mxu0 %v2865_v37  ;;  %3099 = vmatmul.mubr.f32.vlgmr.msra.gmra.mrb[128].mxu1 %v2865_v37 }
 0x48c   : > { %2991 = vmatprep.mubr.f32.mxu0 %v3912_v32  ;;  %3104 = vmatprep.mubr.f32.mxu1 %v3912_v32 }
 0x48f   : > { %2992 = vmatmul.mubr.f32.gmra.mrb[130].mxu0 %v2866_v46  ;;  %3105 = vmatmul.mubr.f32.gmra.mrb[130].mxu1 %v2866_v46 }
 0x490   : > { %2997 = vmatprep.mubr.f32.mxu0 %v3912_v32  ;;  %3110 = vmatprep.mubr.f32.mxu1 %v3912_v32 }
 0x493   : > { %2998 = vmatmul.mubr.f32.gmra.mrb[132].mxu0 %v2867_v41  ;;  %3111 = vmatmul.mubr.f32.gmra.mrb[132].mxu1 %v2867_v41 }
 0x494   : > { %3003 = vmatprep.mubr.f32.mxu0 %v3912_v32  ;;  %3116 = vmatprep.mubr.f32.mxu1 %v3912_v32 }
 0x497   : > { %3004 = vmatmul.mubr.f32.gmra.mrb[134].mxu0 %v2868_v40  ;;  %3117 = vmatmul.mubr.f32.gmra.mrb[134].mxu1 %v2868_v40 }
 0x498   : > { %3009 = vmatprep.mubr.f32.mxu0 %v3912_v32  ;;  %3122 = vmatprep.mubr.f32.mxu1 %v3912_v32 }
 0x49b   : > { %3010 = vmatmul.mubr.f32.gmra.mrb[136].mxu0 %v2869_v21  ;;  %3123 = vmatmul.mubr.f32.gmra.mrb[136].mxu1 %v2869_v21 }
 0x49c   : > { %3015 = vmatprep.mubr.f32.mxu0 %v3912_v32  ;;  %3128 = vmatprep.mubr.f32.mxu1 %v3912_v32 }
 0x49f   : > { %3016 = vmatmul.mubr.f32.gmra.mrb[138].mxu0 %v2870_v12  ;;  %3129 = vmatmul.mubr.f32.gmra.mrb[138].mxu1 %v2870_v12 }
 0x4a0   : > { %3021 = vmatprep.mubr.f32.mxu0 %v3912_v32  ;;  %3134 = vmatprep.mubr.f32.mxu1 %v3912_v32 }
 0x4a3   : > { %3022 = vmatmul.mubr.f32.gmra.mrb[140].mxu0 %v2871_v13  ;;  %3135 = vmatmul.mubr.f32.gmra.mrb[140].mxu1 %v2871_v13  ;;  %v2904_v13 = vpop.permute.xlu1 %2903 }
 0x4a4   : > { %3027 = vmatprep.mubr.f32.mxu0 %v3912_v32  ;;  %3140 = vmatprep.mubr.f32.mxu1 %v3912_v32 }
 0x4a7   : > { %3028 = vmatmul.mubr.f32.gmra.mrb[142].mxu0 %v2872_v15  ;;  %3141 = vmatmul.mubr.f32.gmra.mrb[142].mxu1 %v2872_v15 }
 0x4a8   : > { %3253 = vmatprep.mubr.f32.mxu0 %v3912_v32  ;;  %3324 = vmatprep.mubr.f32.mxu1 %v3912_v32 }
 0x55e   : > { %v2987_v61 = vpop.f32.mrb[128].mxu0  ;;  %v3100_v2 = vpop.f32.mrb[128].mxu1 }
 0x55f   : > { %v2989_v25 = vpop.f32.mrb[129].mxu0  ;;  %v3102_v11 = vpop.f32.mrb[129].mxu1  ;;  %v2988_v27 = vadd.f32 %v2987_v61, %v2884_v22  ;;  %v3101_v8 = vadd.f32 %v3100_v2, %v2884_v22 }
 0x560   : > { %v2990_v28 = vadd.f32 %v2989_v25, %v2884_v22  ;;  %v3103_v49 = vadd.f32 %v3102_v11, %v2884_v22  ;;  %v2909_v2 = vpop.permute.xlu0 %2908 }
 0x561   : > { %v3147_v24 = vmax.f32 %v2988_v27, 0.0  ;;  %v3149_v32 = vmax.f32 %v3101_v8, 0.0 }
 0x562   : > { %v2993_v29 = vpop.f32.mrb[130].mxu0  ;;  %v3106_v50 = vpop.f32.mrb[130].mxu1  ;;  %v3148_v19 = vmax.f32 %v2990_v28, 0.0  ;;  %v3150_v10 = vmax.f32 %v3103_v49, 0.0 }
 0x563   : > { %v2994_v44 = vadd.f32 %v2993_v29, %v2889_v26  ;;  %v3107_v51 = vadd.f32 %v3106_v50, %v2889_v26  ;;  %v2995_v57 = vpop.f32.mrb[131].mxu0  ;;  %v3108_v16 = vpop.f32.mrb[131].mxu1 }
 0x564   : > { %v2996_v62 = vadd.f32 %v2995_v57, %v2889_v26  ;;  %v3109_v17 = vadd.f32 %v3108_v16, %v2889_v26 }
 0x565   : > { %v3151_v18 = vmax.f32 %v2994_v44, 0.0  ;;  %v3153_v30 = vmax.f32 %v3107_v51, 0.0 }
 0x566   : > { %v3152_v47 = vmax.f32 %v2996_v62, 0.0  ;;  %v3154_v52 = vmax.f32 %v3109_v17, 0.0  ;;  %v2999_v38 = vpop.f32.mrb[132].mxu0  ;;  %v3112_v54 = vpop.f32.mrb[132].mxu1 }
 0x567   : > { %v3752_v31 = vpack.c.bf16 %v3151_v18, %v3147_v24  ;;  %v3768_v60 = vpack.c.bf16 %v3153_v30, %v3149_v32  ;;  %v3001_v3 = vpop.f32.mrb[133].mxu0  ;;  %v3114_v53 = vpop.f32.mrb[133].mxu1  ;;  %v3000_v55 = vadd.f32 %v2999_v38, %v2894_v58  ;;  %v3113_v0 = vadd.f32 %v3112_v54, %v2894_v58 }
 0x568   : > { %v3750_v35 = vpack.c.bf16 %v3152_v47, %v3148_v19  ;;  %v3766_v56 = vpack.c.bf16 %v3154_v52, %v3150_v10  ;;  %v3002_v48 = vadd.f32 %v3001_v3, %v2894_v58  ;;  %v3115_v7 = vadd.f32 %v3114_v53, %v2894_v58  ;;  %v2919_v53 = vpop.permute.xlu0 %2918 }
 0x569   : > { %v3155_v59 = vmax.f32 %v3000_v55, 0.0  ;;  %v3157_v1 = vmax.f32 %v3113_v0, 0.0 }
 0x56a   : > { %v3005_v6 = vpop.f32.mrb[134].mxu0  ;;  %v3118_v5 = vpop.f32.mrb[134].mxu1  ;;  %3751 = vmatprep.subr.bf16.mxu0 %v3750_v35  ;;  %3767 = vmatprep.subr.bf16.mxu1 %v3766_v56  ;;  %v3156_v33 = vmax.f32 %v3002_v48, 0.0  ;;  %v3158_v45 = vmax.f32 %v3115_v7, 0.0 }
 0x56b   : > { %v3006_v42 = vadd.f32 %v3005_v6, %v2899_v36  ;;  %v3119_v43 = vadd.f32 %v3118_v5, %v2899_v36  ;;  %v3007_v63 = vpop.f32.mrb[135].mxu0  ;;  %v3120_v4 = vpop.f32.mrb[135].mxu1  ;;  %3753 = vmatpush1.bf16.msra.mxu0 %v3752_v31  ;;  %3769 = vmatpush1.bf16.msra.mxu1 %v3768_v60 }
 0x56c   : > { %v3008_v20 = vadd.f32 %v3007_v63, %v2899_v36  ;;  %v3121_v14 = vadd.f32 %v3120_v4, %v2899_v36  ;;  %v2914_v31 = vpop.permute.xlu1 %2913 }
 0x56d   : > { %v3159_v23 = vmax.f32 %v3006_v42, 0.0  ;;  %v3161_v9 = vmax.f32 %v3119_v43, 0.0 }
 0x56e   : > { %v3160_v34 = vmax.f32 %v3008_v20, 0.0  ;;  %v3162_v39 = vmax.f32 %v3121_v14, 0.0  ;;  %v3011_v37 = vpop.f32.mrb[136].mxu0  ;;  %v3124_v46 = vpop.f32.mrb[136].mxu1 }
 0x56f   : > { %v3756_v41 = vpack.c.bf16 %v3159_v23, %v3155_v59  ;;  %v3772_v40 = vpack.c.bf16 %v3161_v9, %v3157_v1  ;;  %v3013_v21 = vpop.f32.mrb[137].mxu0  ;;  %v3126_v12 = vpop.f32.mrb[137].mxu1  ;;  %v3012_v25 = vadd.f32 %v3011_v37, %v2904_v13  ;;  %v3125_v11 = vadd.f32 %v3124_v46, %v2904_v13  ;;  %v3179_v37 = vld [vmem:[%s5046_s11] sm:$0x7] }
 0x570   : > { %v3754_v15 = vpack.c.bf16 %v3160_v34, %v3156_v33  ;;  %v3770_v61 = vpack.c.bf16 %v3162_v39, %v3158_v45  ;;  %v3014_v22 = vadd.f32 %v3013_v21, %v2904_v13  ;;  %v3127_v26 = vadd.f32 %v3126_v12, %v2904_v13  ;;  %v3184_v46 = vpop.permute.xlu1 %3183 }
 0x571   : > { %v3163_v57 = vmax.f32 %v3012_v25, 0.0  ;;  %v3165_v16 = vmax.f32 %v3125_v11, 0.0 }
 0x572   : > { %v3017_v27 = vpop.f32.mrb[138].mxu0  ;;  %v3130_v8 = vpop.f32.mrb[138].mxu1  ;;  %3755 = vmatprep.subr.bf16.mxu0 %v3754_v15  ;;  %3771 = vmatprep.subr.bf16.mxu1 %v3770_v61  ;;  %v3164_v24 = vmax.f32 %v3014_v22, 0.0  ;;  %v3166_v32 = vmax.f32 %v3127_v26, 0.0 }
 0x573   : > { %v3018_v28 = vadd.f32 %v3017_v27, %v2909_v2  ;;  %v3131_v49 = vadd.f32 %v3130_v8, %v2909_v2  ;;  %v3019_v29 = vpop.f32.mrb[139].mxu0  ;;  %v3132_v50 = vpop.f32.mrb[139].mxu1  ;;  %3757 = vmatpush1.bf16.msra.mxu0 %v3756_v41  ;;  %3773 = vmatpush1.bf16.msra.mxu1 %v3772_v40 }
 0x574   : > { %v3020_v44 = vadd.f32 %v3019_v29, %v2909_v2  ;;  %v3133_v51 = vadd.f32 %v3132_v50, %v2909_v2 }
 0x575   : > { %v3167_v62 = vmax.f32 %v3018_v28, 0.0  ;;  %v3169_v17 = vmax.f32 %v3131_v49, 0.0 }
 0x576   : > { %v3168_v18 = vmax.f32 %v3020_v44, 0.0  ;;  %v3170_v30 = vmax.f32 %v3133_v51, 0.0  ;;  %v3023_v19 = vpop.f32.mrb[140].mxu0  ;;  %v3136_v10 = vpop.f32.mrb[140].mxu1 }
 0x577   : > { %v3760_v47 = vpack.c.bf16 %v3167_v62, %v3163_v57  ;;  %v3776_v52 = vpack.c.bf16 %v3169_v17, %v3165_v16  ;;  %v3025_v38 = vpop.f32.mrb[141].mxu0  ;;  %v3138_v54 = vpop.f32.mrb[141].mxu1  ;;  %v3024_v58 = vadd.f32 %v3023_v19, %v2914_v31  ;;  %v3137_v35 = vadd.f32 %v3136_v10, %v2914_v31 }
 0x578   : > { %v3758_v60 = vpack.c.bf16 %v3168_v18, %v3164_v24  ;;  %v3774_v3 = vpack.c.bf16 %v3170_v30, %v3166_v32  ;;  %v3026_v56 = vadd.f32 %v3025_v38, %v2914_v31  ;;  %v3139_v36 = vadd.f32 %v3138_v54, %v2914_v31 }
 0x579   : > { %v3171_v63 = vmax.f32 %v3024_v58, 0.0  ;;  %v3173_v4 = vmax.f32 %v3137_v35, 0.0 }
 0x57a   : > { %v3029_v55 = vpop.f32.mrb[142].mxu0  ;;  %v3142_v0 = vpop.f32.mrb[142].mxu1  ;;  %3759 = vmatprep.subr.bf16.mxu0 %v3758_v60  ;;  %3775 = vmatprep.subr.bf16.mxu1 %v3774_v3  ;;  %v3172_v59 = vmax.f32 %v3026_v56, 0.0  ;;  %v3174_v1 = vmax.f32 %v3139_v36, 0.0 }
 0x57b   : > { %v3030_v48 = vadd.f32 %v3029_v55, %v2919_v53  ;;  %v3143_v7 = vadd.f32 %v3142_v0, %v2919_v53  ;;  %v3031_v6 = vpop.f32.mrb[143].mxu0  ;;  %v3144_v5 = vpop.f32.mrb[143].mxu1  ;;  %3761 = vmatpush1.bf16.msra.mxu0 %v3760_v47  ;;  %3777 = vmatpush1.bf16.msra.mxu1 %v3776_v52 }
 0x57c   : > { %v3032_v42 = vadd.f32 %v3031_v6, %v2919_v53  ;;  %v3145_v43 = vadd.f32 %v3144_v5, %v2919_v53 }
 0x57d   : > { %v3175_v20 = vmax.f32 %v3030_v48, 0.0  ;;  %v3177_v14 = vmax.f32 %v3143_v7, 0.0 }
 0x57e   : > { %v3176_v23 = vmax.f32 %v3032_v42, 0.0  ;;  %v3178_v9 = vmax.f32 %v3145_v43, 0.0 }
 0x57f   : > { %v3764_v33 = vpack.c.bf16 %v3175_v20, %v3171_v63  ;;  %v3780_v45 = vpack.c.bf16 %v3177_v14, %v3173_v4 }
 0x580   : > { %v3762_v34 = vpack.c.bf16 %v3176_v23, %v3172_v59  ;;  %v3778_v39 = vpack.c.bf16 %v3178_v9, %v3174_v1 }
 0x582   : > { %3763 = vmatprep.subr.bf16.mxu0 %v3762_v34  ;;  %3779 = vmatprep.subr.bf16.mxu1 %v3778_v39 }
 0x583   : > { %3765 = vmatpush1.bf16.msra.mxu0 %v3764_v33  ;;  %3781 = vmatpush1.bf16.msra.mxu1 %v3780_v45 }
 0x586   : > { %3454 = vmatmul.mubr.msk.f32.vlgmr.msra.gmra.mrb[144].mxu0 %vm1050_vm0, %v3179_v37  ;;  %3455 = vmatmul.mubr.msk.f32.vlgmr.msra.gmra.mrb[144].mxu1 %vm1050_vm0, %v3179_v37 }
 0x659   : > { %v3255_v41 = vpop.f32.mrb[144].mxu0  ;;  %v3326_v40 = vpop.f32.mrb[144].mxu1 }
 0x65a   : > { %v3256_v21 = vadd.f32 %v3255_v41, %v3184_v46  ;;  %v3327_v12 = vadd.f32 %v3326_v40, %v3184_v46  ;;  %v3257_v13 = vpop.f32.mrb[145].mxu0  ;;  %v3328_v15 = vpop.f32.mrb[145].mxu1 }
 0x65b   : > { %v3258_v61 = vadd.f32 %v3257_v13, %v3184_v46  ;;  %v3329_v2 = vadd.f32 %v3328_v15, %v3184_v46 }
 0x65d   : > { %v3335_v25 = vcombine.low %v3256_v21, %v3258_v61  ;;  %v3336_v11 = vcombine.low %v3327_v12, %v3329_v2 }
 0x65f   : > { %3339 = vst [vmem:[%s434_s16] sm:$0x77] %v3335_v25  ;;  %3340 = vst [vmem:[%s434_s16 + $0x8] sm:$0x77] %v3336_v11 }
 0x660   : > { %3858 = shalt.err (!%p3855_p3)
}
 0x661   : > { %s3859_s1 = scalar_lea.hbm %s4993_s22, 256  ;;  %s3863_s20 = scalar_lea.hbm %s5048_s13, 512 }
 0x662   : > { %p3860_p4 = scmp.ne.s32.totalorder %s4993_s22, %s3859_s1  ;;  %p3864_p9 = scmp.lt.u32.totalorder %s4993_s22, %s5048_s13 }
 0x663   : > { %p3865_p10 = scmp.lt.u32.totalorder %s3863_s20, %s3859_s1  ;;  %p3867_p12 = scmp.lt.u32.totalorder %s3859_s1, %s4993_s22 }
 0x664   : > { %p3861_p7 = pnand %p3860_p4, %p4022_p5 }
 0x665   : > { %p3866_p11 = por %p3865_p10, %p3864_p9 }
 0x666   : > { %p3862_p8 = pneg %p3861_p7 }
 0x667   : > { %p3868_p13 = por %p3867_p12, %p3866_p11 }
 0x669   : > { %p3869_p0 = pnand %p3868_p13, %p3862_p8 }
 0x66b   : > { %3872 = shalt.err (!%p3869_p0)
}
 0x66c   : > { %3782 = dma.vmem_to_hbm [thread:$0]  (%p4022_p5), %s4995_s15, 256, %s4993_s22, %s3342_s23  }
 0x66d PF: > { %p3788_p1 = scmp.ge.s32.totalorder %s3907_s28, 2  ;;  %s3368_s0 = sand.u32 1, %s3895_s25  }
 0x66e   : > { %s3369_s29 = scalar_lea.sflag [#allocation3], %s3368_s0 }
 0x66f   : > { %p3785_p2 = pnand %p3788_p1, %p4026_p6 }
 0x671   : > { %3890 = dma.done.wait (!%p3785_p2), %s3369_s29, 256  }
 0x672   : > { %3892 = vsyncadd (!%p3785_p2), %s3369_s29, 4294967040  ;;  %p23_p3 = scmp.ge.s32.totalorder %s4009_s14, 4   ;;  %s5057_s25 = smov %s3899_s26 }
 0x673   : > { %s5058_s26 = smov %s3903_s27  ;;  %s5059_s27 = smov %s4020_s17 }
 0x674   : > { %s5060_s28 = smov %s4009_s14  ;;  %25 = sbr.rel (!%p23_p3) target bundleno = 7 (0x7), region = 107 }
 0x67b   :  { %3374 = vsyncpa [#allocation3], 1 }
 0x67c   :  { %3376 = vsyncpa [#allocation3 + $0x1], 1 }

</bundles_post_ra>
